<compile_context>
chip_gen: v7x
topology: tpu7x:2x2x1
jax: 0.10.0
libtpu: 0.0.40
codegen_flags: <defaults>
</compile_context>

<pallas_src>
import functools
import math
import types

import jax
import jax.numpy as jnp
from jax.experimental import pallas as pl
from jax.experimental.pallas import tpu as pltpu


_VMEM = pl.BlockSpec(memory_space=pltpu.MemorySpace.VMEM)


# ----------------------------- Pallas kernels -----------------------------
def _matmul_bias_kernel(x_ref, w_ref, b_ref, o_ref, *, relu):
    y = jnp.dot(x_ref[...], w_ref[...], preferred_element_type=jnp.float32)
    y = y + b_ref[...]
    if relu:
        y = jnp.maximum(y, 0.0)
    o_ref[...] = y.astype(o_ref.dtype)


def _linear_pallas(x, w_t, b, *, relu):
    m = x.shape[0]
    n = w_t.shape[1]
    return pl.pallas_call(
        functools.partial(_matmul_bias_kernel, relu=relu),
        out_shape=jax.ShapeDtypeStruct((m, n), x.dtype),
        in_specs=[_VMEM, _VMEM, _VMEM],
        out_specs=_VMEM,
    )(x, w_t, b)


def _sigmoid(z):
    return 1.0 / (1.0 + jnp.exp(-z))


def _lstm_cell_kernel(x_ref, h_ref, c_ref, wih_ref, whh_ref, b_ref,
                      h_out_ref, c_out_ref):
    gates = (jnp.dot(x_ref[...], wih_ref[...], preferred_element_type=jnp.float32)
             + jnp.dot(h_ref[...], whh_ref[...], preferred_element_type=jnp.float32)
             + b_ref[...])
    hd = h_ref.shape[-1]
    i = _sigmoid(gates[:, 0 * hd:1 * hd])
    f = _sigmoid(gates[:, 1 * hd:2 * hd])
    g = jnp.tanh(gates[:, 2 * hd:3 * hd])
    o = _sigmoid(gates[:, 3 * hd:4 * hd])
    c_new = f * c_ref[...] + i * g
    h_out_ref[...] = (o * jnp.tanh(c_new)).astype(h_out_ref.dtype)
    c_out_ref[...] = c_new.astype(c_out_ref.dtype)


def _lstm_cell_pallas(x, h0, c0, w_ih_t, w_hh_t, b):
    bsz, hd = h0.shape
    return pl.pallas_call(
        _lstm_cell_kernel,
        out_shape=(jax.ShapeDtypeStruct((bsz, hd), x.dtype),
                   jax.ShapeDtypeStruct((bsz, hd), x.dtype)),
        in_specs=[_VMEM] * 6,
        out_specs=(_VMEM, _VMEM),
    )(x, h0, c0, w_ih_t, w_hh_t, b)


def _heads_kernel(x_ref, wp_ref, bp_ref, wv_ref, bv_ref, p_ref, v_ref):
    x = x_ref[...]
    logits = jnp.dot(x, wp_ref[...], preferred_element_type=jnp.float32) + bp_ref[...]
    logits = logits - jnp.max(logits, axis=-1, keepdims=True)
    e = jnp.exp(logits)
    denom = jnp.sum(e, axis=-1, keepdims=True)
    p_ref[...] = (e * pl.reciprocal(denom, approx=True)).astype(p_ref.dtype)
    v = jnp.dot(x, wv_ref[...], preferred_element_type=jnp.float32) + bv_ref[...]
    v_ref[...] = v.astype(v_ref.dtype)


def _heads_pallas(x, wp_t, bp, wv_t, bv):
    bsz = x.shape[0]
    adim = wp_t.shape[1]
    return pl.pallas_call(
        _heads_kernel,
        out_shape=(jax.ShapeDtypeStruct((bsz, adim), x.dtype),
                   jax.ShapeDtypeStruct((bsz, 1), x.dtype)),
        in_specs=[_VMEM] * 5,
        out_specs=(_VMEM, _VMEM),
    )(x, wp_t, bp, wv_t, bv)


# ----------------------------- conv via im2col -----------------------------
# TODO(synk): im2col patch extraction and NCHW<->NHWC reshapes stay as XLA
# glue in the wrapper (pure layout plumbing); the conv compute (GEMM+bias+ReLU)
# runs in the Pallas kernel above.
def _im2col(x, k, stride, padding):
    if padding:
        x = jnp.pad(x, ((0, 0), (0, 0), (padding, padding), (padding, padding)))
    b, c, h, w = x.shape
    ho = (h - k) // stride + 1
    wo = (w - k) // stride + 1
    taps = []
    for di in range(k):
        for dj in range(k):
            taps.append(x[:, :, di:di + stride * ho:stride,
                          dj:dj + stride * wo:stride])
    col = jnp.stack(taps, axis=0)           # (k*k, B, C, Ho, Wo)
    col = col.transpose(1, 3, 4, 2, 0)      # (B, Ho, Wo, C, k*k)  (C slow, tap fast)
    col = col.reshape(b * ho * wo, c * k * k)
    return col, ho, wo


def _conv2d_relu(x, w, b, *, stride, padding):
    cout, cin, k, _ = w.shape
    col, ho, wo = _im2col(x, k, stride, padding)
    w_t = w.reshape(cout, cin * k * k).T          # (Cin*k*k, Cout), matches im2col order
    y = _linear_pallas(col, w_t, b, relu=True)    # (B*Ho*Wo, Cout)
    bsz = x.shape[0]
    return y.reshape(bsz, ho, wo, cout).transpose(0, 3, 1, 2)  # back to NCHW


# ----------------------------- full forward -----------------------------
def _a3c_forward(params, x, h0, c0):
    x = _conv2d_relu(x, params["w1"], params["b1"], stride=2, padding=0)
    x = _conv2d_relu(x, params["w2"], params["b2"], stride=2, padding=1)
    x = _conv2d_relu(x, params["w3"], params["b3"], stride=2, padding=1)
    x = _conv2d_relu(x, params["w4"], params["b4"], stride=2, padding=1)
    x = x.reshape(-1, 3 * 3 * 32)                 # NCHW flatten == torch .view(-1, 288)
    h1, c1 = _lstm_cell_pallas(x, h0, c0, params["w_ih_t"], params["w_hh_t"],
                               params["b_lstm"])
    p, v = _heads_pallas(h1, params["wp_t"], params["bp"],
                         params["wv_t"], params["bv"])
    return p, v, h1, c1


# ----------------------------- model wrapper -----------------------------
class A3CCnnDisModelPallas:
    """JAX/Pallas counterpart of pytorch_rl's A3CCnnDisModel."""

    def __init__(self, args, key):
        self.logger = args.logger
        self.hidden_dim = args.hidden_dim
        self.dtype = args.dtype
        self.enable_lstm = getattr(args, "enable_lstm", True)
        self.input_dims = {0: args.hist_len, 1: args.state_shape}
        self.output_dims = args.action_dim
        self.params = self._init_weights(key)
        self._fwd = jax.jit(_a3c_forward)

    def _init_weights(self, key):
        hd = self.hidden_dim
        cin0 = self.input_dims[0]
        keys = jax.random.split(key, 8)
        params = {}

        def conv_init(k, cout, cin):
            fan_in = cin * 9
            fan_out = 9 * cout
            bound = math.sqrt(6.0 / (fan_in + fan_out))
            w = jax.random.uniform(k, (cout, cin, 3, 3), jnp.float32, -bound, bound)
            b = jnp.zeros((1, cout), jnp.float32)
            return w, b

        params["w1"], params["b1"] = conv_init(keys[0], 32, cin0)
        params["w2"], params["b2"] = conv_init(keys[1], 32, 32)
        params["w3"], params["b3"] = conv_init(keys[2], 32, 32)
        params["w4"], params["b4"] = conv_init(keys[3], 32, 32)

        # LSTMCell(288, hidden): torch default uniform(-1/sqrt(H), 1/sqrt(H));
        # both biases explicitly zeroed by the model's _init_weights.
        stdv = 1.0 / math.sqrt(hd)
        w_ih = jax.random.uniform(keys[4], (4 * hd, 3 * 3 * 32), jnp.float32, -stdv, stdv)
        w_hh = jax.random.uniform(keys[5], (4 * hd, hd), jnp.float32, -stdv, stdv)
        params["w_ih_t"] = w_ih.T
        params["w_hh_t"] = w_hh.T
        params["b_lstm"] = jnp.zeros((1, 4 * hd), jnp.float32)   # b_ih + b_hh = 0

        # policy / value heads: normalized_columns_initializer, zero bias.
        def norm_cols(k, shape, std):
            w = jax.random.normal(k, shape, jnp.float32)
            return w * std / jnp.sqrt(jnp.sum(w * w, axis=1, keepdims=True))

        wp = norm_cols(keys[6], (self.output_dims, hd), 0.01)
        wv = norm_cols(keys[7], (1, hd), 1.0)
        params["wp_t"] = wp.T
        params["bp"] = jnp.zeros((1, self.output_dims), jnp.float32)
        params["wv_t"] = wv.T
        params["bv"] = jnp.zeros((1, 1), jnp.float32)
        return params

    def forward(self, x, lstm_hidden_vb=None):
        bsz = x.shape[0]
        x = x.reshape(bsz, self.input_dims[0], self.input_dims[1], self.input_dims[1])
        if lstm_hidden_vb is None:
            h0 = jnp.zeros((bsz, self.hidden_dim), jnp.float32)
            c0 = jnp.zeros((bsz, self.hidden_dim), jnp.float32)
        else:
            h0, c0 = lstm_hidden_vb
        p, v, h1, c1 = self._fwd(self.params, x, h0, c0)
        if self.enable_lstm:
            return p, v, (h1, c1)
        return p, v


# ----------------------------- main -----------------------------
if __name__ == "__main__":
    args = types.SimpleNamespace(
        logger=None,
        hidden_dim=32,
        use_cuda=False,
        dtype=jnp.float32,
        hist_len=4,
        state_shape=42,      # smallest spatial size consistent with the hard-coded
        action_dim=6,        # 3*3*32 flatten: 42 -> 20 -> 10 -> 5 -> 3 under the conv stack
        enable_lstm=True,
    )
    key = jax.random.PRNGKey(0)
    k_model, k_x = jax.random.split(key)
    model = A3CCnnDisModelPallas(args, k_model)

    x = jax.random.normal(
        k_x, (2, args.hist_len, args.state_shape, args.state_shape), dtype=jnp.float32)

    p, v, (h, c) = model.forward(x)
    jax.block_until_ready((p, v, h, c))

    assert p.shape == (2, args.action_dim)
    assert v.shape == (2, 1)
    assert h.shape == (2, args.hidden_dim) and c.shape == (2, args.hidden_dim)
    # softmax rows should sum to ~1 (loose tolerance: approx reciprocal on EUP)
    assert bool(jnp.all(jnp.abs(jnp.sum(p, axis=-1) - 1.0) < 1e-2))
    print("KERNEL_OK")
</pallas_src>

<mosaic_0001>
module attributes {stable_mosaic.version = 11 : i64} {
  func.func @_matmul_bias_kernel(%arg0: memref<800x36xf32, #tpu.memory_space<vmem>>, %arg1: memref<36x32xf32, #tpu.memory_space<vmem>>, %arg2: memref<1x32xf32, #tpu.memory_space<vmem>>, %arg3: memref<800x32xf32, #tpu.memory_space<vmem>>) attributes {dimension_semantics = [], scalar_prefetch = 0 : i64, scratch_operands = 0 : i64, tpu.core_type = #tpu.core_type<tc>} {
    %c0 = arith.constant 0 : index
    %c0_0 = arith.constant 0 : index
    %0 = vector.load %arg0[%c0, %c0_0] : memref<800x36xf32, #tpu.memory_space<vmem>>, vector<800x36xf32>
    %c0_1 = arith.constant 0 : index
    %c0_2 = arith.constant 0 : index
    %1 = vector.load %arg1[%c0_1, %c0_2] : memref<36x32xf32, #tpu.memory_space<vmem>>, vector<36x32xf32>
    %cst = arith.constant dense<0.000000e+00> : vector<800x32xf32>
    %2 = tpu.matmul %0, %1, %cst {dimension_numbers = #tpu.dot_dimension_numbers<[1], [0], [0], [1], [0, 0, 1, 1], [], []>} : vector<800x36xf32>, vector<36x32xf32>, vector<800x32xf32> -> vector<800x32xf32>
    %c0_3 = arith.constant 0 : index
    %c0_4 = arith.constant 0 : index
    %3 = vector.load %arg2[%c0_3, %c0_4] : memref<1x32xf32, #tpu.memory_space<vmem>>, vector<1x32xf32>
    %4 = vector.broadcast %3 : vector<1x32xf32> to vector<800x32xf32>
    %5 = arith.addf %2, %4 : vector<800x32xf32>
    %cst_5 = arith.constant 0.000000e+00 : f32
    %6 = vector.broadcast %cst_5 : f32 to vector<800x32xf32>
    %7 = arith.maximumf %5, %6 : vector<800x32xf32>
    %c0_6 = arith.constant 0 : index
    %c0_7 = arith.constant 0 : index
    %8 = vector.load %arg3[%c0_6, %c0_7] : memref<800x32xf32, #tpu.memory_space<vmem>>, vector<800x32xf32>
    tpu.vector_store %arg3[%c0_6, %c0_7], %7 {strides = array<i32>} : memref<800x32xf32, #tpu.memory_space<vmem>>, vector<800x32xf32>,
    return
  }
}

module attributes {stable_mosaic.version = 11 : i64} {
  func.func @_matmul_bias_kernel(%arg0: memref<200x288xf32, #tpu.memory_space<vmem>>, %arg1: memref<288x32xf32, #tpu.memory_space<vmem>>, %arg2: memref<1x32xf32, #tpu.memory_space<vmem>>, %arg3: memref<200x32xf32, #tpu.memory_space<vmem>>) attributes {dimension_semantics = [], scalar_prefetch = 0 : i64, scratch_operands = 0 : i64, tpu.core_type = #tpu.core_type<tc>} {
    %c0 = arith.constant 0 : index
    %c0_0 = arith.constant 0 : index
    %0 = vector.load %arg0[%c0, %c0_0] : memref<200x288xf32, #tpu.memory_space<vmem>>, vector<200x288xf32>
    %c0_1 = arith.constant 0 : index
    %c0_2 = arith.constant 0 : index
    %1 = vector.load %arg1[%c0_1, %c0_2] : memref<288x32xf32, #tpu.memory_space<vmem>>, vector<288x32xf32>
    %cst = arith.constant dense<0.000000e+00> : vector<200x32xf32>
    %2 = tpu.matmul %0, %1, %cst {dimension_numbers = #tpu.dot_dimension_numbers<[1], [0], [0], [1], [0, 0, 1, 1], [], []>} : vector<200x288xf32>, vector<288x32xf32>, vector<200x32xf32> -> vector<200x32xf32>
    %c0_3 = arith.constant 0 : index
    %c0_4 = arith.constant 0 : index
    %3 = vector.load %arg2[%c0_3, %c0_4] : memref<1x32xf32, #tpu.memory_space<vmem>>, vector<1x32xf32>
    %4 = vector.broadcast %3 : vector<1x32xf32> to vector<200x32xf32>
    %5 = arith.addf %2, %4 : vector<200x32xf32>
    %cst_5 = arith.constant 0.000000e+00 : f32
    %6 = vector.broadcast %cst_5 : f32 to vector<200x32xf32>
    %7 = arith.maximumf %5, %6 : vector<200x32xf32>
    %c0_6 = arith.constant 0 : index
    %c0_7 = arith.constant 0 : index
    %8 = vector.load %arg3[%c0_6, %c0_7] : memref<200x32xf32, #tpu.memory_space<vmem>>, vector<200x32xf32>
    tpu.vector_store %arg3[%c0_6, %c0_7], %7 {strides = array<i32>} : memref<200x32xf32, #tpu.memory_space<vmem>>, vector<200x32xf32>,
    return
  }
}

module attributes {stable_mosaic.version = 11 : i64} {
  func.func @_matmul_bias_kernel(%arg0: memref<50x288xf32, #tpu.memory_space<vmem>>, %arg1: memref<288x32xf32, #tpu.memory_space<vmem>>, %arg2: memref<1x32xf32, #tpu.memory_space<vmem>>, %arg3: memref<50x32xf32, #tpu.memory_space<vmem>>) attributes {dimension_semantics = [], scalar_prefetch = 0 : i64, scratch_operands = 0 : i64, tpu.core_type = #tpu.core_type<tc>} {
    %c0 = arith.constant 0 : index
    %c0_0 = arith.constant 0 : index
    %0 = vector.load %arg0[%c0, %c0_0] : memref<50x288xf32, #tpu.memory_space<vmem>>, vector<50x288xf32>
    %c0_1 = arith.constant 0 : index
    %c0_2 = arith.constant 0 : index
    %1 = vector.load %arg1[%c0_1, %c0_2] : memref<288x32xf32, #tpu.memory_space<vmem>>, vector<288x32xf32>
    %cst = arith.constant dense<0.000000e+00> : vector<50x32xf32>
    %2 = tpu.matmul %0, %1, %cst {dimension_numbers = #tpu.dot_dimension_numbers<[1], [0], [0], [1], [0, 0, 1, 1], [], []>} : vector<50x288xf32>, vector<288x32xf32>, vector<50x32xf32> -> vector<50x32xf32>
    %c0_3 = arith.constant 0 : index
    %c0_4 = arith.constant 0 : index
    %3 = vector.load %arg2[%c0_3, %c0_4] : memref<1x32xf32, #tpu.memory_space<vmem>>, vector<1x32xf32>
    %4 = vector.broadcast %3 : vector<1x32xf32> to vector<50x32xf32>
    %5 = arith.addf %2, %4 : vector<50x32xf32>
    %cst_5 = arith.constant 0.000000e+00 : f32
    %6 = vector.broadcast %cst_5 : f32 to vector<50x32xf32>
    %7 = arith.maximumf %5, %6 : vector<50x32xf32>
    %c0_6 = arith.constant 0 : index
    %c0_7 = arith.constant 0 : index
    %8 = vector.load %arg3[%c0_6, %c0_7] : memref<50x32xf32, #tpu.memory_space<vmem>>, vector<50x32xf32>
    tpu.vector_store %arg3[%c0_6, %c0_7], %7 {strides = array<i32>} : memref<50x32xf32, #tpu.memory_space<vmem>>, vector<50x32xf32>,
    return
  }
}

module attributes {stable_mosaic.version = 11 : i64} {
  func.func @_matmul_bias_kernel(%arg0: memref<18x288xf32, #tpu.memory_space<vmem>>, %arg1: memref<288x32xf32, #tpu.memory_space<vmem>>, %arg2: memref<1x32xf32, #tpu.memory_space<vmem>>, %arg3: memref<18x32xf32, #tpu.memory_space<vmem>>) attributes {dimension_semantics = [], scalar_prefetch = 0 : i64, scratch_operands = 0 : i64, tpu.core_type = #tpu.core_type<tc>} {
    %c0 = arith.constant 0 : index
    %c0_0 = arith.constant 0 : index
    %0 = vector.load %arg0[%c0, %c0_0] : memref<18x288xf32, #tpu.memory_space<vmem>>, vector<18x288xf32>
    %c0_1 = arith.constant 0 : index
    %c0_2 = arith.constant 0 : index
    %1 = vector.load %arg1[%c0_1, %c0_2] : memref<288x32xf32, #tpu.memory_space<vmem>>, vector<288x32xf32>
    %cst = arith.constant dense<0.000000e+00> : vector<18x32xf32>
    %2 = tpu.matmul %0, %1, %cst {dimension_numbers = #tpu.dot_dimension_numbers<[1], [0], [0], [1], [0, 0, 1, 1], [], []>} : vector<18x288xf32>, vector<288x32xf32>, vector<18x32xf32> -> vector<18x32xf32>
    %c0_3 = arith.constant 0 : index
    %c0_4 = arith.constant 0 : index
    %3 = vector.load %arg2[%c0_3, %c0_4] : memref<1x32xf32, #tpu.memory_space<vmem>>, vector<1x32xf32>
    %4 = vector.broadcast %3 : vector<1x32xf32> to vector<18x32xf32>
    %5 = arith.addf %2, %4 : vector<18x32xf32>
    %cst_5 = arith.constant 0.000000e+00 : f32
    %6 = vector.broadcast %cst_5 : f32 to vector<18x32xf32>
    %7 = arith.maximumf %5, %6 : vector<18x32xf32>
    %c0_6 = arith.constant 0 : index
    %c0_7 = arith.constant 0 : index
    %8 = vector.load %arg3[%c0_6, %c0_7] : memref<18x32xf32, #tpu.memory_space<vmem>>, vector<18x32xf32>
    tpu.vector_store %arg3[%c0_6, %c0_7], %7 {strides = array<i32>} : memref<18x32xf32, #tpu.memory_space<vmem>>, vector<18x32xf32>,
    return
  }
}

module attributes {stable_mosaic.version = 11 : i64} {
  func.func @_lstm_cell_kernel(%arg0: memref<2x288xf32, #tpu.memory_space<vmem>>, %arg1: memref<2x32xf32, #tpu.memory_space<vmem>>, %arg2: memref<2x32xf32, #tpu.memory_space<vmem>>, %arg3: memref<288x128xf32, #tpu.memory_space<vmem>>, %arg4: memref<32x128xf32, #tpu.memory_space<vmem>>, %arg5: memref<1x128xf32, #tpu.memory_space<vmem>>, %arg6: memref<2x32xf32, #tpu.memory_space<vmem>>, %arg7: memref<2x32xf32, #tpu.memory_space<vmem>>) attributes {dimension_semantics = [], scalar_prefetch = 0 : i64, scratch_operands = 0 : i64, tpu.core_type = #tpu.core_type<tc>} {
    %c0 = arith.constant 0 : index
    %c0_0 = arith.constant 0 : index
    %0 = vector.load %arg0[%c0, %c0_0] : memref<2x288xf32, #tpu.memory_space<vmem>>, vector<2x288xf32>
    %c0_1 = arith.constant 0 : index
    %c0_2 = arith.constant 0 : index
    %1 = vector.load %arg3[%c0_1, %c0_2] : memref<288x128xf32, #tpu.memory_space<vmem>>, vector<288x128xf32>
    %cst = arith.constant dense<0.000000e+00> : vector<2x128xf32>
    %2 = tpu.matmul %0, %1, %cst {dimension_numbers = #tpu.dot_dimension_numbers<[1], [0], [0], [1], [0, 0, 1, 1], [], []>} : vector<2x288xf32>, vector<288x128xf32>, vector<2x128xf32> -> vector<2x128xf32>
    %c0_3 = arith.constant 0 : index
    %c0_4 = arith.constant 0 : index
    %3 = vector.load %arg1[%c0_3, %c0_4] : memref<2x32xf32, #tpu.memory_space<vmem>>, vector<2x32xf32>
    %c0_5 = arith.constant 0 : index
    %c0_6 = arith.constant 0 : index
    %4 = vector.load %arg4[%c0_5, %c0_6] : memref<32x128xf32, #tpu.memory_space<vmem>>, vector<32x128xf32>
    %cst_7 = arith.constant dense<0.000000e+00> : vector<2x128xf32>
    %5 = tpu.matmul %3, %4, %cst_7 {dimension_numbers = #tpu.dot_dimension_numbers<[1], [0], [0], [1], [0, 0, 1, 1], [], []>} : vector<2x32xf32>, vector<32x128xf32>, vector<2x128xf32> -> vector<2x128xf32>
    %6 = arith.addf %2, %5 : vector<2x128xf32>
    %c0_8 = arith.constant 0 : index
    %c0_9 = arith.constant 0 : index
    %7 = vector.load %arg5[%c0_8, %c0_9] : memref<1x128xf32, #tpu.memory_space<vmem>>, vector<1x128xf32>
    %8 = vector.broadcast %7 : vector<1x128xf32> to vector<2x128xf32>
    %9 = arith.addf %6, %8 : vector<2x128xf32>
    %10 = vector.extract_strided_slice %9 {offsets = [0, 0], sizes = [2, 32], strides = [1, 1]} : vector<2x128xf32> to vector<2x32xf32>
    %cst_10 = arith.constant 0.000000e+00 : f32
    %11 = vector.broadcast %cst_10 : f32 to vector<2x32xf32>
    %12 = arith.subf %11, %10 : vector<2x32xf32>
    %13 = math.exp %12 : vector<2x32xf32>
    %cst_11 = arith.constant 1.000000e+00 : f32
    %14 = vector.broadcast %cst_11 : f32 to vector<2x32xf32>
    %15 = arith.addf %14, %13 : vector<2x32xf32>
    %cst_12 = arith.constant 1.000000e+00 : f32
    %16 = vector.broadcast %cst_12 : f32 to vector<2x32xf32>
    %17 = arith.divf %16, %15 : vector<2x32xf32>
    %18 = vector.extract_strided_slice %9 {offsets = [0, 32], sizes = [2, 32], strides = [1, 1]} : vector<2x128xf32> to vector<2x32xf32>
    %cst_13 = arith.constant 0.000000e+00 : f32
    %19 = vector.broadcast %cst_13 : f32 to vector<2x32xf32>
    %20 = arith.subf %19, %18 : vector<2x32xf32>
    %21 = math.exp %20 : vector<2x32xf32>
    %cst_14 = arith.constant 1.000000e+00 : f32
    %22 = vector.broadcast %cst_14 : f32 to vector<2x32xf32>
    %23 = arith.addf %22, %21 : vector<2x32xf32>
    %cst_15 = arith.constant 1.000000e+00 : f32
    %24 = vector.broadcast %cst_15 : f32 to vector<2x32xf32>
    %25 = arith.divf %24, %23 : vector<2x32xf32>
    %26 = vector.extract_strided_slice %9 {offsets = [0, 64], sizes = [2, 32], strides = [1, 1]} : vector<2x128xf32> to vector<2x32xf32>
    %27 = math.tanh %26 : vector<2x32xf32>
    %28 = vector.extract_strided_slice %9 {offsets = [0, 96], sizes = [2, 32], strides = [1, 1]} : vector<2x128xf32> to vector<2x32xf32>
    %cst_16 = arith.constant 0.000000e+00 : f32
    %29 = vector.broadcast %cst_16 : f32 to vector<2x32xf32>
    %30 = arith.subf %29, %28 : vector<2x32xf32>
    %31 = math.exp %30 : vector<2x32xf32>
    %cst_17 = arith.constant 1.000000e+00 : f32
    %32 = vector.broadcast %cst_17 : f32 to vector<2x32xf32>
    %33 = arith.addf %32, %31 : vector<2x32xf32>
    %cst_18 = arith.constant 1.000000e+00 : f32
    %34 = vector.broadcast %cst_18 : f32 to vector<2x32xf32>
    %35 = arith.divf %34, %33 : vector<2x32xf32>
    %c0_19 = arith.constant 0 : index
    %c0_20 = arith.constant 0 : index
    %36 = vector.load %arg2[%c0_19, %c0_20] : memref<2x32xf32, #tpu.memory_space<vmem>>, vector<2x32xf32>
    %37 = arith.mulf %25, %36 : vector<2x32xf32>
    %38 = arith.mulf %17, %27 : vector<2x32xf32>
    %39 = arith.addf %37, %38 : vector<2x32xf32>
    %40 = math.tanh %39 : vector<2x32xf32>
    %41 = arith.mulf %35, %40 : vector<2x32xf32>
    %c0_21 = arith.constant 0 : index
    %c0_22 = arith.constant 0 : index
    %42 = vector.load %arg6[%c0_21, %c0_22] : memref<2x32xf32, #tpu.memory_space<vmem>>, vector<2x32xf32>
    tpu.vector_store %arg6[%c0_21, %c0_22], %41 {strides = array<i32>} : memref<2x32xf32, #tpu.memory_space<vmem>>, vector<2x32xf32>,
    %c0_23 = arith.constant 0 : index
    %c0_24 = arith.constant 0 : index
    %43 = vector.load %arg7[%c0_23, %c0_24] : memref<2x32xf32, #tpu.memory_space<vmem>>, vector<2x32xf32>
    tpu.vector_store %arg7[%c0_23, %c0_24], %39 {strides = array<i32>} : memref<2x32xf32, #tpu.memory_space<vmem>>, vector<2x32xf32>,
    return
  }
}

module attributes {stable_mosaic.version = 11 : i64} {
  func.func @_heads_kernel(%arg0: memref<2x32xf32, #tpu.memory_space<vmem>>, %arg1: memref<32x6xf32, #tpu.memory_space<vmem>>, %arg2: memref<1x6xf32, #tpu.memory_space<vmem>>, %arg3: memref<32x1xf32, #tpu.memory_space<vmem>>, %arg4: memref<1x1xf32, #tpu.memory_space<vmem>>, %arg5: memref<2x6xf32, #tpu.memory_space<vmem>>, %arg6: memref<2x1xf32, #tpu.memory_space<vmem>>) attributes {dimension_semantics = [], scalar_prefetch = 0 : i64, scratch_operands = 0 : i64, tpu.core_type = #tpu.core_type<tc>} {
    %c0 = arith.constant 0 : index
    %c0_0 = arith.constant 0 : index
    %0 = vector.load %arg0[%c0, %c0_0] : memref<2x32xf32, #tpu.memory_space<vmem>>, vector<2x32xf32>
    %c0_1 = arith.constant 0 : index
    %c0_2 = arith.constant 0 : index
    %1 = vector.load %arg1[%c0_1, %c0_2] : memref<32x6xf32, #tpu.memory_space<vmem>>, vector<32x6xf32>
    %cst = arith.constant dense<0.000000e+00> : vector<2x6xf32>
    %2 = tpu.matmul %0, %1, %cst {dimension_numbers = #tpu.dot_dimension_numbers<[1], [0], [0], [1], [0, 0, 1, 1], [], []>} : vector<2x32xf32>, vector<32x6xf32>, vector<2x6xf32> -> vector<2x6xf32>
    %c0_3 = arith.constant 0 : index
    %c0_4 = arith.constant 0 : index
    %3 = vector.load %arg2[%c0_3, %c0_4] : memref<1x6xf32, #tpu.memory_space<vmem>>, vector<1x6xf32>
    %4 = vector.broadcast %3 : vector<1x6xf32> to vector<2x6xf32>
    %5 = arith.addf %2, %4 : vector<2x6xf32>
    %cst_5 = arith.constant dense<0xFF800000> : vector<2xf32>
    %6 = vector.multi_reduction <maximumf>, %5, %cst_5 [1] : vector<2x6xf32> to vector<2xf32>
    %7 = vector.shape_cast %6 : vector<2xf32> to vector<2x1xf32>
    %8 = vector.broadcast %7 : vector<2x1xf32> to vector<2x6xf32>
    %9 = arith.subf %5, %8 : vector<2x6xf32>
    %10 = math.exp %9 : vector<2x6xf32>
    %cst_6 = arith.constant dense<0.000000e+00> : vector<2xf32>
    %11 = vector.multi_reduction <add>, %10, %cst_6 [1] : vector<2x6xf32> to vector<2xf32>
    %12 = vector.shape_cast %11 : vector<2xf32> to vector<2x1xf32>
    %13 = tpu.reciprocal %12 {approx = true} : vector<2x1xf32> -> vector<2x1xf32>
    %14 = vector.broadcast %13 : vector<2x1xf32> to vector<2x6xf32>
    %15 = arith.mulf %10, %14 : vector<2x6xf32>
    %c0_7 = arith.constant 0 : index
    %c0_8 = arith.constant 0 : index
    %16 = vector.load %arg5[%c0_7, %c0_8] : memref<2x6xf32, #tpu.memory_space<vmem>>, vector<2x6xf32>
    tpu.vector_store %arg5[%c0_7, %c0_8], %15 {strides = array<i32>} : memref<2x6xf32, #tpu.memory_space<vmem>>, vector<2x6xf32>,
    %c0_9 = arith.constant 0 : index
    %c0_10 = arith.constant 0 : index
    %17 = vector.load %arg3[%c0_9, %c0_10] : memref<32x1xf32, #tpu.memory_space<vmem>>, vector<32x1xf32>
    %cst_11 = arith.constant dense<0.000000e+00> : vector<2x1xf32>
    %18 = tpu.matmul %0, %17, %cst_11 {dimension_numbers = #tpu.dot_dimension_numbers<[1], [0], [0], [1], [0, 0, 1, 1], [], []>} : vector<2x32xf32>, vector<32x1xf32>, vector<2x1xf32> -> vector<2x1xf32>
    %c0_12 = arith.constant 0 : index
    %c0_13 = arith.constant 0 : index
    %19 = vector.load %arg4[%c0_12, %c0_13] : memref<1x1xf32, #tpu.memory_space<vmem>>, vector<1x1xf32>
    %20 = vector.broadcast %19 : vector<1x1xf32> to vector<2x1xf32>
    %21 = arith.addf %18, %20 : vector<2x1xf32>
    %c0_14 = arith.constant 0 : index
    %c0_15 = arith.constant 0 : index
    %22 = vector.load %arg6[%c0_14, %c0_15] : memref<2x1xf32, #tpu.memory_space<vmem>>, vector<2x1xf32>
    tpu.vector_store %arg6[%c0_14, %c0_15], %21 {strides = array<i32>} : memref<2x1xf32, #tpu.memory_space<vmem>>, vector<2x1xf32>,
    return
  }
}

</mosaic_0001>

<bundles_post_ra>
// kernel: _a3c_forward.6
= control target key start
LH: loop header
LB: loop body
LE: loop exit
PB: predicated region body
PF: predicated region fallthrough
CT: control target
= control target key end

     0   :  { %vm126_vm0 = vcmask 293888   ;;  %vm427_vm1 = vcmask 1043456   ;;  %vm1096_vm2 = vcmask 261120   ;;  %s2522_s1 = inlined_call_operand.vmem [shape: f32[36,32], index: 1, kind: input, shape index: {}]   ;;  %s2523_s0 = inlined_call_operand.vmem [shape: f32[800,36], index: 0, kind: input, shape index: {}]   ;;  %s2524_s2 = inlined_call_operand.vmem [shape: f32[1,32], index: 2, kind: input, shape index: {}]   ;;  %s2525_s3 = inlined_call_operand.vmem [shape: f32[800,32], index: 3, kind: output, shape index: {}]  }
   0x1   :  { %v114_v0 = vld [vmem:[%s2522_s1] sm:$0xff]  ;;  %v115_v1 = vld [vmem:[%s2522_s1 + $0x8] sm:$0xff]  ;;  %v116_v2 = vld [vmem:[%s2522_s1 + $0x10] sm:$0xff] }
   0x2   :  { %v1568_v3 = vpack.c.bf16 %v115_v1, %v114_v0  ;;  %v117_v4 = vld [vmem:[%s2522_s1 + $0x18] sm:$0xff]  ;;  %v14_v5 = vld [vmem:[%s2523_s0] sm:$0xff]  ;;  %v64_v7 = vld [vmem:[%s2523_s0 + $0x190] sm:$0xff] }
   0x3   :  { %v1572_v6 = vpack.c.bf16 %v117_v4, %v116_v2  ;;  %1418 = vmatprep.mubr.msk.f32.mxu0 %vm126_vm0, %v14_v5  ;;  %v118_v8 = vld [vmem:[%s2522_s1 + $0x20] sm:$0xf]  ;;  %1493 = vmatprep.mubr.msk.f32.mxu1 %vm126_vm0, %v64_v7  ;;  %v15_v9 = vld [vmem:[%s2523_s0 + $0x8] sm:$0xff]  ;;  %v65_v10 = vld [vmem:[%s2523_s0 + $0x198] sm:$0xff] }
   0x4   :  { %1569 = vmatprep.subr.bf16.mxu0 %v1568_v3  ;;  %1576 = vmatprep.subr.bf16.mxu1 %v1568_v3  ;;  %v16_v11 = vld [vmem:[%s2523_s0 + $0x10] sm:$0xff]  ;;  %v66_v12 = vld [vmem:[%s2523_s0 + $0x1a0] sm:$0xff]  ;;  %v17_v13 = vld [vmem:[%s2523_s0 + $0x18] sm:$0xff] }
   0x5   :  { %1571 = vmatpush3.bf16.msra.mxu0 %v1568_v3  ;;  %1579 = vmatpush3.bf16.msra.mxu1 %v1568_v3  ;;  %v67_v14 = vld [vmem:[%s2523_s0 + $0x1a8] sm:$0xff]  ;;  %v18_v15 = vld [vmem:[%s2523_s0 + $0x20] sm:$0xff]  ;;  %v68_v16 = vld [vmem:[%s2523_s0 + $0x1b0] sm:$0xff] }
   0x6   :  { %1573 = vmatprep.subr.bf16.mxu0 %v1572_v6  ;;  %1577 = vmatprep.subr.bf16.mxu1 %v1572_v6  ;;  %v19_v17 = vld [vmem:[%s2523_s0 + $0x28] sm:$0xff]  ;;  %v69_v18 = vld [vmem:[%s2523_s0 + $0x1b8] sm:$0xff]  ;;  %v20_v19 = vld [vmem:[%s2523_s0 + $0x30] sm:$0xff] }
   0x7   :  { %v70_v20 = vld [vmem:[%s2523_s0 + $0x1c0] sm:$0xff]  ;;  %v21_v21 = vld [vmem:[%s2523_s0 + $0x38] sm:$0xff]  ;;  %v71_v22 = vld [vmem:[%s2523_s0 + $0x1c8] sm:$0xff] }
   0x8   :  { %v22_v23 = vld [vmem:[%s2523_s0 + $0x40] sm:$0xff]  ;;  %v72_v24 = vld [vmem:[%s2523_s0 + $0x1d0] sm:$0xff]  ;;  %v23_v25 = vld [vmem:[%s2523_s0 + $0x48] sm:$0xff] }
   0x9   :  { %1575 = vmatpush3.bf16.msra.mxu0 %v1572_v6  ;;  %1580 = vmatpush3.bf16.msra.mxu1 %v1572_v6  ;;  %v73_v26 = vld [vmem:[%s2523_s0 + $0x1d8] sm:$0xff]  ;;  %v24_v27 = vld [vmem:[%s2523_s0 + $0x50] sm:$0xff]  ;;  %v74_v28 = vld [vmem:[%s2523_s0 + $0x1e0] sm:$0xff] }
   0xa   :  { %1416 = vmatprep.subr.msk.mxu0 %vm427_vm1, %v118_v8  ;;  %1578 = vmatprep.subr.msk.mxu1 %vm427_vm1, %v118_v8  ;;  %v25_v29 = vld [vmem:[%s2523_s0 + $0x58] sm:$0xff]  ;;  %v75_v30 = vld [vmem:[%s2523_s0 + $0x1e8] sm:$0xff]  ;;  %v26_v31 = vld [vmem:[%s2523_s0 + $0x60] sm:$0xff] }
   0xb   :  { %v76_v32 = vld [vmem:[%s2523_s0 + $0x1f0] sm:$0xff]  ;;  %v27_v33 = vld [vmem:[%s2523_s0 + $0x68] sm:$0xff]  ;;  %v77_v34 = vld [vmem:[%s2523_s0 + $0x1f8] sm:$0xff] }
   0xc   :  { %v28_v35 = vld [vmem:[%s2523_s0 + $0x70] sm:$0xff]  ;;  %v78_v36 = vld [vmem:[%s2523_s0 + $0x200] sm:$0xff]  ;;  %v29_v37 = vld [vmem:[%s2523_s0 + $0x78] sm:$0xff] }
   0xd   :  { %1417 = vmatpush3.msk.msra.mxu0 %vm427_vm1, %v118_v8  ;;  %1581 = vmatpush3.msk.msra.mxu1 %vm427_vm1, %v118_v8  ;;  %v79_v38 = vld [vmem:[%s2523_s0 + $0x208] sm:$0xff]  ;;  %v30_v39 = vld [vmem:[%s2523_s0 + $0x80] sm:$0xff]  ;;  %v80_v40 = vld [vmem:[%s2523_s0 + $0x210] sm:$0xff] }
   0xe   :  { %1419 = vmatmul.mubr.msk.f32.vlgmr.msra.gmra.mrb[0].mxu0 %vm126_vm0, %v15_v9  ;;  %1494 = vmatmul.mubr.msk.f32.vlgmr.msra.gmra.mrb[0].mxu1 %vm126_vm0, %v65_v10  ;;  %v31_v41 = vld [vmem:[%s2523_s0 + $0x88] sm:$0xff]  ;;  %v81_v42 = vld [vmem:[%s2523_s0 + $0x218] sm:$0xff]  ;;  %v32_v43 = vld [vmem:[%s2523_s0 + $0x90] sm:$0xff] }
   0xf   :  { %1421 = vmatprep.mubr.msk.f32.mxu0 %vm126_vm0, %v16_v11  ;;  %1496 = vmatprep.mubr.msk.f32.mxu1 %vm126_vm0, %v66_v12  ;;  %v82_v44 = vld [vmem:[%s2523_s0 + $0x220] sm:$0xff]  ;;  %v33_v45 = vld [vmem:[%s2523_s0 + $0x98] sm:$0xff]  ;;  %v83_v46 = vld [vmem:[%s2523_s0 + $0x228] sm:$0xff] }
  0x10   :  { %v34_v47 = vld [vmem:[%s2523_s0 + $0xa0] sm:$0xff]  ;;  %v84_v48 = vld [vmem:[%s2523_s0 + $0x230] sm:$0xff]  ;;  %v35_v49 = vld [vmem:[%s2523_s0 + $0xa8] sm:$0xff] }
  0x11   :  { %v85_v50 = vld [vmem:[%s2523_s0 + $0x238] sm:$0xff]  ;;  %v36_v51 = vld [vmem:[%s2523_s0 + $0xb0] sm:$0xff]  ;;  %v86_v52 = vld [vmem:[%s2523_s0 + $0x240] sm:$0xff] }
  0x12   :  { %1422 = vmatmul.mubr.msk.f32.gmra.mrb[2].mxu0 %vm126_vm0, %v17_v13  ;;  %1497 = vmatmul.mubr.msk.f32.gmra.mrb[2].mxu1 %vm126_vm0, %v67_v14  ;;  %v37_v53 = vld [vmem:[%s2523_s0 + $0xb8] sm:$0xff]  ;;  %v87_v54 = vld [vmem:[%s2523_s0 + $0x248] sm:$0xff]  ;;  %v38_v55 = vld [vmem:[%s2523_s0 + $0xc0] sm:$0xff] }
  0x13   :  { %1424 = vmatprep.mubr.msk.f32.mxu0 %vm126_vm0, %v18_v15  ;;  %1499 = vmatprep.mubr.msk.f32.mxu1 %vm126_vm0, %v68_v16  ;;  %v88_v56 = vld [vmem:[%s2523_s0 + $0x250] sm:$0xff]  ;;  %v39_v57 = vld [vmem:[%s2523_s0 + $0xc8] sm:$0xff]  ;;  %v89_v58 = vld [vmem:[%s2523_s0 + $0x258] sm:$0xff] }
  0x14   :  { %v40_v59 = vld [vmem:[%s2523_s0 + $0xd0] sm:$0xff]  ;;  %v90_v60 = vld [vmem:[%s2523_s0 + $0x260] sm:$0xff]  ;;  %v41_v61 = vld [vmem:[%s2523_s0 + $0xd8] sm:$0xff] }
  0x15   :  { %v91_v62 = vld [vmem:[%s2523_s0 + $0x268] sm:$0xff]  ;;  %v42_v63 = vld [vmem:[%s2523_s0 + $0xe0] sm:$0xff]  ;;  %v92_v0 = vld [vmem:[%s2523_s0 + $0x270] sm:$0xff] }
  0x16   :  { %1425 = vmatmul.mubr.msk.f32.gmra.mrb[4].mxu0 %vm126_vm0, %v19_v17  ;;  %1500 = vmatmul.mubr.msk.f32.gmra.mrb[4].mxu1 %vm126_vm0, %v69_v18  ;;  %v43_v1 = vld [vmem:[%s2523_s0 + $0xe8] sm:$0xff]  ;;  %v93_v2 = vld [vmem:[%s2523_s0 + $0x278] sm:$0xff]  ;;  %v44_v3 = vld [vmem:[%s2523_s0 + $0xf0] sm:$0xff] }
  0x17   :  { %1427 = vmatprep.mubr.msk.f32.mxu0 %vm126_vm0, %v20_v19  ;;  %1502 = vmatprep.mubr.msk.f32.mxu1 %vm126_vm0, %v70_v20  ;;  %v94_v4 = vld [vmem:[%s2523_s0 + $0x280] sm:$0xff]  ;;  %v45_v5 = vld [vmem:[%s2523_s0 + $0xf8] sm:$0xff]  ;;  %v95_v6 = vld [vmem:[%s2523_s0 + $0x288] sm:$0xff] }
  0x18   :  { %v46_v7 = vld [vmem:[%s2523_s0 + $0x100] sm:$0xff]  ;;  %v96_v8 = vld [vmem:[%s2523_s0 + $0x290] sm:$0xff]  ;;  %v47_v9 = vld [vmem:[%s2523_s0 + $0x108] sm:$0xff] }
  0x19   :  { %v97_v10 = vld [vmem:[%s2523_s0 + $0x298] sm:$0xff]  ;;  %v48_v11 = vld [vmem:[%s2523_s0 + $0x110] sm:$0xff]  ;;  %v98_v12 = vld [vmem:[%s2523_s0 + $0x2a0] sm:$0xff] }
  0x1a   :  { %1428 = vmatmul.mubr.msk.f32.gmra.mrb[6].mxu0 %vm126_vm0, %v21_v21  ;;  %1503 = vmatmul.mubr.msk.f32.gmra.mrb[6].mxu1 %vm126_vm0, %v71_v22  ;;  %v49_v13 = vld [vmem:[%s2523_s0 + $0x118] sm:$0xff]  ;;  %v99_v14 = vld [vmem:[%s2523_s0 + $0x2a8] sm:$0xff]  ;;  %v50_v15 = vld [vmem:[%s2523_s0 + $0x120] sm:$0xff] }
  0x1b   :  { %1430 = vmatprep.mubr.msk.f32.mxu0 %vm126_vm0, %v22_v23  ;;  %1505 = vmatprep.mubr.msk.f32.mxu1 %vm126_vm0, %v72_v24  ;;  %v100_v16 = vld [vmem:[%s2523_s0 + $0x2b0] sm:$0xff]  ;;  %v51_v17 = vld [vmem:[%s2523_s0 + $0x128] sm:$0xff]  ;;  %v101_v18 = vld [vmem:[%s2523_s0 + $0x2b8] sm:$0xff] }
  0x1c   :  { %v52_v19 = vld [vmem:[%s2523_s0 + $0x130] sm:$0xff]  ;;  %v102_v20 = vld [vmem:[%s2523_s0 + $0x2c0] sm:$0xff]  ;;  %v53_v21 = vld [vmem:[%s2523_s0 + $0x138] sm:$0xff] }
  0x1d   :  { %v103_v22 = vld [vmem:[%s2523_s0 + $0x2c8] sm:$0xff]  ;;  %v54_v23 = vld [vmem:[%s2523_s0 + $0x140] sm:$0xff]  ;;  %v104_v24 = vld [vmem:[%s2523_s0 + $0x2d0] sm:$0xff] }
  0x1e   :  { %1431 = vmatmul.mubr.msk.f32.gmra.mrb[8].mxu0 %vm126_vm0, %v23_v25  ;;  %1506 = vmatmul.mubr.msk.f32.gmra.mrb[8].mxu1 %vm126_vm0, %v73_v26  ;;  %v55_v25 = vld [vmem:[%s2523_s0 + $0x148] sm:$0xff]  ;;  %v105_v26 = vld [vmem:[%s2523_s0 + $0x2d8] sm:$0xff] }
  0x1f   :  { %1433 = vmatprep.mubr.msk.f32.mxu0 %vm126_vm0, %v24_v27  ;;  %1508 = vmatprep.mubr.msk.f32.mxu1 %vm126_vm0, %v74_v28  ;;  %v56_v27 = vld [vmem:[%s2523_s0 + $0x150] sm:$0xff]  ;;  %v106_v28 = vld [vmem:[%s2523_s0 + $0x2e0] sm:$0xff] }
  0x22   :  { %1434 = vmatmul.mubr.msk.f32.gmra.mrb[10].mxu0 %vm126_vm0, %v25_v29  ;;  %1509 = vmatmul.mubr.msk.f32.gmra.mrb[10].mxu1 %vm126_vm0, %v75_v30  ;;  %v57_v29 = vld [vmem:[%s2523_s0 + $0x158] sm:$0xff]  ;;  %v107_v30 = vld [vmem:[%s2523_s0 + $0x2e8] sm:$0xff] }
  0x23   :  { %1436 = vmatprep.mubr.msk.f32.mxu0 %vm126_vm0, %v26_v31  ;;  %1511 = vmatprep.mubr.msk.f32.mxu1 %vm126_vm0, %v76_v32  ;;  %v58_v31 = vld [vmem:[%s2523_s0 + $0x160] sm:$0xff]  ;;  %v108_v32 = vld [vmem:[%s2523_s0 + $0x2f0] sm:$0xff] }
  0x26   :  { %1437 = vmatmul.mubr.msk.f32.gmra.mrb[12].mxu0 %vm126_vm0, %v27_v33  ;;  %1512 = vmatmul.mubr.msk.f32.gmra.mrb[12].mxu1 %vm126_vm0, %v77_v34  ;;  %v59_v33 = vld [vmem:[%s2523_s0 + $0x168] sm:$0xff]  ;;  %v109_v34 = vld [vmem:[%s2523_s0 + $0x2f8] sm:$0xff] }
  0x27   :  { %1439 = vmatprep.mubr.msk.f32.mxu0 %vm126_vm0, %v28_v35  ;;  %1514 = vmatprep.mubr.msk.f32.mxu1 %vm126_vm0, %v78_v36  ;;  %v60_v35 = vld [vmem:[%s2523_s0 + $0x170] sm:$0xff]  ;;  %v110_v36 = vld [vmem:[%s2523_s0 + $0x300] sm:$0xff] }
  0x2a   :  { %1440 = vmatmul.mubr.msk.f32.gmra.mrb[14].mxu0 %vm126_vm0, %v29_v37  ;;  %1515 = vmatmul.mubr.msk.f32.gmra.mrb[14].mxu1 %vm126_vm0, %v79_v38  ;;  %v61_v37 = vld [vmem:[%s2523_s0 + $0x178] sm:$0xff]  ;;  %v111_v38 = vld [vmem:[%s2523_s0 + $0x308] sm:$0xff] }
  0x2b   :  { %1442 = vmatprep.mubr.msk.f32.mxu0 %vm126_vm0, %v30_v39  ;;  %1517 = vmatprep.mubr.msk.f32.mxu1 %vm126_vm0, %v80_v40  ;;  %v62_v39 = vld [vmem:[%s2523_s0 + $0x180] sm:$0xff]  ;;  %v112_v40 = vld [vmem:[%s2523_s0 + $0x310] sm:$0xff] }
  0x2e   :  { %1443 = vmatmul.mubr.msk.f32.gmra.mrb[16].mxu0 %vm126_vm0, %v31_v41  ;;  %1518 = vmatmul.mubr.msk.f32.gmra.mrb[16].mxu1 %vm126_vm0, %v81_v42  ;;  %v63_v41 = vld [vmem:[%s2523_s0 + $0x188] sm:$0xff]  ;;  %v113_v42 = vld [vmem:[%s2523_s0 + $0x318] sm:$0xff] }
  0x2f   :  { %1445 = vmatprep.mubr.msk.f32.mxu0 %vm126_vm0, %v32_v43  ;;  %1520 = vmatprep.mubr.msk.f32.mxu1 %vm126_vm0, %v82_v44  ;;  %v2020_v43 = vld [vmem:[%s2524_s2] ss:$0 sm:$0xff] }
  0x32   :  { %1446 = vmatmul.mubr.msk.f32.gmra.mrb[18].mxu0 %vm126_vm0, %v33_v45  ;;  %1521 = vmatmul.mubr.msk.f32.gmra.mrb[18].mxu1 %vm126_vm0, %v83_v46 }
  0x33   :  { %1448 = vmatprep.mubr.msk.f32.mxu0 %vm126_vm0, %v34_v47  ;;  %1523 = vmatprep.mubr.msk.f32.mxu1 %vm126_vm0, %v84_v48 }
  0x36   :  { %1449 = vmatmul.mubr.msk.f32.gmra.mrb[20].mxu0 %vm126_vm0, %v35_v49  ;;  %1524 = vmatmul.mubr.msk.f32.gmra.mrb[20].mxu1 %vm126_vm0, %v85_v50 }
  0x37   :  { %1451 = vmatprep.mubr.msk.f32.mxu0 %vm126_vm0, %v36_v51  ;;  %1526 = vmatprep.mubr.msk.f32.mxu1 %vm126_vm0, %v86_v52 }
  0x3a   :  { %1452 = vmatmul.mubr.msk.f32.gmra.mrb[22].mxu0 %vm126_vm0, %v37_v53  ;;  %1527 = vmatmul.mubr.msk.f32.gmra.mrb[22].mxu1 %vm126_vm0, %v87_v54 }
  0x3b   :  { %1454 = vmatprep.mubr.msk.f32.mxu0 %vm126_vm0, %v38_v55  ;;  %1529 = vmatprep.mubr.msk.f32.mxu1 %vm126_vm0, %v88_v56 }
  0x3e   :  { %1455 = vmatmul.mubr.msk.f32.gmra.mrb[24].mxu0 %vm126_vm0, %v39_v57  ;;  %1530 = vmatmul.mubr.msk.f32.gmra.mrb[24].mxu1 %vm126_vm0, %v89_v58 }
  0x3f   :  { %1457 = vmatprep.mubr.msk.f32.mxu0 %vm126_vm0, %v40_v59  ;;  %1532 = vmatprep.mubr.msk.f32.mxu1 %vm126_vm0, %v90_v60 }
  0x42   :  { %1458 = vmatmul.mubr.msk.f32.gmra.mrb[26].mxu0 %vm126_vm0, %v41_v61  ;;  %1533 = vmatmul.mubr.msk.f32.gmra.mrb[26].mxu1 %vm126_vm0, %v91_v62 }
  0x43   :  { %1460 = vmatprep.mubr.msk.f32.mxu0 %vm126_vm0, %v42_v63  ;;  %1535 = vmatprep.mubr.msk.f32.mxu1 %vm126_vm0, %v92_v0 }
  0x46   :  { %1461 = vmatmul.mubr.msk.f32.gmra.mrb[28].mxu0 %vm126_vm0, %v43_v1  ;;  %1536 = vmatmul.mubr.msk.f32.gmra.mrb[28].mxu1 %vm126_vm0, %v93_v2 }
  0x47   :  { %1463 = vmatprep.mubr.msk.f32.mxu0 %vm126_vm0, %v44_v3  ;;  %1538 = vmatprep.mubr.msk.f32.mxu1 %vm126_vm0, %v94_v4 }
  0x4a   :  { %1464 = vmatmul.mubr.msk.f32.gmra.mrb[30].mxu0 %vm126_vm0, %v45_v5  ;;  %1539 = vmatmul.mubr.msk.f32.gmra.mrb[30].mxu1 %vm126_vm0, %v95_v6 }
  0x4b   :  { %1466 = vmatprep.mubr.msk.f32.mxu0 %vm126_vm0, %v46_v7  ;;  %1541 = vmatprep.mubr.msk.f32.mxu1 %vm126_vm0, %v96_v8 }
  0x4e   :  { %1467 = vmatmul.mubr.msk.f32.gmra.mrb[32].mxu0 %vm126_vm0, %v47_v9  ;;  %1542 = vmatmul.mubr.msk.f32.gmra.mrb[32].mxu1 %vm126_vm0, %v97_v10 }
  0x4f   :  { %1469 = vmatprep.mubr.msk.f32.mxu0 %vm126_vm0, %v48_v11  ;;  %1544 = vmatprep.mubr.msk.f32.mxu1 %vm126_vm0, %v98_v12 }
  0x52   :  { %1470 = vmatmul.mubr.msk.f32.gmra.mrb[34].mxu0 %vm126_vm0, %v49_v13  ;;  %1545 = vmatmul.mubr.msk.f32.gmra.mrb[34].mxu1 %vm126_vm0, %v99_v14 }
  0x53   :  { %1472 = vmatprep.mubr.msk.f32.mxu0 %vm126_vm0, %v50_v15  ;;  %1547 = vmatprep.mubr.msk.f32.mxu1 %vm126_vm0, %v100_v16 }
  0x56   :  { %1473 = vmatmul.mubr.msk.f32.gmra.mrb[36].mxu0 %vm126_vm0, %v51_v17  ;;  %1548 = vmatmul.mubr.msk.f32.gmra.mrb[36].mxu1 %vm126_vm0, %v101_v18 }
  0x57   :  { %1475 = vmatprep.mubr.msk.f32.mxu0 %vm126_vm0, %v52_v19  ;;  %1550 = vmatprep.mubr.msk.f32.mxu1 %vm126_vm0, %v102_v20 }
  0x5a   :  { %1476 = vmatmul.mubr.msk.f32.gmra.mrb[38].mxu0 %vm126_vm0, %v53_v21  ;;  %1551 = vmatmul.mubr.msk.f32.gmra.mrb[38].mxu1 %vm126_vm0, %v103_v22 }
  0x5b   :  { %1478 = vmatprep.mubr.msk.f32.mxu0 %vm126_vm0, %v54_v23  ;;  %1553 = vmatprep.mubr.msk.f32.mxu1 %vm126_vm0, %v104_v24 }
  0x5e   :  { %1479 = vmatmul.mubr.msk.f32.gmra.mrb[40].mxu0 %vm126_vm0, %v55_v25  ;;  %1554 = vmatmul.mubr.msk.f32.gmra.mrb[40].mxu1 %vm126_vm0, %v105_v26 }
  0x5f   :  { %1481 = vmatprep.mubr.msk.f32.mxu0 %vm126_vm0, %v56_v27  ;;  %1556 = vmatprep.mubr.msk.f32.mxu1 %vm126_vm0, %v106_v28 }
  0x62   :  { %1482 = vmatmul.mubr.msk.f32.gmra.mrb[42].mxu0 %vm126_vm0, %v57_v29  ;;  %1557 = vmatmul.mubr.msk.f32.gmra.mrb[42].mxu1 %vm126_vm0, %v107_v30 }
  0x63   :  { %1484 = vmatprep.mubr.msk.f32.mxu0 %vm126_vm0, %v58_v31  ;;  %1559 = vmatprep.mubr.msk.f32.mxu1 %vm126_vm0, %v108_v32 }
  0x66   :  { %1485 = vmatmul.mubr.msk.f32.gmra.mrb[44].mxu0 %vm126_vm0, %v59_v33  ;;  %1560 = vmatmul.mubr.msk.f32.gmra.mrb[44].mxu1 %vm126_vm0, %v109_v34 }
  0x67   :  { %1487 = vmatprep.mubr.msk.f32.mxu0 %vm126_vm0, %v60_v35  ;;  %1562 = vmatprep.mubr.msk.f32.mxu1 %vm126_vm0, %v110_v36 }
  0x6a   :  { %1488 = vmatmul.mubr.msk.f32.gmra.mrb[46].mxu0 %vm126_vm0, %v61_v37  ;;  %1563 = vmatmul.mubr.msk.f32.gmra.mrb[46].mxu1 %vm126_vm0, %v111_v38 }
  0x6b   :  { %1490 = vmatprep.mubr.msk.f32.mxu0 %vm126_vm0, %v62_v39  ;;  %1565 = vmatprep.mubr.msk.f32.mxu1 %vm126_vm0, %v112_v40 }
  0x6e   :  { %1491 = vmatmul.mubr.msk.f32.gmra.mrb[48].mxu0 %vm126_vm0, %v63_v41  ;;  %1566 = vmatmul.mubr.msk.f32.gmra.mrb[48].mxu1 %vm126_vm0, %v113_v42 }
  0xe1   :  { %v1420_v44 = vpop.f32.mrb[0].mxu0  ;;  %v1495_v45 = vpop.f32.mrb[0].mxu1 }
  0xe2   :  { %v503_v46 = vadd.f32 %v1420_v44, %v2020_v43  ;;  %v753_v47 = vadd.f32 %v1495_v45, %v2020_v43  ;;  %v497_v48 = vpop.f32.mrb[1].mxu0  ;;  %v747_v49 = vpop.f32.mrb[1].mxu1 }
  0xe3   :  { %v498_v50 = vadd.f32 %v2020_v43, %v497_v48  ;;  %v748_v51 = vadd.f32 %v2020_v43, %v747_v49 }
  0xe4   :  { %v997_v52 = vmax.f32 %v503_v46, 0.0  ;;  %v1047_v53 = vmax.f32 %v753_v47, 0.0 }
  0xe5   :  { %v996_v54 = vmax.f32 %v498_v50, 0.0  ;;  %v1046_v55 = vmax.f32 %v748_v51, 0.0  ;;  %v1423_v56 = vpop.f32.mrb[2].mxu0  ;;  %v1498_v57 = vpop.f32.mrb[2].mxu1 }
  0xe6   :  { %1098 = vst.msk [vmem:[%s2525_s3 + $0x8] sm:$0xff] %vm1096_vm2, %v997_v52  ;;  %1148 = vst.msk [vmem:[%s2525_s3 + $0x198] sm:$0xff] %vm1096_vm2, %v1047_v53  ;;  %v513_v58 = vadd.f32 %v1423_v56, %v2020_v43  ;;  %v763_v59 = vadd.f32 %v1498_v57, %v2020_v43  ;;  %v507_v60 = vpop.f32.mrb[3].mxu0  ;;  %v757_v61 = vpop.f32.mrb[3].mxu1 }
  0xe7   :  { %1097 = vst.msk [vmem:[%s2525_s3] sm:$0xff] %vm1096_vm2, %v996_v54  ;;  %1147 = vst.msk [vmem:[%s2525_s3 + $0x190] sm:$0xff] %vm1096_vm2, %v1046_v55  ;;  %v508_v62 = vadd.f32 %v2020_v43, %v507_v60  ;;  %v758_v63 = vadd.f32 %v2020_v43, %v757_v61 }
  0xe8   :  { %v999_v0 = vmax.f32 %v513_v58, 0.0  ;;  %v1049_v1 = vmax.f32 %v763_v59, 0.0 }
  0xe9   :  { %v998_v2 = vmax.f32 %v508_v62, 0.0  ;;  %v1048_v3 = vmax.f32 %v758_v63, 0.0  ;;  %v1426_v4 = vpop.f32.mrb[4].mxu0  ;;  %v1501_v5 = vpop.f32.mrb[4].mxu1 }
  0xea   :  { %1100 = vst.msk [vmem:[%s2525_s3 + $0x18] sm:$0xff] %vm1096_vm2, %v999_v0  ;;  %1150 = vst.msk [vmem:[%s2525_s3 + $0x1a8] sm:$0xff] %vm1096_vm2, %v1049_v1  ;;  %v523_v6 = vadd.f32 %v1426_v4, %v2020_v43  ;;  %v773_v7 = vadd.f32 %v1501_v5, %v2020_v43  ;;  %v517_v8 = vpop.f32.mrb[5].mxu0  ;;  %v767_v9 = vpop.f32.mrb[5].mxu1 }
  0xeb   :  { %1099 = vst.msk [vmem:[%s2525_s3 + $0x10] sm:$0xff] %vm1096_vm2, %v998_v2  ;;  %1149 = vst.msk [vmem:[%s2525_s3 + $0x1a0] sm:$0xff] %vm1096_vm2, %v1048_v3  ;;  %v518_v10 = vadd.f32 %v2020_v43, %v517_v8  ;;  %v768_v11 = vadd.f32 %v2020_v43, %v767_v9 }
  0xec   :  { %v1001_v12 = vmax.f32 %v523_v6, 0.0  ;;  %v1051_v13 = vmax.f32 %v773_v7, 0.0 }
  0xed   :  { %v1000_v14 = vmax.f32 %v518_v10, 0.0  ;;  %v1050_v15 = vmax.f32 %v768_v11, 0.0  ;;  %v1429_v16 = vpop.f32.mrb[6].mxu0  ;;  %v1504_v17 = vpop.f32.mrb[6].mxu1 }
  0xee   :  { %1102 = vst.msk [vmem:[%s2525_s3 + $0x28] sm:$0xff] %vm1096_vm2, %v1001_v12  ;;  %1152 = vst.msk [vmem:[%s2525_s3 + $0x1b8] sm:$0xff] %vm1096_vm2, %v1051_v13  ;;  %v533_v18 = vadd.f32 %v1429_v16, %v2020_v43  ;;  %v783_v19 = vadd.f32 %v1504_v17, %v2020_v43  ;;  %v527_v20 = vpop.f32.mrb[7].mxu0  ;;  %v777_v21 = vpop.f32.mrb[7].mxu1 }
  0xef   :  { %1101 = vst.msk [vmem:[%s2525_s3 + $0x20] sm:$0xff] %vm1096_vm2, %v1000_v14  ;;  %1151 = vst.msk [vmem:[%s2525_s3 + $0x1b0] sm:$0xff] %vm1096_vm2, %v1050_v15  ;;  %v528_v22 = vadd.f32 %v2020_v43, %v527_v20  ;;  %v778_v23 = vadd.f32 %v2020_v43, %v777_v21 }
  0xf0   :  { %v1003_v24 = vmax.f32 %v533_v18, 0.0  ;;  %v1053_v25 = vmax.f32 %v783_v19, 0.0 }
  0xf1   :  { %v1002_v26 = vmax.f32 %v528_v22, 0.0  ;;  %v1052_v27 = vmax.f32 %v778_v23, 0.0  ;;  %v1432_v28 = vpop.f32.mrb[8].mxu0  ;;  %v1507_v29 = vpop.f32.mrb[8].mxu1 }
  0xf2   :  { %1104 = vst.msk [vmem:[%s2525_s3 + $0x38] sm:$0xff] %vm1096_vm2, %v1003_v24  ;;  %1154 = vst.msk [vmem:[%s2525_s3 + $0x1c8] sm:$0xff] %vm1096_vm2, %v1053_v25  ;;  %v543_v30 = vadd.f32 %v1432_v28, %v2020_v43  ;;  %v793_v31 = vadd.f32 %v1507_v29, %v2020_v43  ;;  %v537_v32 = vpop.f32.mrb[9].mxu0  ;;  %v787_v33 = vpop.f32.mrb[9].mxu1 }
  0xf3   :  { %1103 = vst.msk [vmem:[%s2525_s3 + $0x30] sm:$0xff] %vm1096_vm2, %v1002_v26  ;;  %1153 = vst.msk [vmem:[%s2525_s3 + $0x1c0] sm:$0xff] %vm1096_vm2, %v1052_v27  ;;  %v538_v34 = vadd.f32 %v2020_v43, %v537_v32  ;;  %v788_v35 = vadd.f32 %v2020_v43, %v787_v33 }
  0xf4   :  { %v1005_v36 = vmax.f32 %v543_v30, 0.0  ;;  %v1055_v37 = vmax.f32 %v793_v31, 0.0 }
  0xf5   :  { %v1004_v38 = vmax.f32 %v538_v34, 0.0  ;;  %v1054_v39 = vmax.f32 %v788_v35, 0.0  ;;  %v1435_v40 = vpop.f32.mrb[10].mxu0  ;;  %v1510_v41 = vpop.f32.mrb[10].mxu1 }
  0xf6   :  { %1106 = vst.msk [vmem:[%s2525_s3 + $0x48] sm:$0xff] %vm1096_vm2, %v1005_v36  ;;  %1156 = vst.msk [vmem:[%s2525_s3 + $0x1d8] sm:$0xff] %vm1096_vm2, %v1055_v37  ;;  %v553_v42 = vadd.f32 %v1435_v40, %v2020_v43  ;;  %v803_v44 = vadd.f32 %v1510_v41, %v2020_v43  ;;  %v547_v45 = vpop.f32.mrb[11].mxu0  ;;  %v797_v46 = vpop.f32.mrb[11].mxu1 }
  0xf7   :  { %1105 = vst.msk [vmem:[%s2525_s3 + $0x40] sm:$0xff] %vm1096_vm2, %v1004_v38  ;;  %1155 = vst.msk [vmem:[%s2525_s3 + $0x1d0] sm:$0xff] %vm1096_vm2, %v1054_v39  ;;  %v548_v47 = vadd.f32 %v2020_v43, %v547_v45  ;;  %v798_v48 = vadd.f32 %v2020_v43, %v797_v46 }
  0xf8   :  { %v1007_v49 = vmax.f32 %v553_v42, 0.0  ;;  %v1057_v50 = vmax.f32 %v803_v44, 0.0 }
  0xf9   :  { %v1006_v51 = vmax.f32 %v548_v47, 0.0  ;;  %v1056_v52 = vmax.f32 %v798_v48, 0.0  ;;  %v1438_v53 = vpop.f32.mrb[12].mxu0  ;;  %v1513_v54 = vpop.f32.mrb[12].mxu1 }
  0xfa   :  { %1108 = vst.msk [vmem:[%s2525_s3 + $0x58] sm:$0xff] %vm1096_vm2, %v1007_v49  ;;  %1158 = vst.msk [vmem:[%s2525_s3 + $0x1e8] sm:$0xff] %vm1096_vm2, %v1057_v50  ;;  %v563_v55 = vadd.f32 %v1438_v53, %v2020_v43  ;;  %v813_v56 = vadd.f32 %v1513_v54, %v2020_v43  ;;  %v557_v57 = vpop.f32.mrb[13].mxu0  ;;  %v807_v58 = vpop.f32.mrb[13].mxu1 }
  0xfb   :  { %1107 = vst.msk [vmem:[%s2525_s3 + $0x50] sm:$0xff] %vm1096_vm2, %v1006_v51  ;;  %1157 = vst.msk [vmem:[%s2525_s3 + $0x1e0] sm:$0xff] %vm1096_vm2, %v1056_v52  ;;  %v558_v59 = vadd.f32 %v2020_v43, %v557_v57  ;;  %v808_v60 = vadd.f32 %v2020_v43, %v807_v58 }
  0xfc   :  { %v1009_v61 = vmax.f32 %v563_v55, 0.0  ;;  %v1059_v62 = vmax.f32 %v813_v56, 0.0 }
  0xfd   :  { %v1008_v63 = vmax.f32 %v558_v59, 0.0  ;;  %v1058_v0 = vmax.f32 %v808_v60, 0.0  ;;  %v1441_v1 = vpop.f32.mrb[14].mxu0  ;;  %v1516_v2 = vpop.f32.mrb[14].mxu1 }
  0xfe   :  { %1110 = vst.msk [vmem:[%s2525_s3 + $0x68] sm:$0xff] %vm1096_vm2, %v1009_v61  ;;  %1160 = vst.msk [vmem:[%s2525_s3 + $0x1f8] sm:$0xff] %vm1096_vm2, %v1059_v62  ;;  %v573_v3 = vadd.f32 %v1441_v1, %v2020_v43  ;;  %v823_v4 = vadd.f32 %v1516_v2, %v2020_v43  ;;  %v567_v5 = vpop.f32.mrb[15].mxu0  ;;  %v817_v6 = vpop.f32.mrb[15].mxu1 }
  0xff   :  { %1109 = vst.msk [vmem:[%s2525_s3 + $0x60] sm:$0xff] %vm1096_vm2, %v1008_v63  ;;  %1159 = vst.msk [vmem:[%s2525_s3 + $0x1f0] sm:$0xff] %vm1096_vm2, %v1058_v0  ;;  %v568_v7 = vadd.f32 %v2020_v43, %v567_v5  ;;  %v818_v8 = vadd.f32 %v2020_v43, %v817_v6 }
 0x100   :  { %v1011_v9 = vmax.f32 %v573_v3, 0.0  ;;  %v1061_v10 = vmax.f32 %v823_v4, 0.0 }
 0x101   :  { %v1010_v11 = vmax.f32 %v568_v7, 0.0  ;;  %v1060_v12 = vmax.f32 %v818_v8, 0.0  ;;  %v1444_v13 = vpop.f32.mrb[16].mxu0  ;;  %v1519_v14 = vpop.f32.mrb[16].mxu1 }
 0x102   :  { %1112 = vst.msk [vmem:[%s2525_s3 + $0x78] sm:$0xff] %vm1096_vm2, %v1011_v9  ;;  %1162 = vst.msk [vmem:[%s2525_s3 + $0x208] sm:$0xff] %vm1096_vm2, %v1061_v10  ;;  %v583_v15 = vadd.f32 %v1444_v13, %v2020_v43  ;;  %v833_v16 = vadd.f32 %v1519_v14, %v2020_v43  ;;  %v577_v17 = vpop.f32.mrb[17].mxu0  ;;  %v827_v18 = vpop.f32.mrb[17].mxu1 }
 0x103   :  { %1111 = vst.msk [vmem:[%s2525_s3 + $0x70] sm:$0xff] %vm1096_vm2, %v1010_v11  ;;  %1161 = vst.msk [vmem:[%s2525_s3 + $0x200] sm:$0xff] %vm1096_vm2, %v1060_v12  ;;  %v578_v19 = vadd.f32 %v2020_v43, %v577_v17  ;;  %v828_v20 = vadd.f32 %v2020_v43, %v827_v18 }
 0x104   :  { %v1013_v21 = vmax.f32 %v583_v15, 0.0  ;;  %v1063_v22 = vmax.f32 %v833_v16, 0.0 }
 0x105   :  { %v1012_v23 = vmax.f32 %v578_v19, 0.0  ;;  %v1062_v24 = vmax.f32 %v828_v20, 0.0  ;;  %v1447_v25 = vpop.f32.mrb[18].mxu0  ;;  %v1522_v26 = vpop.f32.mrb[18].mxu1 }
 0x106   :  { %1114 = vst.msk [vmem:[%s2525_s3 + $0x88] sm:$0xff] %vm1096_vm2, %v1013_v21  ;;  %1164 = vst.msk [vmem:[%s2525_s3 + $0x218] sm:$0xff] %vm1096_vm2, %v1063_v22  ;;  %v593_v27 = vadd.f32 %v1447_v25, %v2020_v43  ;;  %v843_v28 = vadd.f32 %v1522_v26, %v2020_v43  ;;  %v587_v29 = vpop.f32.mrb[19].mxu0  ;;  %v837_v30 = vpop.f32.mrb[19].mxu1 }
 0x107   :  { %1113 = vst.msk [vmem:[%s2525_s3 + $0x80] sm:$0xff] %vm1096_vm2, %v1012_v23  ;;  %1163 = vst.msk [vmem:[%s2525_s3 + $0x210] sm:$0xff] %vm1096_vm2, %v1062_v24  ;;  %v588_v31 = vadd.f32 %v2020_v43, %v587_v29  ;;  %v838_v32 = vadd.f32 %v2020_v43, %v837_v30 }
 0x108   :  { %v1015_v33 = vmax.f32 %v593_v27, 0.0  ;;  %v1065_v34 = vmax.f32 %v843_v28, 0.0 }
 0x109   :  { %v1014_v35 = vmax.f32 %v588_v31, 0.0  ;;  %v1064_v36 = vmax.f32 %v838_v32, 0.0  ;;  %v1450_v37 = vpop.f32.mrb[20].mxu0  ;;  %v1525_v38 = vpop.f32.mrb[20].mxu1 }
 0x10a   :  { %1116 = vst.msk [vmem:[%s2525_s3 + $0x98] sm:$0xff] %vm1096_vm2, %v1015_v33  ;;  %1166 = vst.msk [vmem:[%s2525_s3 + $0x228] sm:$0xff] %vm1096_vm2, %v1065_v34  ;;  %v603_v39 = vadd.f32 %v1450_v37, %v2020_v43  ;;  %v853_v40 = vadd.f32 %v1525_v38, %v2020_v43  ;;  %v597_v41 = vpop.f32.mrb[21].mxu0  ;;  %v847_v42 = vpop.f32.mrb[21].mxu1 }
 0x10b   :  { %1115 = vst.msk [vmem:[%s2525_s3 + $0x90] sm:$0xff] %vm1096_vm2, %v1014_v35  ;;  %1165 = vst.msk [vmem:[%s2525_s3 + $0x220] sm:$0xff] %vm1096_vm2, %v1064_v36  ;;  %v598_v44 = vadd.f32 %v2020_v43, %v597_v41  ;;  %v848_v45 = vadd.f32 %v2020_v43, %v847_v42 }
 0x10c   :  { %v1017_v46 = vmax.f32 %v603_v39, 0.0  ;;  %v1067_v47 = vmax.f32 %v853_v40, 0.0 }
 0x10d   :  { %v1016_v48 = vmax.f32 %v598_v44, 0.0  ;;  %v1066_v49 = vmax.f32 %v848_v45, 0.0  ;;  %v1453_v50 = vpop.f32.mrb[22].mxu0  ;;  %v1528_v51 = vpop.f32.mrb[22].mxu1 }
 0x10e   :  { %1118 = vst.msk [vmem:[%s2525_s3 + $0xa8] sm:$0xff] %vm1096_vm2, %v1017_v46  ;;  %1168 = vst.msk [vmem:[%s2525_s3 + $0x238] sm:$0xff] %vm1096_vm2, %v1067_v47  ;;  %v613_v52 = vadd.f32 %v1453_v50, %v2020_v43  ;;  %v863_v53 = vadd.f32 %v1528_v51, %v2020_v43  ;;  %v607_v54 = vpop.f32.mrb[23].mxu0  ;;  %v857_v55 = vpop.f32.mrb[23].mxu1 }
 0x10f   :  { %1117 = vst.msk [vmem:[%s2525_s3 + $0xa0] sm:$0xff] %vm1096_vm2, %v1016_v48  ;;  %1167 = vst.msk [vmem:[%s2525_s3 + $0x230] sm:$0xff] %vm1096_vm2, %v1066_v49  ;;  %v608_v56 = vadd.f32 %v2020_v43, %v607_v54  ;;  %v858_v57 = vadd.f32 %v2020_v43, %v857_v55 }
 0x110   :  { %v1019_v58 = vmax.f32 %v613_v52, 0.0  ;;  %v1069_v59 = vmax.f32 %v863_v53, 0.0 }
 0x111   :  { %v1018_v60 = vmax.f32 %v608_v56, 0.0  ;;  %v1068_v61 = vmax.f32 %v858_v57, 0.0  ;;  %v1456_v62 = vpop.f32.mrb[24].mxu0  ;;  %v1531_v63 = vpop.f32.mrb[24].mxu1 }
 0x112   :  { %1120 = vst.msk [vmem:[%s2525_s3 + $0xb8] sm:$0xff] %vm1096_vm2, %v1019_v58  ;;  %1170 = vst.msk [vmem:[%s2525_s3 + $0x248] sm:$0xff] %vm1096_vm2, %v1069_v59  ;;  %v623_v0 = vadd.f32 %v1456_v62, %v2020_v43  ;;  %v873_v1 = vadd.f32 %v1531_v63, %v2020_v43  ;;  %v617_v2 = vpop.f32.mrb[25].mxu0  ;;  %v867_v3 = vpop.f32.mrb[25].mxu1 }
 0x113   :  { %1119 = vst.msk [vmem:[%s2525_s3 + $0xb0] sm:$0xff] %vm1096_vm2, %v1018_v60  ;;  %1169 = vst.msk [vmem:[%s2525_s3 + $0x240] sm:$0xff] %vm1096_vm2, %v1068_v61  ;;  %v618_v4 = vadd.f32 %v2020_v43, %v617_v2  ;;  %v868_v5 = vadd.f32 %v2020_v43, %v867_v3 }
 0x114   :  { %v1021_v6 = vmax.f32 %v623_v0, 0.0  ;;  %v1071_v7 = vmax.f32 %v873_v1, 0.0 }
 0x115   :  { %v1020_v8 = vmax.f32 %v618_v4, 0.0  ;;  %v1070_v9 = vmax.f32 %v868_v5, 0.0  ;;  %v1459_v10 = vpop.f32.mrb[26].mxu0  ;;  %v1534_v11 = vpop.f32.mrb[26].mxu1 }
 0x116   :  { %1122 = vst.msk [vmem:[%s2525_s3 + $0xc8] sm:$0xff] %vm1096_vm2, %v1021_v6  ;;  %1172 = vst.msk [vmem:[%s2525_s3 + $0x258] sm:$0xff] %vm1096_vm2, %v1071_v7  ;;  %v633_v12 = vadd.f32 %v1459_v10, %v2020_v43  ;;  %v883_v13 = vadd.f32 %v1534_v11, %v2020_v43  ;;  %v627_v14 = vpop.f32.mrb[27].mxu0  ;;  %v877_v15 = vpop.f32.mrb[27].mxu1 }
 0x117   :  { %1121 = vst.msk [vmem:[%s2525_s3 + $0xc0] sm:$0xff] %vm1096_vm2, %v1020_v8  ;;  %1171 = vst.msk [vmem:[%s2525_s3 + $0x250] sm:$0xff] %vm1096_vm2, %v1070_v9  ;;  %v628_v16 = vadd.f32 %v2020_v43, %v627_v14  ;;  %v878_v17 = vadd.f32 %v2020_v43, %v877_v15 }
 0x118   :  { %v1023_v18 = vmax.f32 %v633_v12, 0.0  ;;  %v1073_v19 = vmax.f32 %v883_v13, 0.0 }
 0x119   :  { %v1022_v20 = vmax.f32 %v628_v16, 0.0  ;;  %v1072_v21 = vmax.f32 %v878_v17, 0.0  ;;  %v1462_v22 = vpop.f32.mrb[28].mxu0  ;;  %v1537_v23 = vpop.f32.mrb[28].mxu1 }
 0x11a   :  { %1124 = vst.msk [vmem:[%s2525_s3 + $0xd8] sm:$0xff] %vm1096_vm2, %v1023_v18  ;;  %1174 = vst.msk [vmem:[%s2525_s3 + $0x268] sm:$0xff] %vm1096_vm2, %v1073_v19  ;;  %v643_v24 = vadd.f32 %v1462_v22, %v2020_v43  ;;  %v893_v25 = vadd.f32 %v1537_v23, %v2020_v43  ;;  %v637_v26 = vpop.f32.mrb[29].mxu0  ;;  %v887_v27 = vpop.f32.mrb[29].mxu1 }
 0x11b   :  { %1123 = vst.msk [vmem:[%s2525_s3 + $0xd0] sm:$0xff] %vm1096_vm2, %v1022_v20  ;;  %1173 = vst.msk [vmem:[%s2525_s3 + $0x260] sm:$0xff] %vm1096_vm2, %v1072_v21  ;;  %v638_v28 = vadd.f32 %v2020_v43, %v637_v26  ;;  %v888_v29 = vadd.f32 %v2020_v43, %v887_v27 }
 0x11c   :  { %v1025_v30 = vmax.f32 %v643_v24, 0.0  ;;  %v1075_v31 = vmax.f32 %v893_v25, 0.0 }
 0x11d   :  { %v1024_v32 = vmax.f32 %v638_v28, 0.0  ;;  %v1074_v33 = vmax.f32 %v888_v29, 0.0  ;;  %v1465_v34 = vpop.f32.mrb[30].mxu0  ;;  %v1540_v35 = vpop.f32.mrb[30].mxu1 }
 0x11e   :  { %1126 = vst.msk [vmem:[%s2525_s3 + $0xe8] sm:$0xff] %vm1096_vm2, %v1025_v30  ;;  %1176 = vst.msk [vmem:[%s2525_s3 + $0x278] sm:$0xff] %vm1096_vm2, %v1075_v31  ;;  %v653_v36 = vadd.f32 %v1465_v34, %v2020_v43  ;;  %v903_v37 = vadd.f32 %v1540_v35, %v2020_v43  ;;  %v647_v38 = vpop.f32.mrb[31].mxu0  ;;  %v897_v39 = vpop.f32.mrb[31].mxu1 }
 0x11f   :  { %1125 = vst.msk [vmem:[%s2525_s3 + $0xe0] sm:$0xff] %vm1096_vm2, %v1024_v32  ;;  %1175 = vst.msk [vmem:[%s2525_s3 + $0x270] sm:$0xff] %vm1096_vm2, %v1074_v33  ;;  %v648_v40 = vadd.f32 %v2020_v43, %v647_v38  ;;  %v898_v41 = vadd.f32 %v2020_v43, %v897_v39 }
 0x120   :  { %v1027_v42 = vmax.f32 %v653_v36, 0.0  ;;  %v1077_v44 = vmax.f32 %v903_v37, 0.0 }
 0x121   :  { %v1026_v45 = vmax.f32 %v648_v40, 0.0  ;;  %v1076_v46 = vmax.f32 %v898_v41, 0.0  ;;  %v1468_v47 = vpop.f32.mrb[32].mxu0  ;;  %v1543_v48 = vpop.f32.mrb[32].mxu1 }
 0x122   :  { %1128 = vst.msk [vmem:[%s2525_s3 + $0xf8] sm:$0xff] %vm1096_vm2, %v1027_v42  ;;  %1178 = vst.msk [vmem:[%s2525_s3 + $0x288] sm:$0xff] %vm1096_vm2, %v1077_v44  ;;  %v663_v49 = vadd.f32 %v1468_v47, %v2020_v43  ;;  %v913_v50 = vadd.f32 %v1543_v48, %v2020_v43  ;;  %v657_v51 = vpop.f32.mrb[33].mxu0  ;;  %v907_v52 = vpop.f32.mrb[33].mxu1 }
 0x123   :  { %1127 = vst.msk [vmem:[%s2525_s3 + $0xf0] sm:$0xff] %vm1096_vm2, %v1026_v45  ;;  %1177 = vst.msk [vmem:[%s2525_s3 + $0x280] sm:$0xff] %vm1096_vm2, %v1076_v46  ;;  %v658_v53 = vadd.f32 %v2020_v43, %v657_v51  ;;  %v908_v54 = vadd.f32 %v2020_v43, %v907_v52 }
 0x124   :  { %v1029_v55 = vmax.f32 %v663_v49, 0.0  ;;  %v1079_v56 = vmax.f32 %v913_v50, 0.0 }
 0x125   :  { %v1028_v57 = vmax.f32 %v658_v53, 0.0  ;;  %v1078_v58 = vmax.f32 %v908_v54, 0.0  ;;  %v1471_v59 = vpop.f32.mrb[34].mxu0  ;;  %v1546_v60 = vpop.f32.mrb[34].mxu1 }
 0x126   :  { %1130 = vst.msk [vmem:[%s2525_s3 + $0x108] sm:$0xff] %vm1096_vm2, %v1029_v55  ;;  %1180 = vst.msk [vmem:[%s2525_s3 + $0x298] sm:$0xff] %vm1096_vm2, %v1079_v56  ;;  %v673_v61 = vadd.f32 %v1471_v59, %v2020_v43  ;;  %v923_v62 = vadd.f32 %v1546_v60, %v2020_v43  ;;  %v667_v63 = vpop.f32.mrb[35].mxu0  ;;  %v917_v0 = vpop.f32.mrb[35].mxu1 }
 0x127   :  { %1129 = vst.msk [vmem:[%s2525_s3 + $0x100] sm:$0xff] %vm1096_vm2, %v1028_v57  ;;  %1179 = vst.msk [vmem:[%s2525_s3 + $0x290] sm:$0xff] %vm1096_vm2, %v1078_v58  ;;  %v668_v1 = vadd.f32 %v2020_v43, %v667_v63  ;;  %v918_v2 = vadd.f32 %v2020_v43, %v917_v0 }
 0x128   :  { %v1031_v3 = vmax.f32 %v673_v61, 0.0  ;;  %v1081_v4 = vmax.f32 %v923_v62, 0.0 }
 0x129   :  { %v1030_v5 = vmax.f32 %v668_v1, 0.0  ;;  %v1080_v6 = vmax.f32 %v918_v2, 0.0  ;;  %v1474_v7 = vpop.f32.mrb[36].mxu0  ;;  %v1549_v8 = vpop.f32.mrb[36].mxu1 }
 0x12a   :  { %1132 = vst.msk [vmem:[%s2525_s3 + $0x118] sm:$0xff] %vm1096_vm2, %v1031_v3  ;;  %1182 = vst.msk [vmem:[%s2525_s3 + $0x2a8] sm:$0xff] %vm1096_vm2, %v1081_v4  ;;  %v683_v9 = vadd.f32 %v1474_v7, %v2020_v43  ;;  %v933_v10 = vadd.f32 %v1549_v8, %v2020_v43  ;;  %v677_v11 = vpop.f32.mrb[37].mxu0  ;;  %v927_v12 = vpop.f32.mrb[37].mxu1 }
 0x12b   :  { %1131 = vst.msk [vmem:[%s2525_s3 + $0x110] sm:$0xff] %vm1096_vm2, %v1030_v5  ;;  %1181 = vst.msk [vmem:[%s2525_s3 + $0x2a0] sm:$0xff] %vm1096_vm2, %v1080_v6  ;;  %v678_v13 = vadd.f32 %v2020_v43, %v677_v11  ;;  %v928_v14 = vadd.f32 %v2020_v43, %v927_v12 }
 0x12c   :  { %v1033_v15 = vmax.f32 %v683_v9, 0.0  ;;  %v1083_v16 = vmax.f32 %v933_v10, 0.0 }
 0x12d   :  { %v1032_v17 = vmax.f32 %v678_v13, 0.0  ;;  %v1082_v18 = vmax.f32 %v928_v14, 0.0  ;;  %v1477_v19 = vpop.f32.mrb[38].mxu0  ;;  %v1552_v20 = vpop.f32.mrb[38].mxu1 }
 0x12e   :  { %1134 = vst.msk [vmem:[%s2525_s3 + $0x128] sm:$0xff] %vm1096_vm2, %v1033_v15  ;;  %1184 = vst.msk [vmem:[%s2525_s3 + $0x2b8] sm:$0xff] %vm1096_vm2, %v1083_v16  ;;  %v693_v21 = vadd.f32 %v1477_v19, %v2020_v43  ;;  %v943_v22 = vadd.f32 %v1552_v20, %v2020_v43  ;;  %v687_v23 = vpop.f32.mrb[39].mxu0  ;;  %v937_v24 = vpop.f32.mrb[39].mxu1 }
 0x12f   :  { %1133 = vst.msk [vmem:[%s2525_s3 + $0x120] sm:$0xff] %vm1096_vm2, %v1032_v17  ;;  %1183 = vst.msk [vmem:[%s2525_s3 + $0x2b0] sm:$0xff] %vm1096_vm2, %v1082_v18  ;;  %v688_v25 = vadd.f32 %v2020_v43, %v687_v23  ;;  %v938_v26 = vadd.f32 %v2020_v43, %v937_v24 }
 0x130   :  { %v1035_v27 = vmax.f32 %v693_v21, 0.0  ;;  %v1085_v28 = vmax.f32 %v943_v22, 0.0 }
 0x131   :  { %v1034_v29 = vmax.f32 %v688_v25, 0.0  ;;  %v1084_v30 = vmax.f32 %v938_v26, 0.0  ;;  %v1480_v31 = vpop.f32.mrb[40].mxu0  ;;  %v1555_v32 = vpop.f32.mrb[40].mxu1 }
 0x132   :  { %1136 = vst.msk [vmem:[%s2525_s3 + $0x138] sm:$0xff] %vm1096_vm2, %v1035_v27  ;;  %1186 = vst.msk [vmem:[%s2525_s3 + $0x2c8] sm:$0xff] %vm1096_vm2, %v1085_v28  ;;  %v703_v33 = vadd.f32 %v1480_v31, %v2020_v43  ;;  %v953_v34 = vadd.f32 %v1555_v32, %v2020_v43  ;;  %v697_v35 = vpop.f32.mrb[41].mxu0  ;;  %v947_v36 = vpop.f32.mrb[41].mxu1 }
 0x133   :  { %1135 = vst.msk [vmem:[%s2525_s3 + $0x130] sm:$0xff] %vm1096_vm2, %v1034_v29  ;;  %1185 = vst.msk [vmem:[%s2525_s3 + $0x2c0] sm:$0xff] %vm1096_vm2, %v1084_v30  ;;  %v698_v37 = vadd.f32 %v2020_v43, %v697_v35  ;;  %v948_v38 = vadd.f32 %v2020_v43, %v947_v36 }
 0x134   :  { %v1037_v39 = vmax.f32 %v703_v33, 0.0  ;;  %v1087_v40 = vmax.f32 %v953_v34, 0.0 }
 0x135   :  { %v1036_v41 = vmax.f32 %v698_v37, 0.0  ;;  %v1086_v42 = vmax.f32 %v948_v38, 0.0  ;;  %v1483_v44 = vpop.f32.mrb[42].mxu0  ;;  %v1558_v45 = vpop.f32.mrb[42].mxu1 }
 0x136   :  { %1138 = vst.msk [vmem:[%s2525_s3 + $0x148] sm:$0xff] %vm1096_vm2, %v1037_v39  ;;  %1188 = vst.msk [vmem:[%s2525_s3 + $0x2d8] sm:$0xff] %vm1096_vm2, %v1087_v40  ;;  %v713_v46 = vadd.f32 %v1483_v44, %v2020_v43  ;;  %v963_v47 = vadd.f32 %v1558_v45, %v2020_v43  ;;  %v707_v48 = vpop.f32.mrb[43].mxu0  ;;  %v957_v49 = vpop.f32.mrb[43].mxu1 }
 0x137   :  { %1137 = vst.msk [vmem:[%s2525_s3 + $0x140] sm:$0xff] %vm1096_vm2, %v1036_v41  ;;  %1187 = vst.msk [vmem:[%s2525_s3 + $0x2d0] sm:$0xff] %vm1096_vm2, %v1086_v42  ;;  %v708_v50 = vadd.f32 %v2020_v43, %v707_v48  ;;  %v958_v51 = vadd.f32 %v2020_v43, %v957_v49 }
 0x138   :  { %v1039_v52 = vmax.f32 %v713_v46, 0.0  ;;  %v1089_v53 = vmax.f32 %v963_v47, 0.0 }
 0x139   :  { %v1038_v54 = vmax.f32 %v708_v50, 0.0  ;;  %v1088_v55 = vmax.f32 %v958_v51, 0.0  ;;  %v1486_v56 = vpop.f32.mrb[44].mxu0  ;;  %v1561_v57 = vpop.f32.mrb[44].mxu1 }
 0x13a   :  { %1140 = vst.msk [vmem:[%s2525_s3 + $0x158] sm:$0xff] %vm1096_vm2, %v1039_v52  ;;  %1190 = vst.msk [vmem:[%s2525_s3 + $0x2e8] sm:$0xff] %vm1096_vm2, %v1089_v53  ;;  %v723_v58 = vadd.f32 %v1486_v56, %v2020_v43  ;;  %v973_v59 = vadd.f32 %v1561_v57, %v2020_v43  ;;  %v717_v60 = vpop.f32.mrb[45].mxu0  ;;  %v967_v61 = vpop.f32.mrb[45].mxu1 }
 0x13b   :  { %1139 = vst.msk [vmem:[%s2525_s3 + $0x150] sm:$0xff] %vm1096_vm2, %v1038_v54  ;;  %1189 = vst.msk [vmem:[%s2525_s3 + $0x2e0] sm:$0xff] %vm1096_vm2, %v1088_v55  ;;  %v718_v62 = vadd.f32 %v2020_v43, %v717_v60  ;;  %v968_v63 = vadd.f32 %v2020_v43, %v967_v61 }
 0x13c   :  { %v1041_v0 = vmax.f32 %v723_v58, 0.0  ;;  %v1091_v1 = vmax.f32 %v973_v59, 0.0 }
 0x13d   :  { %v1040_v2 = vmax.f32 %v718_v62, 0.0  ;;  %v1090_v3 = vmax.f32 %v968_v63, 0.0  ;;  %v1489_v4 = vpop.f32.mrb[46].mxu0  ;;  %v1564_v5 = vpop.f32.mrb[46].mxu1 }
 0x13e   :  { %1142 = vst.msk [vmem:[%s2525_s3 + $0x168] sm:$0xff] %vm1096_vm2, %v1041_v0  ;;  %1192 = vst.msk [vmem:[%s2525_s3 + $0x2f8] sm:$0xff] %vm1096_vm2, %v1091_v1  ;;  %v733_v6 = vadd.f32 %v1489_v4, %v2020_v43  ;;  %v983_v7 = vadd.f32 %v1564_v5, %v2020_v43  ;;  %v727_v8 = vpop.f32.mrb[47].mxu0  ;;  %v977_v9 = vpop.f32.mrb[47].mxu1 }
 0x13f   :  { %1141 = vst.msk [vmem:[%s2525_s3 + $0x160] sm:$0xff] %vm1096_vm2, %v1040_v2  ;;  %1191 = vst.msk [vmem:[%s2525_s3 + $0x2f0] sm:$0xff] %vm1096_vm2, %v1090_v3  ;;  %v728_v10 = vadd.f32 %v2020_v43, %v727_v8  ;;  %v978_v11 = vadd.f32 %v2020_v43, %v977_v9 }
 0x140   :  { %v1043_v12 = vmax.f32 %v733_v6, 0.0  ;;  %v1093_v13 = vmax.f32 %v983_v7, 0.0 }
 0x141   :  { %v1042_v14 = vmax.f32 %v728_v10, 0.0  ;;  %v1092_v15 = vmax.f32 %v978_v11, 0.0  ;;  %v1492_v16 = vpop.f32.mrb[48].mxu0  ;;  %v1567_v17 = vpop.f32.mrb[48].mxu1 }
 0x142   :  { %1144 = vst.msk [vmem:[%s2525_s3 + $0x178] sm:$0xff] %vm1096_vm2, %v1043_v12  ;;  %1194 = vst.msk [vmem:[%s2525_s3 + $0x308] sm:$0xff] %vm1096_vm2, %v1093_v13  ;;  %v743_v18 = vadd.f32 %v1492_v16, %v2020_v43  ;;  %v993_v19 = vadd.f32 %v1567_v17, %v2020_v43  ;;  %v737_v20 = vpop.f32.mrb[49].mxu0  ;;  %v987_v21 = vpop.f32.mrb[49].mxu1 }
 0x143   :  { %1143 = vst.msk [vmem:[%s2525_s3 + $0x170] sm:$0xff] %vm1096_vm2, %v1042_v14  ;;  %1193 = vst.msk [vmem:[%s2525_s3 + $0x300] sm:$0xff] %vm1096_vm2, %v1092_v15  ;;  %v738_v22 = vadd.f32 %v2020_v43, %v737_v20  ;;  %v988_v23 = vadd.f32 %v2020_v43, %v987_v21 }
 0x144   :  { %v1045_v24 = vmax.f32 %v743_v18, 0.0  ;;  %v1095_v25 = vmax.f32 %v993_v19, 0.0 }
 0x145   :  { %v1044_v26 = vmax.f32 %v738_v22, 0.0  ;;  %v1094_v27 = vmax.f32 %v988_v23, 0.0 }
 0x146   :  { %1146 = vst.msk [vmem:[%s2525_s3 + $0x188] sm:$0xff] %vm1096_vm2, %v1045_v24  ;;  %1196 = vst.msk [vmem:[%s2525_s3 + $0x318] sm:$0xff] %vm1096_vm2, %v1095_v25 }
 0x147   :  { %1145 = vst.msk [vmem:[%s2525_s3 + $0x180] sm:$0xff] %vm1096_vm2, %v1044_v26  ;;  %1195 = vst.msk [vmem:[%s2525_s3 + $0x310] sm:$0xff] %vm1096_vm2, %v1094_v27 }

// kernel: _a3c_forward.7
= control target key start
LH: loop header
LB: loop body
LE: loop exit
PB: predicated region body
PF: predicated region fallthrough
CT: control target
= control target key end

     0   :  { %v887_v0 = vmov 0.0|0.0   ;;  %vm888_vm0 = vmmov 0   ;;  %v889_v6 = vmov 0.0   ;;  %vm132_vm1 = vcmask 261120   ;;  %s1523_s1 = inlined_call_operand.vmem [shape: f32[288,32], index: 1, kind: input, shape index: {}]   ;;  %s1524_s0 = inlined_call_operand.vmem [shape: f32[200,288], index: 0, kind: input, shape index: {}]   ;;  %s1525_s2 = inlined_call_operand.vmem [shape: f32[1,32], index: 2, kind: input, shape index: {}]   ;;  %s1526_s3 = inlined_call_operand.vmem [shape: f32[200,32], index: 3, kind: output, shape index: {}]  }
   0x1   :  { %780 = vmatprep.subr.bf16.mxu1 %v887_v0  ;;  %v89_v1 = vld [vmem:[%s1523_s1] sm:$0xff]  ;;  %v90_v2 = vld [vmem:[%s1523_s1 + $0x8] sm:$0xff]  ;;  %v91_v3 = vld [vmem:[%s1523_s1 + $0x10] sm:$0xff]  ;;  %828 = vmatprep.subr.bf16.mxu0 %v887_v0 }
   0x2   :  { %v781_v4 = vpack.c.bf16 %v90_v2, %v89_v1  ;;  %v92_v5 = vld [vmem:[%s1523_s1 + $0x18] sm:$0xff]  ;;  %705 = vmatprep.mubr.msk.f32.mxu0 %vm888_vm0, %v889_v6  ;;  %v93_v8 = vld [vmem:[%s1523_s1 + $0x20] sm:$0xff]  ;;  %v94_v9 = vld [vmem:[%s1523_s1 + $0x28] sm:$0xff] }
   0x3   :  { %v784_v7 = vpack.c.bf16 %v92_v5, %v91_v3  ;;  %v787_v10 = vpack.c.bf16 %v94_v9, %v93_v8  ;;  %v95_v11 = vld [vmem:[%s1523_s1 + $0x30] sm:$0xff]  ;;  %v96_v12 = vld [vmem:[%s1523_s1 + $0x38] sm:$0xff]  ;;  %v121_v13 = vld [vmem:[%s1523_s1 + $0x100] sm:$0xff] }
   0x4   :  { %782 = vmatpush1.bf16.msra.mxu1 %v781_v4  ;;  %v122_v14 = vld [vmem:[%s1523_s1 + $0x108] sm:$0xff]  ;;  %v790_v15 = vpack.c.bf16 %v96_v12, %v95_v11  ;;  %v123_v17 = vld [vmem:[%s1523_s1 + $0x110] sm:$0xff]  ;;  %v124_v18 = vld [vmem:[%s1523_s1 + $0x118] sm:$0xff] }
   0x5   :  { %783 = vmatprep.subr.bf16.mxu1 %v887_v0  ;;  %v829_v16 = vpack.c.bf16 %v122_v14, %v121_v13  ;;  %v97_v19 = vld [vmem:[%s1523_s1 + $0x40] sm:$0xff]  ;;  %v98_v20 = vld [vmem:[%s1523_s1 + $0x48] sm:$0xff]  ;;  %v832_v22 = vpack.c.bf16 %v124_v18, %v123_v17  ;;  %v99_v24 = vld [vmem:[%s1523_s1 + $0x50] sm:$0xff] }
   0x6   :  { %v15_v21 = vld [vmem:[%s1524_s0 + $0x8] sm:$0xff]  ;;  %v793_v23 = vpack.c.bf16 %v98_v20, %v97_v19  ;;  %v100_v25 = vld [vmem:[%s1523_s1 + $0x58] sm:$0xff]  ;;  %v16_v26 = vld [vmem:[%s1524_s0 + $0x10] sm:$0xff] }
   0x7   :  { %830 = vmatpush3.bf16.msra.mxu0 %v829_v16  ;;  %272 = vmatprep.mubr.f32.mxu1 %v15_v21  ;;  %v796_v27 = vpack.c.bf16 %v100_v25, %v99_v24  ;;  %v101_v28 = vld [vmem:[%s1523_s1 + $0x60] sm:$0xff]  ;;  %v102_v29 = vld [vmem:[%s1523_s1 + $0x68] sm:$0xff]  ;;  %v103_v32 = vld [vmem:[%s1523_s1 + $0x70] sm:$0xff] }
   0x8   :  { %785 = vmatpush1.bf16.msra.mxu1 %v784_v7  ;;  %831 = vmatprep.subr.bf16.mxu0 %v887_v0  ;;  %v19_v30 = vld [vmem:[%s1524_s0 + $0x28] sm:$0xff]  ;;  %v799_v31 = vpack.c.bf16 %v102_v29, %v101_v28  ;;  %v104_v33 = vld [vmem:[%s1523_s1 + $0x78] sm:$0xff]  ;;  %v22_v34 = vld [vmem:[%s1524_s0 + $0x40] sm:$0xff] }
   0x9   :  { %786 = vmatprep.subr.bf16.mxu1 %v887_v0  ;;  %v802_v35 = vpack.c.bf16 %v104_v33, %v103_v32  ;;  %v105_v36 = vld [vmem:[%s1523_s1 + $0x80] sm:$0xff]  ;;  %v106_v37 = vld [vmem:[%s1523_s1 + $0x88] sm:$0xff]  ;;  %v25_v38 = vld [vmem:[%s1524_s0 + $0x58] sm:$0xff] }
   0xa   :  { %v805_v39 = vpack.c.bf16 %v106_v37, %v105_v36  ;;  %v107_v40 = vld [vmem:[%s1523_s1 + $0x90] sm:$0xff]  ;;  %v108_v41 = vld [vmem:[%s1523_s1 + $0x98] sm:$0xff]  ;;  %v109_v44 = vld [vmem:[%s1523_s1 + $0xa0] sm:$0xff] }
   0xb   :  { %833 = vmatpush3.bf16.msra.mxu0 %v832_v22  ;;  %v28_v42 = vld [vmem:[%s1524_s0 + $0x70] sm:$0xff]  ;;  %v808_v43 = vpack.c.bf16 %v108_v41, %v107_v40  ;;  %v110_v45 = vld [vmem:[%s1523_s1 + $0xa8] sm:$0xff]  ;;  %v112_v49 = vld [vmem:[%s1523_s1 + $0xb8] sm:$0xff] }
   0xc   :  { %788 = vmatpush1.bf16.msra.mxu1 %v787_v10  ;;  %v31_v46 = vld [vmem:[%s1524_s0 + $0x88] sm:$0xff]  ;;  %v811_v47 = vpack.c.bf16 %v110_v45, %v109_v44  ;;  %v111_v48 = vld [vmem:[%s1523_s1 + $0xb0] sm:$0xff]  ;;  %v34_v50 = vld [vmem:[%s1524_s0 + $0xa0] sm:$0xff] }
   0xd   :  { %789 = vmatprep.subr.bf16.mxu1 %v887_v0  ;;  %v814_v51 = vpack.c.bf16 %v112_v49, %v111_v48  ;;  %v113_v52 = vld [vmem:[%s1523_s1 + $0xc0] sm:$0xff]  ;;  %v114_v53 = vld [vmem:[%s1523_s1 + $0xc8] sm:$0xff]  ;;  %v37_v54 = vld [vmem:[%s1524_s0 + $0xb8] sm:$0xff] }
   0xe   :  { %706 = vmatmul.mubr.msk.f32.vlgmr.msra.gmra.mrb[0].mxu0 %vm132_vm1, %v16_v26  ;;  %v817_v55 = vpack.c.bf16 %v114_v53, %v113_v52  ;;  %v115_v56 = vld [vmem:[%s1523_s1 + $0xd0] sm:$0xff]  ;;  %v116_v57 = vld [vmem:[%s1523_s1 + $0xd8] sm:$0xff]  ;;  %v117_v60 = vld [vmem:[%s1523_s1 + $0xe0] sm:$0xff] }
   0xf   :  { %708 = vmatprep.mubr.msk.f32.mxu0 %vm888_vm0, %v889_v6  ;;  %v40_v58 = vld [vmem:[%s1524_s0 + $0xd0] sm:$0xff]  ;;  %v820_v59 = vpack.c.bf16 %v116_v57, %v115_v56  ;;  %v118_v61 = vld [vmem:[%s1523_s1 + $0xe8] sm:$0xff]  ;;  %v120_v2 = vld [vmem:[%s1523_s1 + $0xf8] sm:$0xff] }
  0x10   :  { %791 = vmatpush1.bf16.msra.mxu1 %v790_v15  ;;  %v43_v62 = vld [vmem:[%s1524_s0 + $0xe8] sm:$0xff]  ;;  %v823_v63 = vpack.c.bf16 %v118_v61, %v117_v60  ;;  %v119_v1 = vld [vmem:[%s1523_s1 + $0xf0] sm:$0xff]  ;;  %v46_v3 = vld [vmem:[%s1524_s0 + $0x100] sm:$0xff] }
  0x11   :  { %792 = vmatprep.subr.bf16.mxu1 %v887_v0  ;;  %v826_v4 = vpack.c.bf16 %v120_v2, %v119_v1  ;;  %v49_v5 = vld [vmem:[%s1524_s0 + $0x118] sm:$0xff]  ;;  %v14_v7 = vld [vmem:[%s1524_s0] sm:$0xff]  ;;  %v55_v11 = vld [vmem:[%s1524_s0 + $0x148] sm:$0xff] }
  0x12   :  { %709 = vmatmul.mubr.msk.f32.gmra.mrb[2].mxu0 %vm132_vm1, %v19_v30  ;;  %v18_v8 = vld [vmem:[%s1524_s0 + $0x20] sm:$0xff]  ;;  %v17_v9 = vld [vmem:[%s1524_s0 + $0x18] sm:$0xff]  ;;  %v20_v12 = vld [vmem:[%s1524_s0 + $0x30] sm:$0xff] }
  0x13   :  { %711 = vmatprep.mubr.msk.f32.mxu0 %vm888_vm0, %v889_v6  ;;  %v21_v10 = vld [vmem:[%s1524_s0 + $0x38] sm:$0xff]  ;;  %v24_v13 = vld [vmem:[%s1524_s0 + $0x50] sm:$0xff]  ;;  %v58_v14 = vld [vmem:[%s1524_s0 + $0x160] sm:$0xff] }
  0x14   :  { %794 = vmatpush1.bf16.msra.mxu1 %v793_v23  ;;  %v23_v15 = vld [vmem:[%s1524_s0 + $0x48] sm:$0xff]  ;;  %v61_v17 = vld [vmem:[%s1524_s0 + $0x178] sm:$0xff]  ;;  %v26_v18 = vld [vmem:[%s1524_s0 + $0x60] sm:$0xff] }
  0x15   :  { %795 = vmatprep.subr.bf16.mxu1 %v887_v0  ;;  %v27_v16 = vld [vmem:[%s1524_s0 + $0x68] sm:$0xff]  ;;  %v30_v19 = vld [vmem:[%s1524_s0 + $0x80] sm:$0xff]  ;;  %v64_v20 = vld [vmem:[%s1524_s0 + $0x190] sm:$0xff] }
  0x16   :  { %712 = vmatmul.mubr.msk.f32.gmra.mrb[4].mxu0 %vm132_vm1, %v22_v34  ;;  %v29_v21 = vld [vmem:[%s1524_s0 + $0x78] sm:$0xff]  ;;  %v67_v23 = vld [vmem:[%s1524_s0 + $0x1a8] sm:$0xff]  ;;  %v32_v24 = vld [vmem:[%s1524_s0 + $0x90] sm:$0xff] }
  0x17   :  { %714 = vmatprep.mubr.msk.f32.mxu0 %vm888_vm0, %v889_v6  ;;  %v33_v22 = vld [vmem:[%s1524_s0 + $0x98] sm:$0xff]  ;;  %v36_v25 = vld [vmem:[%s1524_s0 + $0xb0] sm:$0xff]  ;;  %v70_v26 = vld [vmem:[%s1524_s0 + $0x1c0] sm:$0xff] }
  0x18   :  { %797 = vmatpush1.bf16.msra.mxu1 %v796_v27  ;;  %v35_v27 = vld [vmem:[%s1524_s0 + $0xa8] sm:$0xff]  ;;  %v73_v29 = vld [vmem:[%s1524_s0 + $0x1d8] sm:$0xff]  ;;  %v38_v30 = vld [vmem:[%s1524_s0 + $0xc0] sm:$0xff] }
  0x19   :  { %798 = vmatprep.subr.bf16.mxu1 %v887_v0  ;;  %v39_v28 = vld [vmem:[%s1524_s0 + $0xc8] sm:$0xff]  ;;  %v76_v32 = vld [vmem:[%s1524_s0 + $0x1f0] sm:$0xff]  ;;  %v41_v33 = vld [vmem:[%s1524_s0 + $0xd8] sm:$0xff] }
  0x1a   :  { %715 = vmatmul.mubr.msk.f32.gmra.mrb[6].mxu0 %vm132_vm1, %v25_v38  ;;  %v45_v34 = vld [vmem:[%s1524_s0 + $0xf8] sm:$0xff]  ;;  %v44_v36 = vld [vmem:[%s1524_s0 + $0xf0] sm:$0xff]  ;;  %v82_v38 = vld [vmem:[%s1524_s0 + $0x220] sm:$0xff] }
  0x1b   :  { %717 = vmatprep.mubr.msk.f32.mxu0 %vm888_vm0, %v889_v6  ;;  %v48_v37 = vld [vmem:[%s1524_s0 + $0x110] sm:$0xff]  ;;  %v51_v40 = vld [vmem:[%s1524_s0 + $0x128] sm:$0xff]  ;;  %v85_v41 = vld [vmem:[%s1524_s0 + $0x238] sm:$0xff] }
  0x1c   :  { %800 = vmatpush1.bf16.msra.mxu1 %v799_v31  ;;  %v42_v31 = vld [vmem:[%s1524_s0 + $0xe0] sm:$0xff]  ;;  %v88_v44 = vld [vmem:[%s1524_s0 + $0x250] sm:$0xff]  ;;  %v53_v45 = vld [vmem:[%s1524_s0 + $0x138] sm:$0xff] }
  0x1d   :  { %801 = vmatprep.subr.bf16.mxu1 %v887_v0  ;;  %v59_v48 = vld [vmem:[%s1524_s0 + $0x168] sm:$0xff]  ;;  %v65_v52 = vld [vmem:[%s1524_s0 + $0x198] sm:$0xff] }
  0x1e   :  { %718 = vmatmul.mubr.msk.f32.gmra.mrb[8].mxu0 %vm132_vm1, %v28_v42  ;;  %v50_v42 = vld [vmem:[%s1524_s0 + $0x120] sm:$0xff]  ;;  %v63_v49 = vld [vmem:[%s1524_s0 + $0x188] sm:$0xff]  ;;  %v69_v53 = vld [vmem:[%s1524_s0 + $0x1b8] sm:$0xff] }
  0x1f   :  { %720 = vmatprep.mubr.msk.f32.mxu0 %vm888_vm0, %v889_v6  ;;  %v71_v56 = vld [vmem:[%s1524_s0 + $0x1c8] sm:$0xff]  ;;  %v77_v60 = vld [vmem:[%s1524_s0 + $0x1f8] sm:$0xff] }
  0x20   :  { %803 = vmatpush1.bf16.msra.mxu1 %v802_v35  ;;  %v79_v35 = vld [vmem:[%s1524_s0 + $0x208] sm:$0xff]  ;;  %v81_v61 = vld [vmem:[%s1524_s0 + $0x218] sm:$0xff] }
  0x21   :  { %804 = vmatprep.subr.bf16.mxu1 %v887_v0  ;;  %v75_v57 = vld [vmem:[%s1524_s0 + $0x1e8] sm:$0xff] }
  0x22   :  { %721 = vmatmul.mubr.msk.f32.gmra.mrb[10].mxu0 %vm132_vm1, %v31_v46  ;;  %v57_v46 = vld [vmem:[%s1524_s0 + $0x158] sm:$0xff]  ;;  %v83_v1 = vld [vmem:[%s1524_s0 + $0x228] sm:$0xff] }
  0x23   :  { %723 = vmatprep.mubr.msk.f32.mxu0 %vm888_vm0, %v889_v6  ;;  %v87_v2 = vld [vmem:[%s1524_s0 + $0x248] sm:$0xff] }
  0x24   :  { %806 = vmatpush1.bf16.msra.mxu1 %v805_v39  ;;  %v47_v39 = vld [vmem:[%s1524_s0 + $0x108] sm:$0xff] }
  0x25   :  { %807 = vmatprep.subr.bf16.mxu1 %v887_v0 }
  0x26   :  { %724 = vmatmul.mubr.msk.f32.gmra.mrb[12].mxu0 %vm132_vm1, %v34_v50  ;;  %v62_v50 = vld [vmem:[%s1524_s0 + $0x180] sm:$0xff] }
  0x27   :  { %726 = vmatprep.mubr.msk.f32.mxu0 %vm888_vm0, %v889_v6 }
  0x28   :  { %809 = vmatpush1.bf16.msra.mxu1 %v808_v43  ;;  %v54_v43 = vld [vmem:[%s1524_s0 + $0x140] sm:$0xff] }
  0x29   :  { %810 = vmatprep.subr.bf16.mxu1 %v887_v0 }
  0x2a   :  { %727 = vmatmul.mubr.msk.f32.gmra.mrb[14].mxu0 %vm132_vm1, %v37_v54  ;;  %v68_v54 = vld [vmem:[%s1524_s0 + $0x1b0] sm:$0xff] }
  0x2b   :  { %729 = vmatprep.mubr.msk.f32.mxu0 %vm888_vm0, %v889_v6 }
  0x2c   :  { %812 = vmatpush1.bf16.msra.mxu1 %v811_v47  ;;  %v60_v47 = vld [vmem:[%s1524_s0 + $0x170] sm:$0xff] }
  0x2d   :  { %813 = vmatprep.subr.bf16.mxu1 %v887_v0 }
  0x2e   :  { %730 = vmatmul.mubr.msk.f32.gmra.mrb[16].mxu0 %vm132_vm1, %v40_v58  ;;  %v74_v58 = vld [vmem:[%s1524_s0 + $0x1e0] sm:$0xff] }
  0x2f   :  { %732 = vmatprep.mubr.msk.f32.mxu0 %vm888_vm0, %v889_v6 }
  0x30   :  { %815 = vmatpush1.bf16.msra.mxu1 %v814_v51  ;;  %v66_v51 = vld [vmem:[%s1524_s0 + $0x1a0] sm:$0xff] }
  0x31   :  { %816 = vmatprep.subr.bf16.mxu1 %v887_v0 }
  0x32   :  { %733 = vmatmul.mubr.msk.f32.gmra.mrb[18].mxu0 %vm132_vm1, %v43_v62  ;;  %v80_v62 = vld [vmem:[%s1524_s0 + $0x210] sm:$0xff] }
  0x33   :  { %735 = vmatprep.mubr.msk.f32.mxu0 %vm888_vm0, %v889_v6 }
  0x34   :  { %818 = vmatpush1.bf16.msra.mxu1 %v817_v55  ;;  %v72_v55 = vld [vmem:[%s1524_s0 + $0x1d0] sm:$0xff] }
  0x35   :  { %819 = vmatprep.subr.bf16.mxu1 %v887_v0 }
  0x36   :  { %736 = vmatmul.mubr.msk.f32.gmra.mrb[20].mxu0 %vm132_vm1, %v46_v3  ;;  %v86_v3 = vld [vmem:[%s1524_s0 + $0x240] sm:$0xff] }
  0x37   :  { %738 = vmatprep.mubr.msk.f32.mxu0 %vm888_vm0, %v889_v6 }
  0x38   :  { %821 = vmatpush1.bf16.msra.mxu1 %v820_v59  ;;  %v78_v59 = vld [vmem:[%s1524_s0 + $0x200] sm:$0xff] }
  0x39   :  { %822 = vmatprep.subr.bf16.mxu1 %v887_v0 }
  0x3a   :  { %739 = vmatmul.mubr.msk.f32.gmra.mrb[22].mxu0 %vm132_vm1, %v49_v5 }
  0x3b   :  { %741 = vmatprep.mubr.msk.f32.mxu0 %vm888_vm0, %v889_v6 }
  0x3c   :  { %824 = vmatpush1.bf16.msra.mxu1 %v823_v63  ;;  %v84_v63 = vld [vmem:[%s1524_s0 + $0x230] sm:$0xff] }
  0x3d   :  { %825 = vmatprep.subr.bf16.mxu1 %v887_v0  ;;  %v52_v0 = vld [vmem:[%s1524_s0 + $0x130] sm:$0xff] }
  0x3e   :  { %742 = vmatmul.mubr.msk.f32.gmra.mrb[24].mxu0 %vm132_vm1, %v52_v0 }
  0x3f   :  { %744 = vmatprep.mubr.msk.f32.mxu0 %vm888_vm0, %v889_v6 }
  0x40   :  { %827 = vmatpush1.bf16.msra.mxu1 %v826_v4 }
  0x42   :  { %745 = vmatmul.mubr.msk.f32.gmra.mrb[26].mxu0 %vm132_vm1, %v55_v11 }
  0x43   :  { %273 = vmatmul.mubr.f32.vlgmr.msra.gmra.mrb[0].mxu1 %v14_v7  ;;  %747 = vmatprep.mubr.msk.f32.mxu0 %vm888_vm0, %v889_v6 }
  0x44   :  { %277 = vmatprep.mubr.f32.mxu1 %v18_v8 }
  0x46   :  { %748 = vmatmul.mubr.msk.f32.gmra.mrb[28].mxu0 %vm132_vm1, %v58_v14 }
  0x47   :  { %278 = vmatmul.mubr.f32.gmra.mrb[2].mxu1 %v17_v9  ;;  %750 = vmatprep.mubr.msk.f32.mxu0 %vm888_vm0, %v889_v6 }
  0x48   :  { %282 = vmatprep.mubr.f32.mxu1 %v21_v10 }
  0x4a   :  { %751 = vmatmul.mubr.msk.f32.gmra.mrb[30].mxu0 %vm132_vm1, %v61_v17 }
  0x4b   :  { %283 = vmatmul.mubr.f32.gmra.mrb[4].mxu1 %v20_v12  ;;  %753 = vmatprep.mubr.msk.f32.mxu0 %vm888_vm0, %v889_v6 }
  0x4c   :  { %287 = vmatprep.mubr.f32.mxu1 %v24_v13 }
  0x4e   :  { %754 = vmatmul.mubr.msk.f32.gmra.mrb[32].mxu0 %vm132_vm1, %v64_v20 }
  0x4f   :  { %288 = vmatmul.mubr.f32.gmra.mrb[6].mxu1 %v23_v15  ;;  %756 = vmatprep.mubr.msk.f32.mxu0 %vm888_vm0, %v889_v6 }
  0x50   :  { %292 = vmatprep.mubr.f32.mxu1 %v27_v16 }
  0x52   :  { %757 = vmatmul.mubr.msk.f32.gmra.mrb[34].mxu0 %vm132_vm1, %v67_v23 }
  0x53   :  { %293 = vmatmul.mubr.f32.gmra.mrb[8].mxu1 %v26_v18  ;;  %759 = vmatprep.mubr.msk.f32.mxu0 %vm888_vm0, %v889_v6 }
  0x54   :  { %297 = vmatprep.mubr.f32.mxu1 %v30_v19 }
  0x56   :  { %760 = vmatmul.mubr.msk.f32.gmra.mrb[36].mxu0 %vm132_vm1, %v70_v26  ;;  %v1349_v26 = vld [vmem:[%s1525_s2] ss:$0 sm:$0xff] }
  0x57   :  { %298 = vmatmul.mubr.f32.gmra.mrb[10].mxu1 %v29_v21  ;;  %762 = vmatprep.mubr.msk.f32.mxu0 %vm888_vm0, %v889_v6 }
  0x58   :  { %302 = vmatprep.mubr.f32.mxu1 %v33_v22 }
  0x5a   :  { %763 = vmatmul.mubr.msk.f32.gmra.mrb[38].mxu0 %vm132_vm1, %v73_v29 }
  0x5b   :  { %303 = vmatmul.mubr.f32.gmra.mrb[12].mxu1 %v32_v24  ;;  %765 = vmatprep.mubr.msk.f32.mxu0 %vm888_vm0, %v889_v6 }
  0x5c   :  { %307 = vmatprep.mubr.f32.mxu1 %v36_v25 }
  0x5e   :  { %766 = vmatmul.mubr.msk.f32.gmra.mrb[40].mxu0 %vm132_vm1, %v76_v32 }
  0x5f   :  { %308 = vmatmul.mubr.f32.gmra.mrb[14].mxu1 %v35_v27  ;;  %768 = vmatprep.mubr.msk.f32.mxu0 %vm888_vm0, %v889_v6 }
  0x60   :  { %312 = vmatprep.mubr.f32.mxu1 %v39_v28 }
  0x62   :  { %769 = vmatmul.mubr.msk.f32.gmra.mrb[42].mxu0 %vm132_vm1, %v79_v35 }
  0x63   :  { %313 = vmatmul.mubr.f32.gmra.mrb[16].mxu1 %v38_v30  ;;  %771 = vmatprep.mubr.msk.f32.mxu0 %vm888_vm0, %v889_v6 }
  0x64   :  { %317 = vmatprep.mubr.f32.mxu1 %v42_v31 }
  0x66   :  { %772 = vmatmul.mubr.msk.f32.gmra.mrb[44].mxu0 %vm132_vm1, %v82_v38 }
  0x67   :  { %318 = vmatmul.mubr.f32.gmra.mrb[18].mxu1 %v41_v33  ;;  %774 = vmatprep.mubr.msk.f32.mxu0 %vm888_vm0, %v889_v6 }
  0x68   :  { %322 = vmatprep.mubr.f32.mxu1 %v45_v34 }
  0x6a   :  { %775 = vmatmul.mubr.msk.f32.gmra.mrb[46].mxu0 %vm132_vm1, %v85_v41 }
  0x6b   :  { %323 = vmatmul.mubr.f32.gmra.mrb[20].mxu1 %v44_v36  ;;  %777 = vmatprep.mubr.msk.f32.mxu0 %vm888_vm0, %v889_v6  ;;  %v56_v6 = vld [vmem:[%s1524_s0 + $0x150] sm:$0xff] }
  0x6c   :  { %327 = vmatprep.mubr.f32.mxu1 %v48_v37 }
  0x6e   :  { %778 = vmatmul.mubr.msk.f32.gmra.mrb[48].mxu0 %vm132_vm1, %v88_v44 }
  0x6f   :  { %328 = vmatmul.mubr.f32.gmra.mrb[22].mxu1 %v47_v39 }
  0x70   :  { %332 = vmatprep.mubr.f32.mxu1 %v51_v40 }
  0x73   :  { %333 = vmatmul.mubr.f32.gmra.mrb[24].mxu1 %v50_v42 }
  0x74   :  { %337 = vmatprep.mubr.f32.mxu1 %v54_v43 }
  0x77   :  { %338 = vmatmul.mubr.f32.gmra.mrb[26].mxu1 %v53_v45 }
  0x78   :  { %342 = vmatprep.mubr.f32.mxu1 %v57_v46 }
  0x7b   :  { %343 = vmatmul.mubr.f32.gmra.mrb[28].mxu1 %v56_v6 }
  0x7c   :  { %347 = vmatprep.mubr.f32.mxu1 %v60_v47 }
  0x7f   :  { %348 = vmatmul.mubr.f32.gmra.mrb[30].mxu1 %v59_v48 }
  0x80   :  { %352 = vmatprep.mubr.f32.mxu1 %v63_v49 }
  0x83   :  { %353 = vmatmul.mubr.f32.gmra.mrb[32].mxu1 %v62_v50 }
  0x84   :  { %357 = vmatprep.mubr.f32.mxu1 %v66_v51 }
  0x87   :  { %358 = vmatmul.mubr.f32.gmra.mrb[34].mxu1 %v65_v52 }
  0x88   :  { %362 = vmatprep.mubr.f32.mxu1 %v69_v53 }
  0x8b   :  { %363 = vmatmul.mubr.f32.gmra.mrb[36].mxu1 %v68_v54 }
  0x8c   :  { %367 = vmatprep.mubr.f32.mxu1 %v72_v55 }
  0x8f   :  { %368 = vmatmul.mubr.f32.gmra.mrb[38].mxu1 %v71_v56 }
  0x90   :  { %372 = vmatprep.mubr.f32.mxu1 %v75_v57 }
  0x93   :  { %373 = vmatmul.mubr.f32.gmra.mrb[40].mxu1 %v74_v58 }
  0x94   :  { %377 = vmatprep.mubr.f32.mxu1 %v78_v59 }
  0x97   :  { %378 = vmatmul.mubr.f32.gmra.mrb[42].mxu1 %v77_v60 }
  0x98   :  { %382 = vmatprep.mubr.f32.mxu1 %v81_v61 }
  0x9b   :  { %383 = vmatmul.mubr.f32.gmra.mrb[44].mxu1 %v80_v62 }
  0x9c   :  { %387 = vmatprep.mubr.f32.mxu1 %v84_v63 }
  0x9f   :  { %388 = vmatmul.mubr.f32.gmra.mrb[46].mxu1 %v83_v1 }
  0xa0   :  { %392 = vmatprep.mubr.f32.mxu1 %v87_v2 }
  0xa3   :  { %393 = vmatmul.mubr.f32.gmra.mrb[48].mxu1 %v86_v3 }
  0xe1   :  { %v464_v4 = vpop.f32.mrb[0].mxu0 }
  0xe2   :  { %v707_v5 = vpop.f32.mrb[1].mxu0 }
  0xe5   :  { %v469_v7 = vpop.f32.mrb[2].mxu0 }
  0xe6   :  { %v710_v8 = vpop.f32.mrb[3].mxu0 }
  0xe9   :  { %v474_v0 = vpop.f32.mrb[4].mxu0 }
  0xea   :  { %v713_v9 = vpop.f32.mrb[5].mxu0 }
  0xed   :  { %v479_v10 = vpop.f32.mrb[6].mxu0 }
  0xee   :  { %v716_v11 = vpop.f32.mrb[7].mxu0 }
  0xf1   :  { %v484_v12 = vpop.f32.mrb[8].mxu0 }
  0xf2   :  { %v719_v13 = vpop.f32.mrb[9].mxu0 }
  0xf5   :  { %v489_v14 = vpop.f32.mrb[10].mxu0 }
  0xf6   :  { %v722_v15 = vpop.f32.mrb[11].mxu0 }
  0xf9   :  { %v1336_v16 = vpop.f32.mrb[12].mxu0 }
  0xfa   :  { %v725_v17 = vpop.f32.mrb[13].mxu0 }
  0xfd   :  { %v1338_v18 = vpop.f32.mrb[14].mxu0 }
  0xfe   :  { %v728_v19 = vpop.f32.mrb[15].mxu0 }
 0x101   :  { %v1340_v20 = vpop.f32.mrb[16].mxu0 }
 0x102   :  { %v731_v21 = vpop.f32.mrb[17].mxu0 }
 0x105   :  { %v1342_v22 = vpop.f32.mrb[18].mxu0 }
 0x106   :  { %v734_v23 = vpop.f32.mrb[19].mxu0 }
 0x109   :  { %v1344_v24 = vpop.f32.mrb[20].mxu0 }
 0x10a   :  { %v737_v25 = vpop.f32.mrb[21].mxu0 }
 0x10d   :  { %v1351_v27 = vpop.f32.mrb[22].mxu0 }
 0x10e   :  { %v740_v28 = vpop.f32.mrb[23].mxu0 }
 0x111   :  { %v1354_v32 = vpop.f32.mrb[24].mxu0 }
 0x112   :  { %v743_v34 = vpop.f32.mrb[25].mxu0 }
 0x115   :  { %v1357_v39 = vpop.f32.mrb[26].mxu0 }
 0x116   :  { %v274_v29 = vpop.f32.mrb[0].mxu1  ;;  %v746_v41 = vpop.f32.mrb[27].mxu0 }
 0x117   :  { %v275_v30 = vadd.f32 %v1349_v26, %v274_v29  ;;  %v276_v31 = vpop.f32.mrb[1].mxu1 }
 0x119   :  { %v465_v33 = vadd.f32 %v464_v4, %v275_v30  ;;  %v1364_v46 = vpop.f32.mrb[28].mxu0 }
 0x11a   :  { %v279_v35 = vpop.f32.mrb[2].mxu1  ;;  %v749_v47 = vpop.f32.mrb[29].mxu0 }
 0x11b   :  { %v588_v36 = vmax.f32 %v465_v33, 0.0  ;;  %v280_v37 = vadd.f32 %v1349_v26, %v279_v35  ;;  %v281_v38 = vpop.f32.mrb[3].mxu1 }
 0x11d   :  { %613 = vst.msk [vmem:[%s1526_s3] sm:$0xff] %vm132_vm1, %v588_v36  ;;  %v470_v40 = vadd.f32 %v469_v7, %v280_v37  ;;  %v1371_v52 = vpop.f32.mrb[30].mxu0 }
 0x11e   :  { %v284_v42 = vpop.f32.mrb[4].mxu1  ;;  %v752_v54 = vpop.f32.mrb[31].mxu0 }
 0x11f   :  { %v589_v43 = vmax.f32 %v470_v40, 0.0  ;;  %v285_v44 = vadd.f32 %v1349_v26, %v284_v42  ;;  %v286_v45 = vpop.f32.mrb[5].mxu1 }
 0x121   :  { %614 = vst.msk [vmem:[%s1526_s3 + $0x8] sm:$0xff] %vm132_vm1, %v589_v43  ;;  %v475_v6 = vadd.f32 %v474_v0, %v285_v44  ;;  %v1378_v59 = vpop.f32.mrb[32].mxu0 }
 0x122   :  { %v289_v48 = vpop.f32.mrb[6].mxu1  ;;  %v755_v61 = vpop.f32.mrb[33].mxu0 }
 0x123   :  { %v590_v49 = vmax.f32 %v475_v6, 0.0  ;;  %v290_v50 = vadd.f32 %v1349_v26, %v289_v48  ;;  %v291_v51 = vpop.f32.mrb[7].mxu1 }
 0x125   :  { %615 = vst.msk [vmem:[%s1526_s3 + $0x10] sm:$0xff] %vm132_vm1, %v590_v49  ;;  %v480_v53 = vadd.f32 %v479_v10, %v290_v50  ;;  %v1385_v3 = vpop.f32.mrb[34].mxu0 }
 0x126   :  { %v294_v55 = vpop.f32.mrb[8].mxu1  ;;  %v758_v5 = vpop.f32.mrb[35].mxu0 }
 0x127   :  { %v591_v56 = vmax.f32 %v480_v53, 0.0  ;;  %v295_v57 = vadd.f32 %v1349_v26, %v294_v55  ;;  %v296_v58 = vpop.f32.mrb[9].mxu1 }
 0x129   :  { %616 = vst.msk [vmem:[%s1526_s3 + $0x18] sm:$0xff] %vm132_vm1, %v591_v56  ;;  %v485_v60 = vadd.f32 %v484_v12, %v295_v57  ;;  %v1392_v10 = vpop.f32.mrb[36].mxu0 }
 0x12a   :  { %v299_v62 = vpop.f32.mrb[10].mxu1  ;;  %v761_v12 = vpop.f32.mrb[37].mxu0 }
 0x12b   :  { %v592_v63 = vmax.f32 %v485_v60, 0.0  ;;  %v300_v1 = vadd.f32 %v1349_v26, %v299_v62  ;;  %v301_v2 = vpop.f32.mrb[11].mxu1 }
 0x12d   :  { %617 = vst.msk [vmem:[%s1526_s3 + $0x20] sm:$0xff] %vm132_vm1, %v592_v63  ;;  %v490_v4 = vadd.f32 %v489_v14, %v300_v1  ;;  %v1400_v19 = vpop.f32.mrb[38].mxu0 }
 0x12e   :  { %v304_v7 = vpop.f32.mrb[12].mxu1  ;;  %v764_v23 = vpop.f32.mrb[39].mxu0 }
 0x12f   :  { %v593_v8 = vmax.f32 %v490_v4, 0.0  ;;  %v305_v0 = vadd.f32 %v1349_v26, %v304_v7  ;;  %v306_v9 = vpop.f32.mrb[13].mxu1 }
 0x131   :  { %618 = vst.msk [vmem:[%s1526_s3 + $0x28] sm:$0xff] %vm132_vm1, %v593_v8  ;;  %v495_v11 = vadd.f32 %v1336_v16, %v305_v0  ;;  %v1408_v30 = vpop.f32.mrb[40].mxu0 }
 0x132   :  { %v309_v13 = vpop.f32.mrb[14].mxu1  ;;  %v767_v33 = vpop.f32.mrb[41].mxu0 }
 0x133   :  { %v594_v15 = vmax.f32 %v495_v11, 0.0  ;;  %v310_v14 = vadd.f32 %v1349_v26, %v309_v13  ;;  %v311_v17 = vpop.f32.mrb[15].mxu1 }
 0x135   :  { %619 = vst.msk [vmem:[%s1526_s3 + $0x30] sm:$0xff] %vm132_vm1, %v594_v15  ;;  %v500_v21 = vadd.f32 %v1338_v18, %v310_v14  ;;  %v1416_v37 = vpop.f32.mrb[42].mxu0 }
 0x136   :  { %v314_v25 = vpop.f32.mrb[16].mxu1  ;;  %v770_v40 = vpop.f32.mrb[43].mxu0 }
 0x137   :  { %v595_v28 = vmax.f32 %v500_v21, 0.0  ;;  %v315_v16 = vadd.f32 %v1349_v26, %v314_v25  ;;  %v316_v29 = vpop.f32.mrb[17].mxu1 }
 0x139   :  { %620 = vst.msk [vmem:[%s1526_s3 + $0x38] sm:$0xff] %vm132_vm1, %v595_v28  ;;  %v505_v31 = vadd.f32 %v1340_v20, %v315_v16  ;;  %v1424_v44 = vpop.f32.mrb[44].mxu0 }
 0x13a   :  { %v319_v34 = vpop.f32.mrb[18].mxu1  ;;  %v773_v6 = vpop.f32.mrb[45].mxu0 }
 0x13b   :  { %v596_v35 = vmax.f32 %v505_v31, 0.0  ;;  %v320_v18 = vadd.f32 %v1349_v26, %v319_v34  ;;  %v321_v36 = vpop.f32.mrb[19].mxu1 }
 0x13d   :  { %621 = vst.msk [vmem:[%s1526_s3 + $0x40] sm:$0xff] %vm132_vm1, %v596_v35  ;;  %v510_v38 = vadd.f32 %v1342_v22, %v320_v18  ;;  %v1432_v50 = vpop.f32.mrb[46].mxu0 }
 0x13e   :  { %v324_v41 = vpop.f32.mrb[20].mxu1  ;;  %v776_v53 = vpop.f32.mrb[47].mxu0 }
 0x13f   :  { %v597_v42 = vmax.f32 %v510_v38, 0.0  ;;  %v325_v20 = vadd.f32 %v1349_v26, %v324_v41  ;;  %v326_v43 = vpop.f32.mrb[21].mxu1 }
 0x141   :  { %622 = vst.msk [vmem:[%s1526_s3 + $0x48] sm:$0xff] %vm132_vm1, %v597_v42  ;;  %v515_v45 = vadd.f32 %v1344_v24, %v325_v20  ;;  %v1440_v57 = vpop.f32.mrb[48].mxu0 }
 0x142   :  { %v329_v47 = vpop.f32.mrb[22].mxu1  ;;  %v779_v60 = vpop.f32.mrb[49].mxu0 }
 0x143   :  { %v598_v48 = vmax.f32 %v515_v45, 0.0  ;;  %v330_v22 = vadd.f32 %v1349_v26, %v329_v47  ;;  %v331_v49 = vpop.f32.mrb[23].mxu1 }
 0x145   :  { %623 = vst.msk [vmem:[%s1526_s3 + $0x50] sm:$0xff] %vm132_vm1, %v598_v48  ;;  %v520_v51 = vadd.f32 %v1351_v27, %v330_v22 }
 0x146   :  { %v334_v54 = vpop.f32.mrb[24].mxu1 }
 0x147   :  { %v599_v55 = vmax.f32 %v520_v51, 0.0  ;;  %v335_v24 = vadd.f32 %v1349_v26, %v334_v54  ;;  %v336_v56 = vpop.f32.mrb[25].mxu1 }
 0x149   :  { %624 = vst.msk [vmem:[%s1526_s3 + $0x58] sm:$0xff] %vm132_vm1, %v599_v55  ;;  %v525_v58 = vadd.f32 %v1354_v32, %v335_v24 }
 0x14a   :  { %v339_v61 = vpop.f32.mrb[26].mxu1 }
 0x14b   :  { %v600_v62 = vmax.f32 %v525_v58, 0.0  ;;  %v340_v27 = vadd.f32 %v1349_v26, %v339_v61  ;;  %v341_v63 = vpop.f32.mrb[27].mxu1 }
 0x14d   :  { %625 = vst.msk [vmem:[%s1526_s3 + $0x60] sm:$0xff] %vm132_vm1, %v600_v62  ;;  %v530_v1 = vadd.f32 %v1357_v39, %v340_v27 }
 0x14e   :  { %v344_v2 = vpop.f32.mrb[28].mxu1 }
 0x14f   :  { %v601_v4 = vmax.f32 %v530_v1, 0.0  ;;  %v345_v5 = vadd.f32 %v1349_v26, %v344_v2  ;;  %v346_v7 = vpop.f32.mrb[29].mxu1 }
 0x151   :  { %626 = vst.msk [vmem:[%s1526_s3 + $0x68] sm:$0xff] %vm132_vm1, %v601_v4  ;;  %v535_v32 = vadd.f32 %v1364_v46, %v345_v5 }
 0x152   :  { %v349_v8 = vpop.f32.mrb[30].mxu1 }
 0x153   :  { %v602_v0 = vmax.f32 %v535_v32, 0.0  ;;  %v350_v9 = vadd.f32 %v1349_v26, %v349_v8  ;;  %v351_v11 = vpop.f32.mrb[31].mxu1 }
 0x155   :  { %627 = vst.msk [vmem:[%s1526_s3 + $0x70] sm:$0xff] %vm132_vm1, %v602_v0  ;;  %v540_v39 = vadd.f32 %v1371_v52, %v350_v9 }
 0x156   :  { %v354_v12 = vpop.f32.mrb[32].mxu1 }
 0x157   :  { %v603_v13 = vmax.f32 %v540_v39, 0.0  ;;  %v355_v15 = vadd.f32 %v1349_v26, %v354_v12  ;;  %v356_v14 = vpop.f32.mrb[33].mxu1 }
 0x159   :  { %628 = vst.msk [vmem:[%s1526_s3 + $0x78] sm:$0xff] %vm132_vm1, %v603_v13  ;;  %v545_v46 = vadd.f32 %v1378_v59, %v355_v15 }
 0x15a   :  { %v359_v17 = vpop.f32.mrb[34].mxu1 }
 0x15b   :  { %v604_v21 = vmax.f32 %v545_v46, 0.0  ;;  %v360_v23 = vadd.f32 %v1349_v26, %v359_v17  ;;  %v361_v25 = vpop.f32.mrb[35].mxu1 }
 0x15d   :  { %629 = vst.msk [vmem:[%s1526_s3 + $0x80] sm:$0xff] %vm132_vm1, %v604_v21  ;;  %v550_v52 = vadd.f32 %v1385_v3, %v360_v23 }
 0x15e   :  { %v364_v28 = vpop.f32.mrb[36].mxu1 }
 0x15f   :  { %v605_v16 = vmax.f32 %v550_v52, 0.0  ;;  %v365_v29 = vadd.f32 %v1349_v26, %v364_v28  ;;  %v366_v31 = vpop.f32.mrb[37].mxu1 }
 0x161   :  { %630 = vst.msk [vmem:[%s1526_s3 + $0x88] sm:$0xff] %vm132_vm1, %v605_v16  ;;  %v555_v59 = vadd.f32 %v1392_v10, %v365_v29 }
 0x162   :  { %v369_v33 = vpop.f32.mrb[38].mxu1 }
 0x163   :  { %v606_v34 = vmax.f32 %v555_v59, 0.0  ;;  %v370_v35 = vadd.f32 %v1349_v26, %v369_v33  ;;  %v371_v18 = vpop.f32.mrb[39].mxu1 }
 0x165   :  { %631 = vst.msk [vmem:[%s1526_s3 + $0x90] sm:$0xff] %vm132_vm1, %v606_v34  ;;  %v560_v3 = vadd.f32 %v1400_v19, %v370_v35 }
 0x166   :  { %v374_v36 = vpop.f32.mrb[40].mxu1 }
 0x167   :  { %v607_v38 = vmax.f32 %v560_v3, 0.0  ;;  %v375_v40 = vadd.f32 %v1349_v26, %v374_v36  ;;  %v376_v41 = vpop.f32.mrb[41].mxu1 }
 0x169   :  { %632 = vst.msk [vmem:[%s1526_s3 + $0x98] sm:$0xff] %vm132_vm1, %v607_v38  ;;  %v565_v10 = vadd.f32 %v1408_v30, %v375_v40 }
 0x16a   :  { %v379_v42 = vpop.f32.mrb[42].mxu1 }
 0x16b   :  { %v608_v20 = vmax.f32 %v565_v10, 0.0  ;;  %v380_v43 = vadd.f32 %v1349_v26, %v379_v42  ;;  %v381_v45 = vpop.f32.mrb[43].mxu1 }
 0x16d   :  { %633 = vst.msk [vmem:[%s1526_s3 + $0xa0] sm:$0xff] %vm132_vm1, %v608_v20  ;;  %v570_v19 = vadd.f32 %v1416_v37, %v380_v43 }
 0x16e   :  { %v384_v6 = vpop.f32.mrb[44].mxu1 }
 0x16f   :  { %v609_v47 = vmax.f32 %v570_v19, 0.0  ;;  %v385_v48 = vadd.f32 %v1349_v26, %v384_v6  ;;  %v386_v22 = vpop.f32.mrb[45].mxu1 }
 0x171   :  { %634 = vst.msk [vmem:[%s1526_s3 + $0xa8] sm:$0xff] %vm132_vm1, %v609_v47  ;;  %v575_v30 = vadd.f32 %v1424_v44, %v385_v48 }
 0x172   :  { %v389_v49 = vpop.f32.mrb[46].mxu1 }
 0x173   :  { %v610_v51 = vmax.f32 %v575_v30, 0.0  ;;  %v390_v53 = vadd.f32 %v1349_v26, %v389_v49  ;;  %v391_v54 = vpop.f32.mrb[47].mxu1 }
 0x175   :  { %635 = vst.msk [vmem:[%s1526_s3 + $0xb0] sm:$0xff] %vm132_vm1, %v610_v51  ;;  %v580_v37 = vadd.f32 %v1432_v50, %v390_v53 }
 0x176   :  { %v394_v55 = vpop.f32.mrb[48].mxu1 }
 0x177   :  { %v611_v24 = vmax.f32 %v580_v37, 0.0  ;;  %v395_v56 = vadd.f32 %v1349_v26, %v394_v55  ;;  %v396_v58 = vpop.f32.mrb[49].mxu1 }
 0x179   :  { %636 = vst.msk [vmem:[%s1526_s3 + $0xb8] sm:$0xff] %vm132_vm1, %v611_v24  ;;  %v585_v44 = vadd.f32 %v1440_v57, %v395_v56 }
 0x17b   :  { %v612_v60 = vmax.f32 %v585_v44, 0.0 }
 0x17d   :  { %637 = vst.msk [vmem:[%s1526_s3 + $0xc0] sm:$0xff] %vm132_vm1, %v612_v60 }

// kernel: _a3c_forward.8
= control target key start
LH: loop header
LB: loop body
LE: loop exit
PB: predicated region body
PF: predicated region fallthrough
CT: control target
= control target key end

     0   :  { %v461_v3 = vmov 0.0|0.0   ;;  %vm462_vm0 = vmmov 0   ;;  %v463_v4 = vmov 0.0   ;;  %vm78_vm1 = vcmask 261120   ;;  %s706_s1 = inlined_call_operand.vmem [shape: f32[288,32], index: 1, kind: input, shape index: {}]   ;;  %s707_s0 = inlined_call_operand.vmem [shape: f32[50,288], index: 0, kind: input, shape index: {}]   ;;  %s708_s2 = inlined_call_operand.vmem [shape: f32[1,32], index: 2, kind: input, shape index: {}]   ;;  %s709_s3 = inlined_call_operand.vmem [shape: f32[50,32], index: 3, kind: output, shape index: {}]  }
   0x1   :  { %v51_v0 = vld [vmem:[%s706_s1 + $0x80] sm:$0xff]  ;;  %v52_v1 = vld [vmem:[%s706_s1 + $0x88] sm:$0xff]  ;;  %452 = vmatprep.subr.bf16.mxu1 %v461_v3  ;;  %399 = vmatprep.mubr.msk.f32.mxu1 %vm462_vm0, %v463_v4  ;;  %v53_v7 = vld [vmem:[%s706_s1 + $0x90] sm:$0xff]  ;;  %vm313_vm2 = vcmask 254976  }
   0x2   :  { %v35_v2 = vld [vmem:[%s706_s1] sm:$0xff]  ;;  %v420_v5 = vpack.c.bf16 %v52_v1, %v51_v0  ;;  %v36_v6 = vld [vmem:[%s706_s1 + $0x8] sm:$0xff]  ;;  %v54_v8 = vld [vmem:[%s706_s1 + $0x98] sm:$0xff] }
   0x3   :  { %v422_v9 = vpack.c.bf16 %v36_v6, %v35_v2  ;;  %v424_v10 = vpack.c.bf16 %v54_v8, %v53_v7  ;;  %v37_v11 = vld [vmem:[%s706_s1 + $0x10] sm:$0xff]  ;;  %v38_v12 = vld [vmem:[%s706_s1 + $0x18] sm:$0xff]  ;;  %v55_v13 = vld [vmem:[%s706_s1 + $0xa0] sm:$0xff] }
   0x4   :  { %421 = vmatprep.subr.bf16.mxu0 %v420_v5  ;;  %v56_v14 = vld [vmem:[%s706_s1 + $0xa8] sm:$0xff]  ;;  %v426_v15 = vpack.c.bf16 %v38_v12, %v37_v11  ;;  %v39_v17 = vld [vmem:[%s706_s1 + $0x20] sm:$0xff]  ;;  %v57_v19 = vld [vmem:[%s706_s1 + $0xb0] sm:$0xff] }
   0x5   :  { %423 = vmatpush3.bf16.msra.mxu0 %v422_v9  ;;  %v428_v16 = vpack.c.bf16 %v56_v14, %v55_v13  ;;  %v40_v18 = vld [vmem:[%s706_s1 + $0x28] sm:$0xff]  ;;  %v58_v20 = vld [vmem:[%s706_s1 + $0xb8] sm:$0xff]  ;;  %v41_v23 = vld [vmem:[%s706_s1 + $0x30] sm:$0xff] }
   0x6   :  { %425 = vmatprep.subr.bf16.mxu0 %v424_v10  ;;  %v430_v21 = vpack.c.bf16 %v40_v18, %v39_v17  ;;  %v432_v22 = vpack.c.bf16 %v58_v20, %v57_v19  ;;  %v42_v24 = vld [vmem:[%s706_s1 + $0x38] sm:$0xff]  ;;  %v59_v25 = vld [vmem:[%s706_s1 + $0xc0] sm:$0xff]  ;;  %v60_v26 = vld [vmem:[%s706_s1 + $0xc8] sm:$0xff] }
   0x7   :  { %v67_v27 = vld [vmem:[%s706_s1 + $0x100] sm:$0xff]  ;;  %v68_v28 = vld [vmem:[%s706_s1 + $0x108] sm:$0xff]  ;;  %v434_v30 = vpack.c.bf16 %v42_v24, %v41_v23  ;;  %v69_v32 = vld [vmem:[%s706_s1 + $0x110] sm:$0xff]  ;;  %v436_v34 = vpack.c.bf16 %v60_v26, %v59_v25 }
   0x8   :  { %v15_v29 = vld [vmem:[%s707_s0 + $0x8] sm:$0xff]  ;;  %v453_v31 = vpack.c.bf16 %v68_v28, %v67_v27  ;;  %v70_v33 = vld [vmem:[%s706_s1 + $0x118] sm:$0xff]  ;;  %v43_v35 = vld [vmem:[%s706_s1 + $0x40] sm:$0xff] }
   0x9   :  { %427 = vmatpush3.bf16.msra.mxu0 %v426_v15  ;;  %164 = vmatprep.mubr.f32.mxu0 %v15_v29  ;;  %v44_v36 = vld [vmem:[%s706_s1 + $0x48] sm:$0xff]  ;;  %v61_v37 = vld [vmem:[%s706_s1 + $0xd0] sm:$0xff]  ;;  %v62_v38 = vld [vmem:[%s706_s1 + $0xd8] sm:$0xff]  ;;  %v456_v39 = vpack.c.bf16 %v70_v33, %v69_v32 }
   0xa   :  { %429 = vmatprep.subr.bf16.mxu0 %v428_v16  ;;  %454 = vmatpush3.bf16.msra.mxu1 %v453_v31  ;;  %v438_v40 = vpack.c.bf16 %v44_v36, %v43_v35  ;;  %v440_v41 = vpack.c.bf16 %v62_v38, %v61_v37  ;;  %v45_v42 = vld [vmem:[%s706_s1 + $0x50] sm:$0xff]  ;;  %v46_v43 = vld [vmem:[%s706_s1 + $0x58] sm:$0xff]  ;;  %v63_v44 = vld [vmem:[%s706_s1 + $0xe0] sm:$0xff] }
   0xb   :  { %455 = vmatprep.subr.bf16.mxu1 %v461_v3  ;;  %v64_v45 = vld [vmem:[%s706_s1 + $0xe8] sm:$0xff]  ;;  %v16_v46 = vld [vmem:[%s707_s0 + $0x10] sm:$0xff]  ;;  %v442_v47 = vpack.c.bf16 %v46_v43, %v45_v42  ;;  %v47_v49 = vld [vmem:[%s706_s1 + $0x60] sm:$0xff] }
   0xc   :  { %v444_v48 = vpack.c.bf16 %v64_v45, %v63_v44  ;;  %v48_v50 = vld [vmem:[%s706_s1 + $0x68] sm:$0xff]  ;;  %v65_v51 = vld [vmem:[%s706_s1 + $0xf0] sm:$0xff]  ;;  %v66_v52 = vld [vmem:[%s706_s1 + $0xf8] sm:$0xff] }
   0xd   :  { %431 = vmatpush3.bf16.msra.mxu0 %v430_v21  ;;  %v19_v53 = vld [vmem:[%s707_s0 + $0x28] sm:$0xff]  ;;  %v446_v54 = vpack.c.bf16 %v48_v50, %v47_v49  ;;  %v448_v55 = vpack.c.bf16 %v66_v52, %v65_v51  ;;  %v49_v56 = vld [vmem:[%s706_s1 + $0x70] sm:$0xff]  ;;  %v50_v57 = vld [vmem:[%s706_s1 + $0x78] sm:$0xff] }
   0xe   :  { %433 = vmatprep.subr.bf16.mxu0 %v432_v22  ;;  %457 = vmatpush3.bf16.msra.mxu1 %v456_v39  ;;  %v22_v58 = vld [vmem:[%s707_s0 + $0x40] sm:$0xff]  ;;  %v450_v59 = vpack.c.bf16 %v50_v57, %v49_v56  ;;  %v25_v60 = vld [vmem:[%s707_s0 + $0x58] sm:$0xff]  ;;  %v28_v63 = vld [vmem:[%s707_s0 + $0x70] sm:$0xff] }
   0xf   :  { %v14_v61 = vld [vmem:[%s707_s0] sm:$0xff]  ;;  %v17_v0 = vld [vmem:[%s707_s0 + $0x18] sm:$0xff]  ;;  %v31_v2 = vld [vmem:[%s707_s0 + $0x88] sm:$0xff] }
  0x10   :  { %v18_v62 = vld [vmem:[%s707_s0 + $0x20] sm:$0xff]  ;;  %v21_v1 = vld [vmem:[%s707_s0 + $0x38] sm:$0xff]  ;;  %v20_v3 = vld [vmem:[%s707_s0 + $0x30] sm:$0xff] }
  0x11   :  { %435 = vmatpush3.bf16.msra.mxu0 %v434_v30  ;;  %400 = vmatmul.mubr.msk.f32.vlgmr.msra.gmra.mrb[0].mxu1 %vm78_vm1, %v16_v46  ;;  %v24_v5 = vld [vmem:[%s707_s0 + $0x50] sm:$0xff]  ;;  %v34_v6 = vld [vmem:[%s707_s0 + $0xa0] sm:$0x3]  ;;  %v23_v7 = vld [vmem:[%s707_s0 + $0x48] sm:$0xff] }
  0x12   :  { %437 = vmatprep.subr.bf16.mxu0 %v436_v34  ;;  %402 = vmatprep.mubr.msk.f32.mxu1 %vm462_vm0, %v463_v4  ;;  %v27_v8 = vld [vmem:[%s707_s0 + $0x68] sm:$0xff]  ;;  %v30_v9 = vld [vmem:[%s707_s0 + $0x80] sm:$0xff]  ;;  %v29_v10 = vld [vmem:[%s707_s0 + $0x78] sm:$0xff] }
  0x13   :  { %v33_v11 = vld [vmem:[%s707_s0 + $0x98] sm:$0x3]  ;;  %v32_v12 = vld [vmem:[%s707_s0 + $0x90] sm:$0x3]  ;;  %v319_v23 = vld [vmem:[%s708_s2] ss:$0 sm:$0xff] }
  0x15   :  { %439 = vmatpush3.bf16.msra.mxu0 %v438_v40  ;;  %403 = vmatmul.mubr.msk.f32.gmra.mrb[2].mxu1 %vm78_vm1, %v19_v53 }
  0x16   :  { %441 = vmatprep.subr.bf16.mxu0 %v440_v41  ;;  %405 = vmatprep.mubr.msk.f32.mxu1 %vm462_vm0, %v463_v4 }
  0x19   :  { %443 = vmatpush3.bf16.msra.mxu0 %v442_v47  ;;  %406 = vmatmul.mubr.msk.f32.gmra.mrb[4].mxu1 %vm78_vm1, %v22_v58 }
  0x1a   :  { %445 = vmatprep.subr.bf16.mxu0 %v444_v48  ;;  %408 = vmatprep.mubr.msk.f32.mxu1 %vm462_vm0, %v463_v4 }
  0x1d   :  { %447 = vmatpush3.bf16.msra.mxu0 %v446_v54  ;;  %409 = vmatmul.mubr.msk.f32.gmra.mrb[6].mxu1 %vm78_vm1, %v25_v60 }
  0x1e   :  { %449 = vmatprep.subr.bf16.mxu0 %v448_v55  ;;  %411 = vmatprep.mubr.msk.f32.mxu1 %vm462_vm0, %v463_v4 }
  0x21   :  { %451 = vmatpush3.bf16.msra.mxu0 %v450_v59  ;;  %412 = vmatmul.mubr.msk.f32.gmra.mrb[8].mxu1 %vm78_vm1, %v28_v63 }
  0x22   :  { %414 = vmatprep.mubr.msk.f32.mxu1 %vm462_vm0, %v463_v4 }
  0x24   :  { %165 = vmatmul.mubr.f32.vlgmr.msra.gmra.mrb[0].mxu0 %v14_v61 }
  0x25   :  { %169 = vmatprep.mubr.f32.mxu0 %v18_v62  ;;  %415 = vmatmul.mubr.msk.f32.gmra.mrb[10].mxu1 %vm78_vm1, %v31_v2 }
  0x26   :  { %417 = vmatprep.mubr.msk.f32.mxu1 %vm462_vm0, %v463_v4  ;;  %v26_v4 = vld [vmem:[%s707_s0 + $0x60] sm:$0xff] }
  0x28   :  { %170 = vmatmul.mubr.f32.gmra.mrb[2].mxu0 %v17_v0 }
  0x29   :  { %174 = vmatprep.mubr.f32.mxu0 %v21_v1  ;;  %418 = vmatmul.mubr.msk.f32.gmra.mrb[12].mxu1 %vm78_vm1, %v34_v6 }
  0x2c   :  { %175 = vmatmul.mubr.f32.gmra.mrb[4].mxu0 %v20_v3 }
  0x2d   :  { %179 = vmatprep.mubr.f32.mxu0 %v24_v5 }
  0x30   :  { %180 = vmatmul.mubr.f32.gmra.mrb[6].mxu0 %v23_v7 }
  0x31   :  { %184 = vmatprep.mubr.f32.mxu0 %v27_v8 }
  0x34   :  { %185 = vmatmul.mubr.f32.gmra.mrb[8].mxu0 %v26_v4 }
  0x35   :  { %189 = vmatprep.mubr.f32.mxu0 %v30_v9 }
  0x38   :  { %190 = vmatmul.mubr.f32.gmra.mrb[10].mxu0 %v29_v10 }
  0x39   :  { %194 = vmatprep.mubr.f32.mxu0 %v33_v11 }
  0x3c   :  { %195 = vmatmul.mubr.f32.gmra.mrb[12].mxu0 %v32_v12 }
  0xe4   :  { %v266_v13 = vpop.f32.mrb[0].mxu1 }
  0xe5   :  { %v401_v14 = vpop.f32.mrb[1].mxu1 }
  0xe8   :  { %v271_v15 = vpop.f32.mrb[2].mxu1 }
  0xe9   :  { %v404_v16 = vpop.f32.mrb[3].mxu1 }
  0xec   :  { %v276_v17 = vpop.f32.mrb[4].mxu1 }
  0xed   :  { %v407_v18 = vpop.f32.mrb[5].mxu1 }
  0xf0   :  { %v281_v19 = vpop.f32.mrb[6].mxu1 }
  0xf1   :  { %v410_v20 = vpop.f32.mrb[7].mxu1 }
  0xf4   :  { %v286_v25 = vpop.f32.mrb[8].mxu1 }
  0xf5   :  { %v413_v26 = vpop.f32.mrb[9].mxu1 }
  0xf7   :  { %v359_v21 = vpop.f32.mrb[0].mxu0 }
  0xf8   :  { %v360_v22 = vpop.f32.mrb[1].mxu0  ;;  %v291_v32 = vpop.f32.mrb[10].mxu1 }
  0xf9   :  { %v361_v24 = vadd.f32 %v360_v22, %v359_v21  ;;  %v416_v33 = vpop.f32.mrb[11].mxu1 }
  0xfb   :  { %v362_v27 = vpop.f32.mrb[2].mxu0  ;;  %v167_v28 = vadd.f32 %v361_v24, %v319_v23 }
  0xfc   :  { %v363_v29 = vpop.f32.mrb[3].mxu0  ;;  %v296_v40 = vpop.f32.mrb[12].mxu1 }
  0xfd   :  { %v267_v30 = vadd.f32 %v266_v13, %v167_v28  ;;  %v364_v31 = vadd.f32 %v363_v29, %v362_v27  ;;  %v419_v41 = vpop.f32.mrb[13].mxu1 }
  0xff   :  { %v300_v34 = vmax.f32 %v267_v30, 0.0  ;;  %v365_v35 = vpop.f32.mrb[4].mxu0  ;;  %v172_v36 = vadd.f32 %v364_v31, %v319_v23 }
 0x100   :  { %v366_v37 = vpop.f32.mrb[5].mxu0 }
 0x101   :  { %307 = vst.msk [vmem:[%s709_s3] sm:$0xff] %vm78_vm1, %v300_v34  ;;  %v272_v38 = vadd.f32 %v271_v15, %v172_v36  ;;  %v367_v39 = vadd.f32 %v366_v37, %v365_v35 }
 0x103   :  { %v301_v42 = vmax.f32 %v272_v38, 0.0  ;;  %v368_v43 = vpop.f32.mrb[6].mxu0  ;;  %v177_v44 = vadd.f32 %v367_v39, %v319_v23 }
 0x104   :  { %v369_v45 = vpop.f32.mrb[7].mxu0 }
 0x105   :  { %308 = vst.msk [vmem:[%s709_s3 + $0x8] sm:$0xff] %vm78_vm1, %v301_v42  ;;  %v277_v46 = vadd.f32 %v276_v17, %v177_v44  ;;  %v370_v47 = vadd.f32 %v369_v45, %v368_v43 }
 0x107   :  { %v302_v48 = vmax.f32 %v277_v46, 0.0  ;;  %v371_v49 = vpop.f32.mrb[8].mxu0  ;;  %v182_v50 = vadd.f32 %v370_v47, %v319_v23 }
 0x108   :  { %v372_v51 = vpop.f32.mrb[9].mxu0 }
 0x109   :  { %309 = vst.msk [vmem:[%s709_s3 + $0x10] sm:$0xff] %vm78_vm1, %v302_v48  ;;  %v282_v52 = vadd.f32 %v281_v19, %v182_v50  ;;  %v373_v53 = vadd.f32 %v372_v51, %v371_v49 }
 0x10b   :  { %v303_v54 = vmax.f32 %v282_v52, 0.0  ;;  %v374_v55 = vpop.f32.mrb[10].mxu0  ;;  %v187_v56 = vadd.f32 %v373_v53, %v319_v23 }
 0x10c   :  { %v375_v57 = vpop.f32.mrb[11].mxu0 }
 0x10d   :  { %310 = vst.msk [vmem:[%s709_s3 + $0x18] sm:$0xff] %vm78_vm1, %v303_v54  ;;  %v287_v58 = vadd.f32 %v286_v25, %v187_v56  ;;  %v376_v59 = vadd.f32 %v375_v57, %v374_v55 }
 0x10f   :  { %v304_v60 = vmax.f32 %v287_v58, 0.0  ;;  %v377_v61 = vpop.f32.mrb[12].mxu0  ;;  %v192_v62 = vadd.f32 %v376_v59, %v319_v23 }
 0x110   :  { %v378_v63 = vpop.f32.mrb[13].mxu0 }
 0x111   :  { %311 = vst.msk [vmem:[%s709_s3 + $0x20] sm:$0xff] %vm78_vm1, %v304_v60  ;;  %v292_v0 = vadd.f32 %v291_v32, %v192_v62  ;;  %v379_v1 = vadd.f32 %v378_v63, %v377_v61 }
 0x113   :  { %v305_v2 = vmax.f32 %v292_v0, 0.0  ;;  %v197_v3 = vadd.f32 %v379_v1, %v319_v23 }
 0x115   :  { %312 = vst.msk [vmem:[%s709_s3 + $0x28] sm:$0xff] %vm78_vm1, %v305_v2  ;;  %v297_v5 = vadd.f32 %v296_v40, %v197_v3 }
 0x117   :  { %v306_v6 = vmax.f32 %v297_v5, 0.0 }
 0x119   :  { %314 = vst.msk [vmem:[%s709_s3 + $0x30] sm:$0x3] %vm313_vm2, %v306_v6 }

// kernel: _a3c_forward.9
= control target key start
LH: loop header
LB: loop body
LE: loop exit
PB: predicated region body
PF: predicated region fallthrough
CT: control target
= control target key end

     0   :  { %v357_v3 = vmov 0.0|0.0   ;;  %vm358_vm0 = vmmov 0   ;;  %v359_v4 = vmov 0.0   ;;  %vm66_vm1 = vcmask 261120   ;;  %s538_s1 = inlined_call_operand.vmem [shape: f32[288,32], index: 1, kind: input, shape index: {}]   ;;  %s539_s0 = inlined_call_operand.vmem [shape: f32[18,288], index: 0, kind: input, shape index: {}]   ;;  %s540_s2 = inlined_call_operand.vmem [shape: f32[1,32], index: 2, kind: input, shape index: {}]   ;;  %s541_s3 = inlined_call_operand.vmem [shape: f32[18,32], index: 3, kind: output, shape index: {}]  }
   0x1   :  { %v39_v0 = vld [vmem:[%s538_s1 + $0x80] sm:$0xff]  ;;  %v40_v1 = vld [vmem:[%s538_s1 + $0x88] sm:$0xff]  ;;  %348 = vmatprep.subr.bf16.mxu1 %v357_v3  ;;  %307 = vmatprep.mubr.msk.f32.mxu1 %vm358_vm0, %v359_v4  ;;  %v41_v7 = vld [vmem:[%s538_s1 + $0x90] sm:$0xff]  ;;  %vm241_vm2 = vcmask 254976  }
   0x2   :  { %v23_v2 = vld [vmem:[%s538_s1] sm:$0xff]  ;;  %v316_v5 = vpack.c.bf16 %v40_v1, %v39_v0  ;;  %v24_v6 = vld [vmem:[%s538_s1 + $0x8] sm:$0xff]  ;;  %v42_v8 = vld [vmem:[%s538_s1 + $0x98] sm:$0xff] }
   0x3   :  { %v318_v9 = vpack.c.bf16 %v24_v6, %v23_v2  ;;  %v320_v10 = vpack.c.bf16 %v42_v8, %v41_v7  ;;  %v25_v11 = vld [vmem:[%s538_s1 + $0x10] sm:$0xff]  ;;  %v26_v12 = vld [vmem:[%s538_s1 + $0x18] sm:$0xff]  ;;  %v43_v13 = vld [vmem:[%s538_s1 + $0xa0] sm:$0xff] }
   0x4   :  { %317 = vmatprep.subr.bf16.mxu0 %v316_v5  ;;  %v44_v14 = vld [vmem:[%s538_s1 + $0xa8] sm:$0xff]  ;;  %v322_v15 = vpack.c.bf16 %v26_v12, %v25_v11  ;;  %v27_v17 = vld [vmem:[%s538_s1 + $0x20] sm:$0xff]  ;;  %v45_v19 = vld [vmem:[%s538_s1 + $0xb0] sm:$0xff] }
   0x5   :  { %319 = vmatpush3.bf16.msra.mxu0 %v318_v9  ;;  %v324_v16 = vpack.c.bf16 %v44_v14, %v43_v13  ;;  %v28_v18 = vld [vmem:[%s538_s1 + $0x28] sm:$0xff]  ;;  %v46_v20 = vld [vmem:[%s538_s1 + $0xb8] sm:$0xff]  ;;  %v29_v23 = vld [vmem:[%s538_s1 + $0x30] sm:$0xff] }
   0x6   :  { %321 = vmatprep.subr.bf16.mxu0 %v320_v10  ;;  %v326_v21 = vpack.c.bf16 %v28_v18, %v27_v17  ;;  %v328_v22 = vpack.c.bf16 %v46_v20, %v45_v19  ;;  %v30_v24 = vld [vmem:[%s538_s1 + $0x38] sm:$0xff]  ;;  %v47_v25 = vld [vmem:[%s538_s1 + $0xc0] sm:$0xff]  ;;  %v48_v26 = vld [vmem:[%s538_s1 + $0xc8] sm:$0xff] }
   0x7   :  { %v55_v27 = vld [vmem:[%s538_s1 + $0x100] sm:$0xff]  ;;  %v56_v28 = vld [vmem:[%s538_s1 + $0x108] sm:$0xff]  ;;  %v330_v30 = vpack.c.bf16 %v30_v24, %v29_v23  ;;  %v57_v32 = vld [vmem:[%s538_s1 + $0x110] sm:$0xff]  ;;  %v332_v34 = vpack.c.bf16 %v48_v26, %v47_v25 }
   0x8   :  { %v15_v29 = vld [vmem:[%s539_s0 + $0x8] sm:$0xff]  ;;  %v349_v31 = vpack.c.bf16 %v56_v28, %v55_v27  ;;  %v58_v33 = vld [vmem:[%s538_s1 + $0x118] sm:$0xff]  ;;  %v31_v35 = vld [vmem:[%s538_s1 + $0x40] sm:$0xff] }
   0x9   :  { %323 = vmatpush3.bf16.msra.mxu0 %v322_v15  ;;  %140 = vmatprep.mubr.f32.mxu0 %v15_v29  ;;  %v32_v36 = vld [vmem:[%s538_s1 + $0x48] sm:$0xff]  ;;  %v49_v37 = vld [vmem:[%s538_s1 + $0xd0] sm:$0xff]  ;;  %v50_v38 = vld [vmem:[%s538_s1 + $0xd8] sm:$0xff]  ;;  %v352_v39 = vpack.c.bf16 %v58_v33, %v57_v32 }
   0xa   :  { %325 = vmatprep.subr.bf16.mxu0 %v324_v16  ;;  %350 = vmatpush3.bf16.msra.mxu1 %v349_v31  ;;  %v334_v40 = vpack.c.bf16 %v32_v36, %v31_v35  ;;  %v336_v41 = vpack.c.bf16 %v50_v38, %v49_v37  ;;  %v33_v42 = vld [vmem:[%s538_s1 + $0x50] sm:$0xff]  ;;  %v34_v43 = vld [vmem:[%s538_s1 + $0x58] sm:$0xff]  ;;  %v51_v44 = vld [vmem:[%s538_s1 + $0xe0] sm:$0xff] }
   0xb   :  { %351 = vmatprep.subr.bf16.mxu1 %v357_v3  ;;  %v52_v45 = vld [vmem:[%s538_s1 + $0xe8] sm:$0xff]  ;;  %v16_v46 = vld [vmem:[%s539_s0 + $0x10] sm:$0xff]  ;;  %v338_v47 = vpack.c.bf16 %v34_v43, %v33_v42  ;;  %v35_v49 = vld [vmem:[%s538_s1 + $0x60] sm:$0xff] }
   0xc   :  { %v340_v48 = vpack.c.bf16 %v52_v45, %v51_v44  ;;  %v36_v50 = vld [vmem:[%s538_s1 + $0x68] sm:$0xff]  ;;  %v53_v51 = vld [vmem:[%s538_s1 + $0xf0] sm:$0xff]  ;;  %v54_v52 = vld [vmem:[%s538_s1 + $0xf8] sm:$0xff] }
   0xd   :  { %327 = vmatpush3.bf16.msra.mxu0 %v326_v21  ;;  %v19_v53 = vld [vmem:[%s539_s0 + $0x28] sm:$0xff]  ;;  %v342_v54 = vpack.c.bf16 %v36_v50, %v35_v49  ;;  %v344_v55 = vpack.c.bf16 %v54_v52, %v53_v51  ;;  %v37_v56 = vld [vmem:[%s538_s1 + $0x70] sm:$0xff]  ;;  %v38_v57 = vld [vmem:[%s538_s1 + $0x78] sm:$0xff] }
   0xe   :  { %329 = vmatprep.subr.bf16.mxu0 %v328_v22  ;;  %353 = vmatpush3.bf16.msra.mxu1 %v352_v39  ;;  %v22_v58 = vld [vmem:[%s539_s0 + $0x40] sm:$0x3]  ;;  %v346_v59 = vpack.c.bf16 %v38_v57, %v37_v56  ;;  %v17_v62 = vld [vmem:[%s539_s0 + $0x18] sm:$0xff]  ;;  %v20_v0 = vld [vmem:[%s539_s0 + $0x30] sm:$0x3] }
   0xf   :  { %v14_v60 = vld [vmem:[%s539_s0] sm:$0xff]  ;;  %v21_v63 = vld [vmem:[%s539_s0 + $0x38] sm:$0x3] }
  0x10   :  { %v18_v61 = vld [vmem:[%s539_s0 + $0x20] sm:$0xff] }
  0x11   :  { %331 = vmatpush3.bf16.msra.mxu0 %v330_v30  ;;  %308 = vmatmul.mubr.msk.f32.vlgmr.msra.gmra.mrb[0].mxu1 %vm66_vm1, %v16_v46  ;;  %v247_v9 = vld [vmem:[%s540_s2] ss:$0 sm:$0xff] }
  0x12   :  { %333 = vmatprep.subr.bf16.mxu0 %v332_v34  ;;  %310 = vmatprep.mubr.msk.f32.mxu1 %vm358_vm0, %v359_v4 }
  0x15   :  { %335 = vmatpush3.bf16.msra.mxu0 %v334_v40  ;;  %311 = vmatmul.mubr.msk.f32.gmra.mrb[2].mxu1 %vm66_vm1, %v19_v53 }
  0x16   :  { %337 = vmatprep.subr.bf16.mxu0 %v336_v41  ;;  %313 = vmatprep.mubr.msk.f32.mxu1 %vm358_vm0, %v359_v4 }
  0x19   :  { %339 = vmatpush3.bf16.msra.mxu0 %v338_v47  ;;  %314 = vmatmul.mubr.msk.f32.gmra.mrb[4].mxu1 %vm66_vm1, %v22_v58 }
  0x1a   :  { %341 = vmatprep.subr.bf16.mxu0 %v340_v48 }
  0x1d   :  { %343 = vmatpush3.bf16.msra.mxu0 %v342_v54 }
  0x1e   :  { %345 = vmatprep.subr.bf16.mxu0 %v344_v55 }
  0x21   :  { %347 = vmatpush3.bf16.msra.mxu0 %v346_v59 }
  0x24   :  { %141 = vmatmul.mubr.f32.vlgmr.msra.gmra.mrb[0].mxu0 %v14_v60 }
  0x25   :  { %145 = vmatprep.mubr.f32.mxu0 %v18_v61 }
  0x28   :  { %146 = vmatmul.mubr.f32.gmra.mrb[2].mxu0 %v17_v62 }
  0x29   :  { %150 = vmatprep.mubr.f32.mxu0 %v21_v63 }
  0x2c   :  { %151 = vmatmul.mubr.f32.gmra.mrb[4].mxu0 %v20_v0 }
  0xe4   :  { %v222_v1 = vpop.f32.mrb[0].mxu1 }
  0xe5   :  { %v309_v2 = vpop.f32.mrb[1].mxu1 }
  0xe8   :  { %v227_v3 = vpop.f32.mrb[2].mxu1 }
  0xe9   :  { %v312_v4 = vpop.f32.mrb[3].mxu1 }
  0xec   :  { %v232_v5 = vpop.f32.mrb[4].mxu1 }
  0xed   :  { %v315_v6 = vpop.f32.mrb[5].mxu1 }
  0xf7   :  { %v283_v7 = vpop.f32.mrb[0].mxu0 }
  0xf8   :  { %v284_v8 = vpop.f32.mrb[1].mxu0 }
  0xf9   :  { %v285_v10 = vadd.f32 %v284_v8, %v283_v7 }
  0xfb   :  { %v286_v11 = vpop.f32.mrb[2].mxu0  ;;  %v143_v12 = vadd.f32 %v285_v10, %v247_v9 }
  0xfc   :  { %v287_v13 = vpop.f32.mrb[3].mxu0 }
  0xfd   :  { %v223_v14 = vadd.f32 %v222_v1, %v143_v12  ;;  %v288_v15 = vadd.f32 %v287_v13, %v286_v11 }
  0xff   :  { %v236_v16 = vmax.f32 %v223_v14, 0.0  ;;  %v289_v17 = vpop.f32.mrb[4].mxu0  ;;  %v148_v18 = vadd.f32 %v288_v15, %v247_v9 }
 0x100   :  { %v290_v19 = vpop.f32.mrb[5].mxu0 }
 0x101   :  { %239 = vst.msk [vmem:[%s541_s3] sm:$0xff] %vm66_vm1, %v236_v16  ;;  %v228_v20 = vadd.f32 %v227_v3, %v148_v18  ;;  %v291_v21 = vadd.f32 %v290_v19, %v289_v17 }
 0x103   :  { %v237_v22 = vmax.f32 %v228_v20, 0.0  ;;  %v153_v23 = vadd.f32 %v291_v21, %v247_v9 }
 0x105   :  { %240 = vst.msk [vmem:[%s541_s3 + $0x8] sm:$0xff] %vm66_vm1, %v237_v22  ;;  %v233_v24 = vadd.f32 %v232_v5, %v153_v23 }
 0x107   :  { %v238_v25 = vmax.f32 %v233_v24, 0.0 }
 0x109   :  { %242 = vst.msk [vmem:[%s541_s3 + $0x10] sm:$0x3] %vm241_vm2, %v238_v25 }

// kernel: _a3c_forward.10
= control target key start
LH: loop header
LB: loop body
LE: loop exit
PB: predicated region body
PF: predicated region fallthrough
CT: control target
= control target key end

     0   :  { %v524_v7 = vmov 0.0|0.0   ;;  %vm525_vm0 = vmmov 0   ;;  %v526_v8 = vmov 0.0   ;;  %v527_v14 = vmov 1983009808   ;;  %s734_s0 = inlined_call_operand.vmem [shape: f32[2,288], index: 0, kind: input, shape index: {}]   ;;  %s735_s1 = inlined_call_operand.vmem [shape: f32[2,32], index: 1, kind: input, shape index: {}]   ;;  %s736_s2 = inlined_call_operand.vmem [shape: f32[2,32], index: 2, kind: input, shape index: {}]   ;;  %s737_s3 = inlined_call_operand.vmem [shape: f32[288,128], index: 3, kind: input, shape index: {}]   ;;  %s738_s4 = inlined_call_operand.vmem [shape: f32[32,128], index: 4, kind: input, shape index: {}]   ;;  %s739_s5 = inlined_call_operand.vmem [shape: f32[1,128], index: 5, kind: input, shape index: {}]   ;;  %s740_s6 = inlined_call_operand.vmem [shape: f32[2,32], index: 6, kind: output, shape index: {0}]   ;;  %s741_s7 = inlined_call_operand.hbm [shape: f32[2,32], index: 7, kind: output, shape index: {1}]  }
   0x1   :  { %v43_v0 = vld [vmem:[%s737_s3 + $0x80] sm:$0xff]  ;;  %v44_v1 = vld [vmem:[%s737_s3 + $0x88] sm:$0xff]  ;;  %v45_v5 = vld [vmem:[%s737_s3 + $0x90] sm:$0xff]  ;;  %439 = vmatprep.subr.bf16.mxu0 %v524_v7  ;;  %425 = vmatprep.mubr.msk.f32.mxu0 %vm525_vm0, %v526_v8  ;;  %v145_v15 = vunpack.c.l.s4 %v527_v14  ;;  %v147_v16 = vlaneseq  ;;  %vm68_vm1 = vcmask 261120  }
   0x2   :  { %v27_v2 = vld [vmem:[%s737_s3] sm:$0xff]  ;;  %v445_v3 = vpack.c.bf16 %v44_v1, %v43_v0  ;;  %v28_v4 = vld [vmem:[%s737_s3 + $0x8] sm:$0xff]  ;;  %v46_v6 = vld [vmem:[%s737_s3 + $0x98] sm:$0xff] }
   0x3   :  { %v447_v9 = vpack.c.bf16 %v28_v4, %v27_v2  ;;  %v449_v10 = vpack.c.bf16 %v46_v6, %v45_v5  ;;  %v29_v11 = vld [vmem:[%s737_s3 + $0x10] sm:$0xff]  ;;  %v30_v12 = vld [vmem:[%s737_s3 + $0x18] sm:$0xff]  ;;  %v47_v13 = vld [vmem:[%s737_s3 + $0xa0] sm:$0xff]  ;;  %v146_v24 = vunpack.c.0.s8 %v145_v15  ;;  %v148_v25 = vshrl.u32 %v147_v16, 7 }
   0x4   :  { %446 = vmatprep.subr.bf16.mxu1 %v445_v3  ;;  %v48_v17 = vld [vmem:[%s737_s3 + $0xa8] sm:$0xff]  ;;  %v451_v18 = vpack.c.bf16 %v30_v12, %v29_v11  ;;  %v31_v20 = vld [vmem:[%s737_s3 + $0x20] sm:$0xff]  ;;  %v49_v22 = vld [vmem:[%s737_s3 + $0xb0] sm:$0xff] }
   0x5   :  { %448 = vmatpush3.bf16.msra.mxu1 %v447_v9  ;;  %v453_v19 = vpack.c.bf16 %v48_v17, %v47_v13  ;;  %v32_v21 = vld [vmem:[%s737_s3 + $0x28] sm:$0xff]  ;;  %v50_v23 = vld [vmem:[%s737_s3 + $0xb8] sm:$0xff]  ;;  %v64_v26 = vld [vmem:[%s738_s4] sm:$0xff]  ;;  %v149_v38 = vsub.s32 %v146_v24, %v148_v25 }
   0x6   :  { %450 = vmatprep.subr.bf16.mxu1 %v449_v10  ;;  %v65_v27 = vld [vmem:[%s738_s4 + $0x8] sm:$0xff]  ;;  %v455_v28 = vpack.c.bf16 %v32_v21, %v31_v20  ;;  %v33_v29 = vld [vmem:[%s737_s3 + $0x30] sm:$0xff]  ;;  %v457_v31 = vpack.c.bf16 %v50_v23, %v49_v22  ;;  %v34_v32 = vld [vmem:[%s737_s3 + $0x38] sm:$0xff] }
   0x7   :  { %v440_v30 = vpack.c.bf16 %v65_v27, %v64_v26  ;;  %v66_v33 = vld [vmem:[%s738_s4 + $0x10] sm:$0xff]  ;;  %v67_v34 = vld [vmem:[%s738_s4 + $0x18] sm:$0xff]  ;;  %v51_v35 = vld [vmem:[%s737_s3 + $0xc0] sm:$0xff]  ;;  %v459_v39 = vpack.c.bf16 %v34_v32, %v33_v29 }
   0x8   :  { %v52_v36 = vld [vmem:[%s737_s3 + $0xc8] sm:$0xff]  ;;  %v443_v37 = vpack.c.bf16 %v67_v34, %v66_v33  ;;  %v35_v40 = vld [vmem:[%s737_s3 + $0x40] sm:$0xff]  ;;  %v53_v45 = vld [vmem:[%s737_s3 + $0xd0] sm:$0xff] }
   0x9   :  { %452 = vmatpush3.bf16.msra.mxu1 %v451_v18  ;;  %441 = vmatpush3.bf16.msra.mxu0 %v440_v30  ;;  %v59_v41 = vld [vmem:[%s737_s3 + $0x100] sm:$0xff]  ;;  %v60_v42 = vld [vmem:[%s737_s3 + $0x108] sm:$0xff]  ;;  %v461_v43 = vpack.c.bf16 %v52_v36, %v51_v35  ;;  %v54_v47 = vld [vmem:[%s737_s3 + $0xd8] sm:$0xff] }
   0xa   :  { %454 = vmatprep.subr.bf16.mxu1 %v453_v19  ;;  %442 = vmatprep.subr.bf16.mxu0 %v524_v7  ;;  %v36_v44 = vld [vmem:[%s737_s3 + $0x48] sm:$0xff]  ;;  %v26_v46 = vld [vmem:[%s734_s0] sm:$0x3f]  ;;  %v478_v49 = vpack.c.bf16 %v60_v42, %v59_v41 }
   0xb   :  { %v63_v48 = vld [vmem:[%s735_s1] sm:$0x3]  ;;  %v150_v50 = vrot.slane %v26_v46, %v149_v38 }
   0xd   :  { %456 = vmatpush3.bf16.msra.mxu1 %v455_v28  ;;  %444 = vmatpush3.bf16.msra.mxu0 %v443_v37 }
   0xe   :  { %458 = vmatprep.subr.bf16.mxu1 %v457_v31 }
   0xf   :  { %13 = vsyncpa [#allocation3], 0  ;;  %477 = vmatprep.subr.bf16.mxu0 %v524_v7  ;;  %v61_v51 = vld [vmem:[%s737_s3 + $0x110] sm:$0xff]  ;;  %v62_v52 = vld [vmem:[%s737_s3 + $0x118] sm:$0xff]  ;;  %v463_v53 = vpack.c.bf16 %v36_v44, %v35_v40  ;;  %v158_v54 = vcombine.high %v150_v50, %v150_v50  ;;  %v465_v55 = vpack.c.bf16 %v54_v47, %v53_v45  ;;  %v143_v58 = vcombine.high %v26_v46, %v26_v46  ;;  %s529_s0 = smov 32  }
  0x10   :  { %v37_v56 = vld [vmem:[%s737_s3 + $0x50] sm:$0xff]  ;;  %v38_v57 = vld [vmem:[%s737_s3 + $0x58] sm:$0xff]  ;;  %426 = vmatmul.mubr.msk.f32.vlgmr.msra.gmra.mrb[0].mxu0 %vm68_vm1, %v63_v48  ;;  %v55_v59 = vld [vmem:[%s737_s3 + $0xe0] sm:$0xff]  ;;  %v481_v61 = vpack.c.bf16 %v62_v52, %v61_v51  ;;  %vm344_vm2 = vcmask 254976  }
  0x11   :  { %460 = vmatpush3.bf16.msra.mxu1 %v459_v39  ;;  %v56_v60 = vld [vmem:[%s737_s3 + $0xe8] sm:$0xff]  ;;  %479 = vmatpush3.bf16.msra.mxu0 %v478_v49  ;;  %v467_v62 = vpack.c.bf16 %v38_v57, %v37_v56  ;;  %v39_v0 = vld [vmem:[%s737_s3 + $0x60] sm:$0xff]  ;;  %v157_v2 = vrot.slane %v143_v58, %v149_v38  ;;  %v57_v3 = vld [vmem:[%s737_s3 + $0xf0] sm:$0xff] }
  0x12   :  { %462 = vmatprep.subr.bf16.mxu1 %v461_v43  ;;  %227 = vmatprep.mubr.f32.mxu1 %v158_v54  ;;  %v469_v63 = vpack.c.bf16 %v56_v60, %v55_v59  ;;  %v40_v1 = vld [vmem:[%s737_s3 + $0x68] sm:$0xff]  ;;  %v58_v4 = vld [vmem:[%s737_s3 + $0xf8] sm:$0xff]  ;;  %v371_v18 = vld [vmem:[%s739_s5] ss:$0 sm:$0xff]  ;;  %s531_s5 = smov [#allocation2]  }
  0x13   :  { %480 = vmatprep.subr.bf16.mxu0 %v524_v7  ;;  %436 = vmatprep.mubr.msk.f32.mxu0 %vm525_vm0, %v526_v8  ;;  %v471_v5 = vpack.c.bf16 %v40_v1, %v39_v0  ;;  %v473_v6 = vpack.c.bf16 %v58_v4, %v57_v3  ;;  %v41_v7 = vld [vmem:[%s737_s3 + $0x70] sm:$0xff]  ;;  %v42_v8 = vld [vmem:[%s737_s3 + $0x78] sm:$0xff]  ;;  %s528_s3 = smov 64   ;;  %v318_v22 = vld [vmem:[%s736_s2] sm:$0x3]  ;;  %s530_s2 = smov 96  }
  0x14   :  { %v475_v9 = vpack.c.bf16 %v42_v8, %v41_v7  ;;  %s359_s16 = sshll.u32 %s531_s5, 4  ;;  %s360_s16 = int_to_ptr.vmem [resolvable:$true] %s359_s16 }
  0x15   :  { %464 = vmatpush3.bf16.msra.mxu1 %v463_v53  ;;  %482 = vmatpush3.bf16.msra.mxu0 %v481_v61  ;;  %s500_s1 = scalar_lea.vmem %s360_s16, 32  ;;  %p505_p1 = scmp.lt.s32.totalorder %s360_s16, %s360_s16 }
  0x16   :  { %466 = vmatprep.subr.bf16.mxu1 %v465_v55  ;;  %p501_p0 = scmp.ne.s32.totalorder %s360_s16, %s500_s1  ;;  %p506_p2 = scmp.lt.s32.totalorder %s500_s1, %s500_s1 }
  0x18   :  { %437 = vmatmul.mubr.msk.f32.vlgmr.msra.gmra.mrb[2].mxu0 %vm68_vm1, %v157_v2  ;;  %p507_p3 = por %p506_p2, %p505_p1 }
  0x19   :  { %468 = vmatpush3.bf16.msra.mxu1 %v467_v62 }
  0x1a   :  { %470 = vmatprep.subr.bf16.mxu1 %v469_v63  ;;  %p508_p4 = pnand %p507_p3, %p501_p0 }
  0x1d   :  { %472 = vmatpush3.bf16.msra.mxu1 %v471_v5 }
  0x1e   :  { %474 = vmatprep.subr.bf16.mxu1 %v473_v6 }
  0x21   :  { %476 = vmatpush3.bf16.msra.mxu1 %v475_v9 }
  0x24   :  { %228 = vmatmul.mubr.f32.vlgmr.msra.gmra.mrb[0].mxu1 %v150_v50 }
  0xe3   :  { %v138_v10 = vpop.f32.mrb[0].mxu0 }
  0xe4   :  { %v427_v11 = vpop.f32.mrb[1].mxu0 }
  0xeb   :  { %v299_v12 = vpop.f32.mrb[2].mxu0 }
  0xec   :  { %v438_v13 = vpop.f32.mrb[3].mxu0 }
  0xf7   :  { %v409_v14 = vpop.f32.mrb[0].mxu1 }
  0xf8   :  { %v410_v15 = vpop.f32.mrb[1].mxu1 }
  0xf9   :  { %v411_v16 = vadd.f32 %v410_v15, %v409_v14 }
  0xfb   :  { %v230_v17 = vadd.f32 %v411_v16, %v138_v10 }
  0xfd   :  { %v300_v19 = vadd.f32 %v299_v12, %v230_v17 }
  0xff   :  { %v310_v20 = vadd.f32 %v371_v18, %v300_v19 }
 0x101   :  { %492 = vtanh.f32 %v310_v20  ;;  %v311_v23 = vsub.f32 0.0, %v310_v20 }
 0x103   :  { %v312_v24 = vmul.f32 1.442695, %v311_v23 }
 0x105   :  { %494 = vpow2.f32 %v312_v24 }
 0x10b   :  { %v493_v21 = vpop.eup %492 }
 0x10c   :  { %325 = vrot.lane.b32.xlu0 %v493_v21, %s528_s3 }
 0x10f   :  { %v495_v25 = vpop.eup %494 }
 0x110   :  { %320 = vrot.lane.b32.xlu0 %v318_v22, %s529_s0  ;;  %v314_v26 = vadd.f32 1.0, %v495_v25 }
 0x112   :  { %496 = vrcp.f32 %v314_v26 }
 0x11c   :  { %v497_v27 = vpop.eup %496 }
 0x17e   :  { %v326_v28 = vpop.permute.xlu0 %325 }
 0x17f   :  { %v328_v29 = vmul.f32 %v497_v27, %v326_v28 }
 0x181   :  { %330 = vrot.lane.b32.xlu1 %v328_v29, %s529_s0 }
 0x182   :  { %v321_v30 = vpop.permute.xlu0 %320 }
 0x183   :  { %v323_v31 = vmul.f32 %v497_v27, %v321_v30 }
 0x1f3   :  { %v331_v32 = vpop.permute.xlu1 %330 }
 0x1f4   :  { %v333_v33 = vadd.f32 %v331_v32, %v323_v31 }
 0x1f6   :  { %498 = vtanh.f32 %v333_v33  ;;  %347 = vrot.lane.b32.xlu0 %v333_v33, %s530_s2 }
 0x200   :  { %v499_v34 = vpop.eup %498 }
 0x201   :  { %336 = vrot.lane.b32.xlu1 %v499_v34, %s528_s3 }
 0x268   :  { %v348_v35 = vpop.permute.xlu0 %347 }
 0x269   :  { %350 = vst.msk [vmem:[#allocation2] sm:$0x3] %vm344_vm2, %v348_v35 }
 0x26a   :  { %511 = shalt.err (!%p508_p4)
}
 0x26b   :  { %s512_s19 = scalar_lea.hbm %s741_s7, 32 }
 0x26c   :  { %p513_p5 = scmp.ne.s32.totalorder %s741_s7, %s512_s19  ;;  %p516_p6 = scmp.lt.u32.totalorder %s512_s19, %s741_s7 }
 0x26e   :  { %p518_p7 = pnand %p516_p6, %p513_p5 }
 0x270   :  { %521 = shalt.err (!%p518_p7)
}
 0x271   :  { %362 = dma.vmem_to_hbm [thread:$0]  %s360_s16, 32, %s741_s7, [#allocation3]  }
 0x273   :  { %v337_v36 = vpop.permute.xlu1 %336 }
 0x274   :  { %v339_v37 = vmul.f32 %v497_v27, %v337_v36 }
 0x276   :  { %341 = vrot.lane.b32.xlu1 %v339_v37, %s529_s0 }
 0x2e8   :  { %v342_v38 = vpop.permute.xlu1 %341 }
 0x2e9   :  { %345 = vst.msk [vmem:[%s740_s6] sm:$0x3] %vm344_vm2, %v342_v38 }
 0x2ea   :  { %522 = dma.done.wait [#allocation3], 32  }
 0x2eb   :  { %523 = vsyncadd [#allocation3], 4294967264 }
 0x2ec   :  { %368 = vsyncpa [#allocation3], 1 }

// kernel: _a3c_forward.11
= control target key start
LH: loop header
LB: loop body
LE: loop exit
PB: predicated region body
PF: predicated region fallthrough
CT: control target
= control target key end

     0   :  { %s395_s0 = inlined_call_operand.vmem [shape: f32[2,32], index: 0, kind: input, shape index: {}]   ;;  %s396_s1 = inlined_call_operand.vmem [shape: f32[32,6], index: 1, kind: input, shape index: {}]   ;;  %s397_s2 = inlined_call_operand.vmem [shape: f32[1,6], index: 2, kind: input, shape index: {}]   ;;  %s398_s3 = inlined_call_operand.vmem [shape: f32[32,1], index: 3, kind: input, shape index: {}]   ;;  %s399_s4 = inlined_call_operand.<no memory space> [shape: f32[1,1], index: 4, kind: input, shape index: {}]   ;;  %s400_s5 = inlined_call_operand.hbm [shape: f32[2,6], index: 5, kind: output, shape index: {0}]   ;;  %s401_s6 = inlined_call_operand.vmem [shape: f32[2,1], index: 6, kind: output, shape index: {1}]  }
   0x1   :  { %v12_v0 = vstv %s399_s4 }
   0x2   :  { %13 = vst [vmem:[#allocation2] sm:$0x1] %v12_v0 }
   0x3   :  { %v26_v1 = vld [vmem:[%s396_s1] sm:$0xff]  ;;  %v27_v2 = vld [vmem:[%s396_s1 + $0x8] sm:$0xff]  ;;  %v28_v3 = vld [vmem:[%s396_s1 + $0x10] sm:$0xff]  ;;  %v305_v4 = vmov 0.0|0.0   ;;  %vm306_vm0 = vmmov 0   ;;  %v307_v7 = vmov 0.0  }
   0x4   :  { %261 = vmatprep.subr.bf16.mxu0 %v305_v4  ;;  %v262_v5 = vpack.c.bf16 %v27_v2, %v26_v1  ;;  %v29_v6 = vld [vmem:[%s396_s1 + $0x18] sm:$0xff]  ;;  %247 = vmatprep.mubr.msk.f32.mxu0 %vm306_vm0, %v307_v7 }
   0x5   :  { %267 = vmatprep.subr.bf16.mxu1 %v305_v4  ;;  %258 = vmatprep.mubr.msk.f32.mxu1 %vm306_vm0, %v307_v7 }
   0x6   :  { %14 = vsyncpa [#allocation4], 0  ;;  %263 = vmatpush3.bf16.msra.mxu0 %v262_v5  ;;  %v265_v8 = vpack.c.bf16 %v29_v6, %v28_v3  ;;  %v25_v9 = vld [vmem:[%s395_s0] sm:$0x3]  ;;  %vm37_vm1 = vcmask 261120   ;;  %v125_v11 = vld [vmem:[%s398_s3 + $0x8] sm:$0xff] }
   0x7   :  { %264 = vmatprep.subr.bf16.mxu0 %v305_v4  ;;  %v124_v10 = vld [vmem:[%s398_s3] sm:$0xff]  ;;  %v126_v12 = vld [vmem:[%s398_s3 + $0x10] sm:$0xff]  ;;  %v127_v14 = vld [vmem:[%s398_s3 + $0x18] sm:$0xff]  ;;  %vm111_vm2 = vcmask 41984   ;;  %vm205_vm3 = vcmask 1024   ;;  %s308_s16 = smov [#allocation3]  }
   0x8   :  { %v268_v13 = vpack.c.bf16 %v125_v11, %v124_v10  ;;  %v271_v15 = vpack.c.bf16 %v127_v14, %v126_v12  ;;  %v225_v16 = vld [vmem:[%s397_s2] ss:$0 sm:$0xff]  ;;  %s213_s17 = sshll.u32 %s308_s16, 4  ;;  %s214_s17 = int_to_ptr.vmem [resolvable:$true] %s213_s17 }
   0x9   :  { %v227_v26 = vld [vmem:[#allocation2] ss:$0 sm:$0xff]  ;;  %s281_s18 = scalar_lea.vmem %s214_s17, 32  ;;  %p286_p1 = scmp.lt.s32.totalorder %s214_s17, %s214_s17 }
   0xa   :  { %266 = vmatpush3.bf16.msra.mxu0 %v265_v8  ;;  %269 = vmatpush3.bf16.msra.mxu1 %v268_v13  ;;  %p282_p0 = scmp.ne.s32.totalorder %s214_s17, %s281_s18  ;;  %p287_p2 = scmp.lt.s32.totalorder %s281_s18, %s281_s18 }
   0xb   :  { %270 = vmatprep.subr.bf16.mxu1 %v305_v4 }
   0xc   :  { %p288_p3 = por %p287_p2, %p286_p1 }
   0xd   :  { %248 = vmatmul.mubr.msk.f32.vlgmr.msra.gmra.mrb[0].mxu0 %vm37_vm1, %v25_v9 }
   0xe   :  { %272 = vmatpush3.bf16.msra.mxu1 %v271_v15  ;;  %p289_p4 = pnand %p288_p3, %p282_p0 }
  0x11   :  { %259 = vmatmul.mubr.msk.f32.vlgmr.msra.gmra.mrb[0].mxu1 %vm37_vm1, %v25_v9 }
  0xe0   :  { %v107_v17 = vpop.f32.mrb[0].mxu0 }
  0xe1   :  { %v108_v18 = vadd.f32 %v225_v16, %v107_v17  ;;  %v249_v19 = vpop.f32.mrb[1].mxu0 }
  0xe3   :  { %v112_v20 = vsel %vm111_vm2, %v108_v18, -inf }
  0xe4   :  { %113 = vmax.xlane.f32.xlu0 %v112_v20  ;;  %v201_v27 = vpop.f32.mrb[0].mxu1 }
  0xe5   :  { %v202_v28 = vadd.f32 %v227_v26, %v201_v27  ;;  %v260_v29 = vpop.f32.mrb[1].mxu1 }
  0xe7   :  { %206 = vst.msk [vmem:[%s401_s6] sm:$0x3] %vm205_vm3, %v202_v28 }
 0x171   :  { %v114_v21 = vpop.xlane.xlu0 %113 }
 0x172   :  { %v115_v22 = vsub.f32 %v108_v18, %v114_v21 }
 0x174   :  { %v116_v23 = vmul.f32 1.442695, %v115_v22 }
 0x176   :  { %277 = vpow2.f32 %v116_v23 }
 0x180   :  { %v278_v24 = vpop.eup %277 }
 0x181   :  { %v118_v25 = vsel %vm111_vm2, %v278_v24, 0.0 }
 0x182   :  { %119 = vadd.xlane.f32.xlu0 %v118_v25 }
 0x20f   :  { %v120_v30 = vpop.xlane.xlu0 %119 }
 0x210   :  { %279 = vrcp.f32 %v120_v30 }
 0x21a   :  { %v280_v31 = vpop.eup %279 }
 0x21b   :  { %v122_v32 = vmul.f32 %v280_v31, %v278_v24 }
 0x21d   :  { %123 = vst.msk [vmem:[#allocation3] sm:$0x3] %vm111_vm2, %v122_v32 }
 0x21e   :  { %292 = shalt.err (!%p289_p4)
}
 0x21f   :  { %s293_s6 = scalar_lea.hbm %s400_s5, 32 }
 0x220   :  { %p294_p5 = scmp.ne.s32.totalorder %s400_s5, %s293_s6  ;;  %p297_p6 = scmp.lt.u32.totalorder %s293_s6, %s400_s5 }
 0x222   :  { %p299_p7 = pnand %p297_p6, %p294_p5 }
 0x224   :  { %302 = shalt.err (!%p299_p7)
}
 0x225   :  { %216 = dma.vmem_to_hbm [thread:$0]  %s214_s17, 32, %s400_s5, [#allocation4]  }
 0x226   :  { %303 = dma.done.wait [#allocation4], 32  }
 0x227   :  { %304 = vsyncadd [#allocation4], 4294967264 }
 0x228   :  { %224 = vsyncpa [#allocation4], 1 }

</bundles_post_ra>
